<compile_context>
chip_gen: v7x
topology: tpu7x:2x2x1
jax: 0.10.0
libtpu: 0.0.40
codegen_flags: <defaults>
</compile_context>

<pallas_src>
import functools

import jax
import jax.numpy as jnp
from jax.experimental import pallas as pl
from jax.experimental.pallas import tpu as pltpu


# ---------------------------------------------------------------------------
# Small helpers
# ---------------------------------------------------------------------------
def _round_up(x, m):
    return ((x + m - 1) // m) * m


def _pad2(a, rows, cols):
    return jnp.pad(a, ((0, rows - a.shape[0]), (0, cols - a.shape[1])))


def _vmem_limit(required_bytes):
    # 25% + 4 MiB headroom for Mosaic internals; floor at the usual scoped
    # default, cap at 48 MiB so v7x (64 MiB physical VMEM) keeps headroom.
    return int(min(max(required_bytes * 5 // 4 + (4 << 20), 16 << 20), 48 << 20))


def _pick_fused_tile(n_pad):
    # Keep the per-step Ahat row-slab (tm, n_pad) bf16 at <= ~1 MiB so in-kernel
    # values stay modest; tm stays a multiple of 128 and divides n_pad.
    for t in (512, 256, 128):
        if n_pad % t == 0 and t * n_pad * 2 <= (1 << 20):
            return t
    return 128


def _pick_stream_tile(n_pad):
    # Fallback path: keep the double-buffered Ahat slab <= 16 MiB and >= 2 row
    # tiles so both v7x TensorCores get work on the "parallel" axis.
    for t in (512, 256, 128):
        if n_pad % t == 0 and 2 * t * n_pad * 2 <= (16 << 20) and n_pad // t >= 2:
            return t
    return 128


# ---------------------------------------------------------------------------
# Fused two-layer kernel: grid = (layer_pass, row_tile), both sequential.
# Ahat / Z1 / W2 / biases are VMEM-resident (constant index_map -> single DMA);
# H @ W2 is carried between passes in a VMEM scratch.
# ---------------------------------------------------------------------------
def _gcn_fused_kernel(adj_ref, z1_ref, b1_ref, w2_ref, b2_ref, out_ref, hw2_ref):
    layer = pl.program_id(0)
    i = pl.program_id(1)
    tm = out_ref.shape[0]
    row = pl.multiple_of(i * tm, tm)
    adj_rows = adj_ref[pl.ds(row, tm), :]                     # (tm, n_pad) bf16

    @pl.when(layer == 0)
    def _():
        # Layer 1: H = relu(Ahat @ (X W1) + b1); stash H @ W2 for the next pass.
        agg = jnp.dot(adj_rows, z1_ref[...], preferred_element_type=jnp.float32)
        h = jnp.maximum(agg + b1_ref[...], 0.0)
        hw2 = jnp.dot(h.astype(jnp.bfloat16), w2_ref[...],
                      preferred_element_type=jnp.float32)
        hw2_ref[pl.ds(row, tm), :] = hw2.astype(hw2_ref.dtype)
        # Output block is revisited (and fully overwritten) on the layer-1 pass;
        # write zeros here just to keep the interim HBM contents deterministic.
        out_ref[...] = jnp.zeros_like(out_ref)

    @pl.when(layer == 1)
    def _():
        # Layer 2: OUT = Ahat @ (H W2) + b2.
        agg = jnp.dot(adj_rows, hw2_ref[...], preferred_element_type=jnp.float32)
        out_ref[...] = (agg + b2_ref[...]).astype(out_ref.dtype)


def _gcn_fused(adj_p, z1_p, b1_p, w2_p, b2_p, *, tm, out_dtype):
    n_pad = adj_p.shape[0]
    hid_pad = z1_p.shape[1]
    cout_pad = w2_p.shape[1]

    req = (2 * n_pad * n_pad * 2               # Ahat (counted double-buffered)
           + 2 * n_pad * hid_pad * 2           # Z1 resident
           + 2 * hid_pad * cout_pad * 2        # W2 resident
           + 2 * 8 * (hid_pad + cout_pad) * 4  # biases (sublane padded)
           + 2 * tm * cout_pad * 4             # output tile
           + n_pad * cout_pad * 2              # H @ W2 scratch
           + 2 * tm * max(hid_pad, cout_pad) * 4)  # in-kernel f32 temporaries

    return pl.pallas_call(
        _gcn_fused_kernel,
        out_shape=jax.ShapeDtypeStruct((n_pad, cout_pad), out_dtype),
        grid_spec=pltpu.PrefetchScalarGridSpec(
            num_scalar_prefetch=0,
            grid=(2, n_pad // tm),
            in_specs=[
                pl.BlockSpec((n_pad, n_pad), lambda l, i: (0, 0)),      # Ahat
                pl.BlockSpec((n_pad, hid_pad), lambda l, i: (0, 0)),    # Z1 = X W1
                pl.BlockSpec((1, hid_pad), lambda l, i: (0, 0)),        # b1
                pl.BlockSpec((hid_pad, cout_pad), lambda l, i: (0, 0)), # W2
                pl.BlockSpec((1, cout_pad), lambda l, i: (0, 0)),       # b2
            ],
            out_specs=pl.BlockSpec((tm, cout_pad), lambda l, i: (i, 0)),
            scratch_shapes=[pltpu.VMEM((n_pad, cout_pad), jnp.bfloat16)],
        ),
        compiler_params=pltpu.CompilerParams(
            # Layer-1 pass needs the full H@W2 scratch from the layer-0 pass, so
            # both axes must be sequential (no megacore sharding here).
            dimension_semantics=("arbitrary", "arbitrary"),
            vmem_limit_bytes=_vmem_limit(req),
        ),
    )(adj_p, z1_p, b1_p, w2_p, b2_p)


# ---------------------------------------------------------------------------
# Fallback streamed kernel (large graphs): one propagate + bias (+relu) layer.
# Ahat streamed as (tm, n_pad) row slabs; Z / bias resident.
# ---------------------------------------------------------------------------
def _propagate_kernel(adj_ref, z_ref, b_ref, out_ref, *, apply_relu):
    y = jnp.dot(adj_ref[...], z_ref[...], preferred_element_type=jnp.float32)
    y = y + b_ref[...]
    if apply_relu:
        y = jnp.maximum(y, 0.0)
    out_ref[...] = y.astype(out_ref.dtype)


def _propagate(adj_p, z_p, b_p, *, tm, apply_relu, out_dtype):
    n_pad = adj_p.shape[0]
    f = z_p.shape[1]
    req = (2 * tm * n_pad * 2      # Ahat slab, double-buffered
           + 2 * n_pad * f * 2     # resident Z
           + 2 * 8 * f * 4         # bias
           + 2 * tm * f * 4        # output tile
           + 2 * tm * f * 4)       # f32 temporaries
    kernel = functools.partial(_propagate_kernel, apply_relu=apply_relu)
    return pl.pallas_call(
        kernel,
        out_shape=jax.ShapeDtypeStruct((n_pad, f), out_dtype),
        grid_spec=pltpu.PrefetchScalarGridSpec(
            num_scalar_prefetch=0,
            grid=(n_pad // tm,),
            in_specs=[
                pl.BlockSpec((tm, n_pad), lambda i: (i, 0)),   # Ahat row slab
                pl.BlockSpec((n_pad, f), lambda i: (0, 0)),    # Z resident
                pl.BlockSpec((1, f), lambda i: (0, 0)),        # bias
            ],
            out_specs=pl.BlockSpec((tm, f), lambda i: (i, 0)),
        ),
        compiler_params=pltpu.CompilerParams(
            dimension_semantics=("parallel",),
            vmem_limit_bytes=_vmem_limit(req),
        ),
    )(adj_p, z_p, b_p)


# ---------------------------------------------------------------------------
# Wrapper glue: adjacency construction, padding, path selection
# ---------------------------------------------------------------------------
def _normalized_adjacency(edge_index, num_nodes):
    """Dense Ahat = D^-1/2 (A + I) D^-1/2, matching PyG gcn_norm: duplicate
    edges scatter-add; existing (possibly duplicated) self-loops collapse to a
    single weight-1 self-loop (add_remaining_self_loops semantics)."""
    src = edge_index[0]
    dst = edge_index[1]
    w = jnp.where(src != dst, 1.0, 0.0).astype(jnp.float32)
    a = jnp.zeros((num_nodes, num_nodes), jnp.float32).at[dst, src].add(w)
    a = a + jnp.eye(num_nodes, dtype=jnp.float32)
    deg = jnp.sum(a, axis=1)
    dinv = jnp.where(deg > 0.0, jax.lax.rsqrt(deg), 0.0)
    return dinv[:, None] * a * dinv[None, :]


@jax.jit
def gcn_encoder(x, edge_index, w1, b1, w2, b2):
    num_nodes, _ = x.shape
    hidden_channels = w1.shape[1]
    out_channels = w2.shape[1]

    n_pad = _round_up(num_nodes, 128)
    hid_pad = _round_up(hidden_channels, 128)
    cout_pad = _round_up(out_channels, 128)

    # Normalized adjacency, emitted directly as padded bf16 (scale + cast + pad
    # fuse under jit; no standalone f32 Ahat copy is kept around).
    adj = _normalized_adjacency(edge_index, num_nodes)
    adj_p = _pad2(adj.astype(jnp.bfloat16), n_pad, n_pad)

    # GCNConv transforms features before propagating: hoist X @ W1 to XLA.
    z1 = jnp.dot(x, w1, precision=jax.lax.Precision.HIGHEST)
    z1_p = _pad2(z1.astype(jnp.bfloat16), n_pad, hid_pad)
    b1_p = _pad2(b1.reshape(1, -1).astype(jnp.float32), 1, hid_pad)
    w2_p = _pad2(w2.astype(jnp.bfloat16), hid_pad, cout_pad)
    b2_p = _pad2(b2.reshape(1, -1).astype(jnp.float32), 1, cout_pad)

    if 4 * n_pad * n_pad <= (16 << 20):      # resident Ahat fits on every gen
        tm = _pick_fused_tile(n_pad)
        out_p = _gcn_fused(adj_p, z1_p, b1_p, w2_p, b2_p, tm=tm,
                           out_dtype=jnp.float32)
    else:
        # TODO(synk): for large genuinely-sparse graphs, replace this dense Ahat
        # stream with a CSR neighbor gather driven by scalar-prefetch offsets.
        tm = _pick_stream_tile(n_pad)
        h_p = _propagate(adj_p, z1_p, b1_p, tm=tm, apply_relu=True,
                         out_dtype=jnp.bfloat16)
        z2_p = jnp.dot(h_p, w2_p,
                       preferred_element_type=jnp.float32).astype(jnp.bfloat16)
        out_p = _propagate(adj_p, z2_p, b2_p, tm=tm, apply_relu=False,
                           out_dtype=jnp.float32)

    return out_p[:num_nodes, :out_channels]


# ---------------------------------------------------------------------------
# Demo / self-test
# ---------------------------------------------------------------------------
if __name__ == "__main__":
    num_nodes, num_edges = 1024, 4096
    in_channels, hidden_channels, out_channels = 16, 64, 32

    key = jax.random.PRNGKey(0)
    kx, ke1, ke2, kw1, kw2, kb1, kb2 = jax.random.split(key, 7)

    x = jax.random.normal(kx, (num_nodes, in_channels), jnp.float32)
    edge_src = jax.random.randint(ke1, (num_edges,), 0, num_nodes)
    edge_dst = jax.random.randint(ke2, (num_edges,), 0, num_nodes)
    edge_index = jnp.stack([edge_src, edge_dst], axis=0)          # [2, E]

    def glorot(k, shape):
        fan_in, fan_out = shape
        limit = jnp.sqrt(6.0 / (fan_in + fan_out))
        return jax.random.uniform(k, shape, jnp.float32, -limit, limit)

    w1 = glorot(kw1, (in_channels, hidden_channels))
    b1 = 0.1 * jax.random.normal(kb1, (hidden_channels,), jnp.float32)
    w2 = glorot(kw2, (hidden_channels, out_channels))
    b2 = 0.1 * jax.random.normal(kb2, (out_channels,), jnp.float32)

    out = gcn_encoder(x, edge_index, w1, b1, w2, b2)
    out = jax.block_until_ready(out)
    assert out.shape == (num_nodes, out_channels)

    # Pure-JAX reference mirroring the kernel's bf16 operand precision.
    hp = jax.lax.Precision.HIGHEST
    adj_bf = _normalized_adjacency(edge_index, num_nodes).astype(jnp.bfloat16)
    z1_bf = jnp.dot(x, w1, precision=hp).astype(jnp.bfloat16)
    agg1 = jnp.dot(adj_bf, z1_bf, preferred_element_type=jnp.float32)
    h_ref = jnp.maximum(agg1 + b1[None, :], 0.0)
    hw2 = jnp.dot(h_ref.astype(jnp.bfloat16), w2.astype(jnp.bfloat16),
                  preferred_element_type=jnp.float32).astype(jnp.bfloat16)
    agg2 = jnp.dot(adj_bf, hw2, preferred_element_type=jnp.float32)
    ref = agg2 + b2[None, :]

    max_err = jnp.max(jnp.abs(out - ref))
    assert jnp.allclose(out, ref, atol=2e-2, rtol=2e-2), f"max abs err {max_err}"

    print("KERNEL_OK")
</pallas_src>

<mosaic_0001>
module attributes {stable_mosaic.version = 11 : i64} {
  func.func private @main(%arg0: i32) attributes {dimension_semantics = [#tpu.dimension_semantics<core_parallel>], iteration_bounds = array<i64: 2>, tpu.core_type = #tpu.core_type<sc_scalar_subcore>, window_params = []} {
    return
  }
}

module attributes {stable_mosaic.version = 11 : i64} {
  func.func private @main(%arg0: i32) attributes {dimension_semantics = [#tpu.dimension_semantics<core_parallel>], iteration_bounds = array<i64: 2>, tpu.core_type = #tpu.core_type<sc_scalar_subcore>, window_params = []} {
    return
  }
}

module attributes {stable_mosaic.version = 11 : i64} {
  func.func @_gcn_fused_kernel(%arg0: i32, %arg1: i32, %arg2: memref<1024x1024xbf16, #tpu.memory_space<vmem>>, %arg3: memref<1024x128xbf16, #tpu.memory_space<vmem>>, %arg4: memref<1x128xf32, #tpu.memory_space<vmem>>, %arg5: memref<128x128xbf16, #tpu.memory_space<vmem>>, %arg6: memref<1x128xf32, #tpu.memory_space<vmem>>, %arg7: memref<512x128xf32, #tpu.memory_space<vmem>>, %arg8: memref<1024x128xbf16, #tpu.memory_space<vmem>>) attributes {dimension_semantics = [#tpu.dimension_semantics<arbitrary>, #tpu.dimension_semantics<arbitrary>], iteration_bounds = array<i64: 2, 2>, scalar_prefetch = 0 : i64, scratch_operands = 1 : i64, tpu.core_type = #tpu.core_type<tc>, window_params = [{pipeline_mode = #tpu.pipeline_mode<synchronous>, transform_indices = @transform_0, window_bounds = array<i64: 1024, 1024>}, {pipeline_mode = #tpu.pipeline_mode<synchronous>, transform_indices = @transform_1, window_bounds = array<i64: 1024, 128>}, {pipeline_mode = #tpu.pipeline_mode<synchronous>, transform_indices = @transform_2, window_bounds = array<i64: 1, 128>}, {pipeline_mode = #tpu.pipeline_mode<synchronous>, transform_indices = @transform_3, window_bounds = array<i64: 128, 128>}, {pipeline_mode = #tpu.pipeline_mode<synchronous>, transform_indices = @transform_4, window_bounds = array<i64: 1, 128>}, {transform_indices = @transform_5, window_bounds = array<i64: 512, 128>}]} {
    %c512_i32 = arith.constant 512 : i32
    %0 = arith.muli %arg1, %c512_i32 : i32
    %1 = tpu.assume_multiple %0, 512 : i32
    %2 = arith.index_cast %1 : i32 to index
    %c0 = arith.constant 0 : index
    %3 = vector.load %arg2[%2, %c0] : memref<1024x1024xbf16, #tpu.memory_space<vmem>>, vector<512x1024xbf16>
    %c0_i32 = arith.constant 0 : i32
    %4 = arith.cmpi eq, %arg0, %c0_i32 : i32
    %5 = arith.extui %4 : i1 to i32
    %c0_i32_0 = arith.constant 0 : i32
    %6 = arith.cmpi ne, %5, %c0_i32_0 : i32
    scf.if %6 {
      %c0_2 = arith.constant 0 : index
      %c0_3 = arith.constant 0 : index
      %10 = vector.load %arg3[%c0_2, %c0_3] : memref<1024x128xbf16, #tpu.memory_space<vmem>>, vector<1024x128xbf16>
      %cst = arith.constant dense<0.000000e+00> : vector<512x128xf32>
      %11 = tpu.matmul %3, %10, %cst {dimension_numbers = #tpu.dot_dimension_numbers<[1], [0], [0], [1], [0, 0, 1, 1], [], []>} : vector<512x1024xbf16>, vector<1024x128xbf16>, vector<512x128xf32> -> vector<512x128xf32>
      %c0_4 = arith.constant 0 : index
      %c0_5 = arith.constant 0 : index
      %12 = vector.load %arg4[%c0_4, %c0_5] : memref<1x128xf32, #tpu.memory_space<vmem>>, vector<1x128xf32>
      %13 = vector.broadcast %12 : vector<1x128xf32> to vector<512x128xf32>
      %14 = arith.addf %11, %13 : vector<512x128xf32>
      %cst_6 = arith.constant 0.000000e+00 : f32
      %15 = vector.broadcast %cst_6 : f32 to vector<512x128xf32>
      %16 = arith.maximumf %14, %15 : vector<512x128xf32>
      %17 = arith.truncf %16 : vector<512x128xf32> to vector<512x128xbf16>
      %c0_7 = arith.constant 0 : index
      %c0_8 = arith.constant 0 : index
      %18 = vector.load %arg5[%c0_7, %c0_8] : memref<128x128xbf16, #tpu.memory_space<vmem>>, vector<128x128xbf16>
      %cst_9 = arith.constant dense<0.000000e+00> : vector<512x128xf32>
      %19 = tpu.matmul %17, %18, %cst_9 {dimension_numbers = #tpu.dot_dimension_numbers<[1], [0], [0], [1], [0, 0, 1, 1], [], []>} : vector<512x128xbf16>, vector<128x128xbf16>, vector<512x128xf32> -> vector<512x128xf32>
      %20 = arith.truncf %19 : vector<512x128xf32> to vector<512x128xbf16>
      %21 = arith.index_cast %1 : i32 to index
      %c0_10 = arith.constant 0 : index
      %22 = vector.load %arg8[%21, %c0_10] : memref<1024x128xbf16, #tpu.memory_space<vmem>>, vector<512x128xbf16>
      tpu.vector_store %arg8[%21, %c0_10], %20 {strides = array<i32>} : memref<1024x128xbf16, #tpu.memory_space<vmem>>, vector<512x128xbf16>,
      %cst_11 = arith.constant 0.000000e+00 : f32
      %23 = vector.broadcast %cst_11 : f32 to vector<512x128xf32>
      %c0_12 = arith.constant 0 : index
      %c0_13 = arith.constant 0 : index
      %24 = vector.load %arg7[%c0_12, %c0_13] : memref<512x128xf32, #tpu.memory_space<vmem>>, vector<512x128xf32>
      tpu.vector_store %arg7[%c0_12, %c0_13], %23 {strides = array<i32>} : memref<512x128xf32, #tpu.memory_space<vmem>>, vector<512x128xf32>,
    } else {
    }
    %c1_i32 = arith.constant 1 : i32
    %7 = arith.cmpi eq, %arg0, %c1_i32 : i32
    %8 = arith.extui %7 : i1 to i32
    %c0_i32_1 = arith.constant 0 : i32
    %9 = arith.cmpi ne, %8, %c0_i32_1 : i32
    scf.if %9 {
      %c0_2 = arith.constant 0 : index
      %c0_3 = arith.constant 0 : index
      %10 = vector.load %arg8[%c0_2, %c0_3] : memref<1024x128xbf16, #tpu.memory_space<vmem>>, vector<1024x128xbf16>
      %cst = arith.constant dense<0.000000e+00> : vector<512x128xf32>
      %11 = tpu.matmul %3, %10, %cst {dimension_numbers = #tpu.dot_dimension_numbers<[1], [0], [0], [1], [0, 0, 1, 1], [], []>} : vector<512x1024xbf16>, vector<1024x128xbf16>, vector<512x128xf32> -> vector<512x128xf32>
      %c0_4 = arith.constant 0 : index
      %c0_5 = arith.constant 0 : index
      %12 = vector.load %arg6[%c0_4, %c0_5] : memref<1x128xf32, #tpu.memory_space<vmem>>, vector<1x128xf32>
      %13 = vector.broadcast %12 : vector<1x128xf32> to vector<512x128xf32>
      %14 = arith.addf %11, %13 : vector<512x128xf32>
      %c0_6 = arith.constant 0 : index
      %c0_7 = arith.constant 0 : index
      %15 = vector.load %arg7[%c0_6, %c0_7] : memref<512x128xf32, #tpu.memory_space<vmem>>, vector<512x128xf32>
      tpu.vector_store %arg7[%c0_6, %c0_7], %14 {strides = array<i32>} : memref<512x128xf32, #tpu.memory_space<vmem>>, vector<512x128xf32>,
    } else {
    }
    return
  }
  func.func @transform_0(%arg0: i32, %arg1: i32) -> (i32, i32) {
    %c0_i32 = arith.constant 0 : i32
    %c0_i32_0 = arith.constant 0 : i32
    %c0_i32_1 = arith.constant 0 : i32
    return %c0_i32, %c0_i32_0 : i32, i32
  }
  func.func @transform_1(%arg0: i32, %arg1: i32) -> (i32, i32) {
    %c0_i32 = arith.constant 0 : i32
    %c0_i32_0 = arith.constant 0 : i32
    %c0_i32_1 = arith.constant 0 : i32
    return %c0_i32, %c0_i32_0 : i32, i32
  }
  func.func @transform_2(%arg0: i32, %arg1: i32) -> (i32, i32) {
    %c0_i32 = arith.constant 0 : i32
    %c0_i32_0 = arith.constant 0 : i32
    %c0_i32_1 = arith.constant 0 : i32
    return %c0_i32, %c0_i32_0 : i32, i32
  }
  func.func @transform_3(%arg0: i32, %arg1: i32) -> (i32, i32) {
    %c0_i32 = arith.constant 0 : i32
    %c0_i32_0 = arith.constant 0 : i32
    %c0_i32_1 = arith.constant 0 : i32
    return %c0_i32, %c0_i32_0 : i32, i32
  }
  func.func @transform_4(%arg0: i32, %arg1: i32) -> (i32, i32) {
    %c0_i32 = arith.constant 0 : i32
    %c0_i32_0 = arith.constant 0 : i32
    %c0_i32_1 = arith.constant 0 : i32
    return %c0_i32, %c0_i32_0 : i32, i32
  }
  func.func @transform_5(%arg0: i32, %arg1: i32) -> (i32, i32) {
    %c0_i32 = arith.constant 0 : i32
    %c0_i32_0 = arith.constant 0 : i32
    return %arg1, %c0_i32 : i32, i32
  }
}

</mosaic_0001>

<bundles_post_ra>
// kernel: gcn_encoder.1
= control target key start
LH: loop header
LB: loop body
LE: loop exit
PB: predicated region body
PF: predicated region fallthrough
CT: control target
= control target key end

     0   :  { %s8365_s18 = smov 0   ;;  %s8367_s19 = smov 0   ;;  %s11204_s0 = inlined_call_operand.vmem [shape: bf16[1024,1024], index: 0, kind: input, shape index: {}]   ;;  %s11205_s1 = inlined_call_operand.vmem [shape: bf16[1024,128], index: 1, kind: input, shape index: {}]   ;;  %s11206_s2 = inlined_call_operand.vmem [shape: f32[1,128], index: 2, kind: input, shape index: {}]   ;;  %s11207_s3 = inlined_call_operand.vmem [shape: bf16[128,128], index: 3, kind: input, shape index: {}]   ;;  %s11208_s4 = inlined_call_operand.vmem [shape: f32[1,128], index: 4, kind: input, shape index: {}]   ;;  %s11209_s5 = inlined_call_operand.vmem [shape: f32[1024,128], index: 5, kind: output, shape index: {}]  }
   0x1   :  { %s8369_s20 = smov 0   ;;  %s8371_s21 = smov 0  }
   0x2   :  { %s8373_s22 = smov 0  }
   0x3 LB: > { %s24_s23 = sadd.s32 1, %s8322_s20  ;;  %s27_s24 = sadd.s32 1, %s8326_s21  ;;  %s8330_s22 = sphi %s8373_s22, %s15_s22   ;;  %s8326_s21 = sphi %s8371_s21, %s12404_s21   ;;  %s8322_s20 = sphi %s8369_s20, %s12403_s20   ;;  %s8318_s19 = sphi %s8367_s19, %s12402_s19   ;;  %s8314_s18 = sphi %s8365_s18, %s12401_s18  }
   0x4   : > { %p25_p0 = scmp.ge.s32.totalorder %s24_s23, 2  ;;  %p6659_p1 = scmp.ge.s32.totalorder %s8330_s22, 1 }
   0x5   : > { %p189_p2 = scmp.lt.s32.totalorder %s8330_s22, 5 }
   0x6   : > { %s12406_s23 = smov (%p25_p0, %s24_s23), 0  ;;  %s12408_s24 = smov (!%p25_p0, %s27_s24), %s8326_s21 }
   0x7   : > { %p190_p3 = pnand %p6659_p1, %p189_p2  ;;  %p29_p4 = scmp.ge.s32.totalorder %s12408_s24, 2 }
   0x9   : > { %s12410_s24 = smov (%p29_p4, %s12408_s24), 0  ;;  %193 = sbr.rel (%p190_p3) target bundleno = 2008 (0x7d8), region = 40 }
  0x10   : > { %s6660_s25 = sshll.u32 %s8314_s18, 6  ;;  %s6662_s26 = sshll.u32 %s8314_s18, 9 }
  0x11   : > { %p213_p5 = scmp.lt.s32.totalorder %s6660_s25, 127  ;;  %s220_s27 = sshra.s32 %s6662_s26, 3 }
  0x12   : > { %s7256_s28 = sshll.u32 %s220_s27, 5  ;;  %p6665_p6 = scmp.ne.s32.totalorder %s8318_s19, 0 }
  0x13   : > { %s12412_s25 = smov (!%p213_p5, %s6660_s25), 127  ;;  %s8406_s6 = scalar_lea.vmem %s11204_s0, %s7256_s28 }
  0x14   : > { %s6661_s7 = sshll.u32 %s12412_s25, 3  ;;  %v8409_v0 = vld [vmem:[%s8406_s6] sm:$0xff]  ;;  %v8412_v1 = vld [vmem:[%s8406_s6 + $0x8] sm:$0xff]  ;;  %v8415_v2 = vld [vmem:[%s8406_s6 + $0x10] sm:$0xff]  ;;  %s3921_s13 = sshra.s32 (!%p6665_p6), %s6662_s26, 4 }
  0x15   : > { %11698 = vst [vmem:[#allocation3_spill] sm:$0xff] %v8412_v1  ;;  %s8420_s10 = scalar_lea.vmem %s11209_s5, %s6661_s7  ;;  %v8423_v3 = vld [vmem:[%s8406_s6 + $0x18] sm:$0xff]  ;;  %v8426_v4 = vld [vmem:[%s8406_s6 + $0x20] sm:$0xff]  ;;  %v8429_v5 = vld [vmem:[%s8406_s6 + $0x28] sm:$0xff]  ;;  %s6995_s14 = sshll.u32 (!%p6665_p6), %s3921_s13, 3 }
  0x16   : > { %11699 = vst [vmem:[#allocation4_spill] sm:$0xff] %v8423_v3  ;;  %11700 = vst [vmem:[#allocation5_spill] sm:$0xff] %v8429_v5  ;;  %v8432_v6 = vld [vmem:[%s8406_s6 + $0x30] sm:$0xff]  ;;  %v8435_v7 = vld [vmem:[%s8406_s6 + $0x38] sm:$0xff]  ;;  %s10309_s18 = scalar_lea.vmem (!%p6665_p6), [#allocation2], %s6995_s14 }
  0x17   : > { %11701 = vst [vmem:[#allocation6_spill] sm:$0xff] %v8435_v7  ;;  %v8438_v8 = vld [vmem:[%s8406_s6 + $0x40] sm:$0xff]  ;;  %v8441_v9 = vld [vmem:[%s8406_s6 + $0x48] sm:$0xff]  ;;  %v8444_v10 = vld [vmem:[%s8406_s6 + $0x50] sm:$0xff] }
  0x18   : > { %11702 = vst [vmem:[#allocation7_spill] sm:$0xff] %v8441_v9  ;;  %v8447_v11 = vld [vmem:[%s8406_s6 + $0x58] sm:$0xff]  ;;  %v8450_v12 = vld [vmem:[%s8406_s6 + $0x60] sm:$0xff]  ;;  %v8453_v13 = vld [vmem:[%s8406_s6 + $0x68] sm:$0xff] }
  0x19   : > { %11703 = vst [vmem:[#allocation8_spill] sm:$0xff] %v8447_v11  ;;  %11704 = vst [vmem:[#allocation9_spill] sm:$0xff] %v8453_v13  ;;  %v8456_v14 = vld [vmem:[%s8406_s6 + $0x70] sm:$0xff]  ;;  %v8459_v15 = vld [vmem:[%s8406_s6 + $0x78] sm:$0xff] }
  0x1a   : > { %11705 = vst [vmem:[#allocation10_spill] sm:$0xff] %v8459_v15  ;;  %v8462_v16 = vld [vmem:[%s8406_s6 + $0x80] sm:$0xff]  ;;  %v8465_v17 = vld [vmem:[%s8406_s6 + $0x88] sm:$0xff]  ;;  %v8468_v18 = vld [vmem:[%s8406_s6 + $0x90] sm:$0xff] }
  0x1b   : > { %11706 = vst [vmem:[#allocation11_spill] sm:$0xff] %v8465_v17  ;;  %11707 = vst [vmem:[#allocation12_spill] sm:$0xff] %v8468_v18  ;;  %v8471_v19 = vld [vmem:[%s8406_s6 + $0x98] sm:$0xff]  ;;  %v8474_v20 = vld [vmem:[%s8406_s6 + $0xa0] sm:$0xff] }
  0x1c   : > { %11708 = vst [vmem:[#allocation13_spill] sm:$0xff] %v8471_v19  ;;  %v8477_v21 = vld [vmem:[%s8406_s6 + $0xa8] sm:$0xff]  ;;  %v8480_v22 = vld [vmem:[%s8406_s6 + $0xb0] sm:$0xff]  ;;  %v8483_v23 = vld [vmem:[%s8406_s6 + $0xb8] sm:$0xff] }
  0x1d   : > { %11709 = vst [vmem:[#allocation14_spill] sm:$0xff] %v8477_v21  ;;  %11710 = vst [vmem:[#allocation15_spill] sm:$0xff] %v8480_v22  ;;  %v8486_v24 = vld [vmem:[%s8406_s6 + $0xc0] sm:$0xff]  ;;  %v8489_v25 = vld [vmem:[%s8406_s6 + $0xc8] sm:$0xff]  ;;  %v6669_v22 = vcombine.low (!%p6665_p6), %v8412_v1, %v8429_v5 }
  0x1e   : > { %11711 = vst [vmem:[#allocation16_spill] sm:$0xff] %v8483_v23  ;;  %11712 = vst [vmem:[#allocation17_spill] sm:$0xff] %v8489_v25  ;;  %v8492_v26 = vld [vmem:[%s8406_s6 + $0xd0] sm:$0xff]  ;;  %v8495_v27 = vld [vmem:[%s8406_s6 + $0xd8] sm:$0xff] }
  0x1f   : > { %11713 = vst [vmem:[#allocation18_spill] sm:$0xff] %v8492_v26  ;;  %11714 = vst [vmem:[#allocation19_spill] sm:$0xff] %v8495_v27  ;;  %v8498_v28 = vld [vmem:[%s8406_s6 + $0xe0] sm:$0xff]  ;;  %v8501_v29 = vld [vmem:[%s8406_s6 + $0xe8] sm:$0xff] }
  0x20   : > { %11715 = vst [vmem:[#allocation20_spill] sm:$0xff] %v8501_v29  ;;  %v8504_v30 = vld [vmem:[%s8406_s6 + $0xf0] sm:$0xff]  ;;  %v8507_v31 = vld [vmem:[%s8406_s6 + $0xf8] sm:$0xff]  ;;  %v8510_v32 = vld [vmem:[%s8406_s6 + $0x100] sm:$0xff] }
  0x21   : > { %11716 = vst [vmem:[#allocation21_spill] sm:$0xff] %v8504_v30  ;;  %11717 = vst [vmem:[#allocation22_spill] sm:$0xff] %v8507_v31  ;;  %v8513_v33 = vld [vmem:[%s8406_s6 + $0x108] sm:$0xff]  ;;  %v8516_v34 = vld [vmem:[%s8406_s6 + $0x110] sm:$0xff] }
  0x22   : > { %11718 = vst [vmem:[#allocation23_spill] sm:$0xff] %v8510_v32  ;;  %11719 = vst [vmem:[#allocation24_spill] sm:$0xff] %v8513_v33  ;;  %v8519_v35 = vld [vmem:[%s8406_s6 + $0x118] sm:$0xff]  ;;  %v8522_v36 = vld [vmem:[%s8406_s6 + $0x120] sm:$0xff] }
  0x23   : > { %11720 = vst [vmem:[#allocation25_spill] sm:$0xff] %v8516_v34  ;;  %11721 = vst [vmem:[#allocation26_spill] sm:$0xff] %v8519_v35  ;;  %v8525_v37 = vld [vmem:[%s8406_s6 + $0x128] sm:$0xff]  ;;  %v8528_v38 = vld [vmem:[%s8406_s6 + $0x130] sm:$0xff] }
  0x24   : > { %11722 = vst [vmem:[#allocation27_spill] sm:$0xff] %v8522_v36  ;;  %11723 = vst [vmem:[#allocation28_spill] sm:$0xff] %v8525_v37  ;;  %v8531_v39 = vld [vmem:[%s8406_s6 + $0x138] sm:$0xff]  ;;  %v8534_v40 = vld [vmem:[%s8406_s6 + $0x140] sm:$0xff] }
  0x25   : > { %11724 = vst [vmem:[#allocation29_spill] sm:$0xff] %v8528_v38  ;;  %11725 = vst [vmem:[#allocation30_spill] sm:$0xff] %v8531_v39  ;;  %v8537_v41 = vld [vmem:[%s8406_s6 + $0x148] sm:$0xff]  ;;  %v8540_v42 = vld [vmem:[%s8406_s6 + $0x150] sm:$0xff] }
  0x26   : > { %11726 = vst [vmem:[#allocation31_spill] sm:$0xff] %v8534_v40  ;;  %11727 = vst [vmem:[#allocation32_spill] sm:$0xff] %v8537_v41  ;;  %v8543_v43 = vld [vmem:[%s8406_s6 + $0x158] sm:$0xff]  ;;  %v8546_v44 = vld [vmem:[%s8406_s6 + $0x160] sm:$0xff] }
  0x27   : > { %11728 = vst [vmem:[#allocation33_spill] sm:$0xff] %v8540_v42  ;;  %11729 = vst [vmem:[#allocation34_spill] sm:$0xff] %v8543_v43  ;;  %v8549_v45 = vld [vmem:[%s8406_s6 + $0x168] sm:$0xff]  ;;  %v8552_v46 = vld [vmem:[%s8406_s6 + $0x170] sm:$0xff] }
  0x28   : > { %11730 = vst [vmem:[#allocation35_spill] sm:$0xff] %v8546_v44  ;;  %11731 = vst [vmem:[#allocation36_spill] sm:$0xff] %v8549_v45  ;;  %v8555_v47 = vld [vmem:[%s8406_s6 + $0x178] sm:$0xff]  ;;  %v8558_v48 = vld [vmem:[%s8406_s6 + $0x180] sm:$0xff] }
  0x29   : > { %11732 = vst [vmem:[#allocation37_spill] sm:$0xff] %v8552_v46  ;;  %11733 = vst [vmem:[#allocation38_spill] sm:$0xff] %v8555_v47  ;;  %v8561_v49 = vld [vmem:[%s8406_s6 + $0x188] sm:$0xff]  ;;  %v8564_v50 = vld [vmem:[%s8406_s6 + $0x190] sm:$0xff] }
  0x2a   : > { %11734 = vst [vmem:[#allocation39_spill] sm:$0xff] %v8558_v48  ;;  %11735 = vst [vmem:[#allocation40_spill] sm:$0xff] %v8561_v49  ;;  %v8567_v51 = vld [vmem:[%s8406_s6 + $0x198] sm:$0xff]  ;;  %v8570_v52 = vld [vmem:[%s8406_s6 + $0x1a0] sm:$0xff] }
  0x2b   : > { %11736 = vst [vmem:[#allocation41_spill] sm:$0xff] %v8564_v50  ;;  %11737 = vst [vmem:[#allocation42_spill] sm:$0xff] %v8567_v51  ;;  %v8573_v53 = vld [vmem:[%s8406_s6 + $0x1a8] sm:$0xff]  ;;  %v8576_v54 = vld [vmem:[%s8406_s6 + $0x1b0] sm:$0xff] }
  0x2c   : > { %11738 = vst [vmem:[#allocation43_spill] sm:$0xff] %v8570_v52  ;;  %11739 = vst [vmem:[#allocation44_spill] sm:$0xff] %v8573_v53  ;;  %v8579_v55 = vld [vmem:[%s8406_s6 + $0x1b8] sm:$0xff]  ;;  %v8582_v56 = vld [vmem:[%s8406_s6 + $0x1c0] sm:$0xff] }
  0x2d   : > { %11740 = vst [vmem:[#allocation45_spill] sm:$0xff] %v8576_v54  ;;  %11741 = vst [vmem:[#allocation46_spill] sm:$0xff] %v8579_v55  ;;  %v8585_v57 = vld [vmem:[%s8406_s6 + $0x1c8] sm:$0xff]  ;;  %v8588_v58 = vld [vmem:[%s8406_s6 + $0x1d0] sm:$0xff] }
  0x2e   : > { %11742 = vst [vmem:[#allocation47_spill] sm:$0xff] %v8582_v56  ;;  %11743 = vst [vmem:[#allocation48_spill] sm:$0xff] %v8585_v57  ;;  %v8591_v59 = vld [vmem:[%s8406_s6 + $0x1d8] sm:$0xff]  ;;  %v8594_v60 = vld [vmem:[%s8406_s6 + $0x1e0] sm:$0xff] }
  0x2f   : > { %11744 = vst [vmem:[#allocation49_spill] sm:$0xff] %v8588_v58  ;;  %11745 = vst [vmem:[#allocation50_spill] sm:$0xff] %v8591_v59  ;;  %v8597_v61 = vld [vmem:[%s8406_s6 + $0x1e8] sm:$0xff]  ;;  %v8600_v62 = vld [vmem:[%s8406_s6 + $0x1f0] sm:$0xff] }
  0x30   : > { %11746 = vst [vmem:[#allocation51_spill] sm:$0xff] %v8594_v60  ;;  %11747 = vst [vmem:[#allocation52_spill] sm:$0xff] %v8597_v61  ;;  %v8603_v63 = vld [vmem:[%s8406_s6 + $0x1f8] sm:$0xff]  ;;  %v8606_v51 = vld [vmem:[%s8406_s6 + $0x200] sm:$0xff] }
  0x31   : > { %11748 = vst [vmem:[#allocation53_spill] sm:$0xff] %v8600_v62  ;;  %11749 = vst [vmem:[#allocation54_spill] sm:$0xff] %v8603_v63  ;;  %v8609_v55 = vld [vmem:[%s8406_s6 + $0x208] sm:$0xff]  ;;  %v8612_v59 = vld [vmem:[%s8406_s6 + $0x210] sm:$0xff] }
  0x32   : > { %11750 = vst [vmem:[#allocation55_spill] sm:$0xff] %v8606_v51  ;;  %11751 = vst [vmem:[#allocation56_spill] sm:$0xff] %v8609_v55  ;;  %v8615_v43 = vld [vmem:[%s8406_s6 + $0x218] sm:$0xff]  ;;  %v8618_v47 = vld [vmem:[%s8406_s6 + $0x220] sm:$0xff] }
  0x33   : > { %11752 = vst [vmem:[#allocation57_spill] sm:$0xff] %v8612_v59  ;;  %11753 = vst [vmem:[#allocation58_spill] sm:$0xff] %v8615_v43  ;;  %v8621_v35 = vld [vmem:[%s8406_s6 + $0x228] sm:$0xff]  ;;  %v8624_v63 = vld [vmem:[%s8406_s6 + $0x230] sm:$0xff] }
  0x34   : > { %11754 = vst [vmem:[#allocation59_spill] sm:$0xff] %v8618_v47  ;;  %11755 = vst [vmem:[#allocation60_spill] sm:$0xff] %v8621_v35  ;;  %v8627_v39 = vld [vmem:[%s8406_s6 + $0x238] sm:$0xff]  ;;  %v8630_v27 = vld [vmem:[%s8406_s6 + $0x240] sm:$0xff] }
  0x35   : > { %11756 = vst [vmem:[#allocation61_spill] sm:$0xff] %v8624_v63  ;;  %11757 = vst [vmem:[#allocation62_spill] sm:$0xff] %v8627_v39  ;;  %v8633_v31 = vld [vmem:[%s8406_s6 + $0x248] sm:$0xff]  ;;  %v8636_v43 = vld [vmem:[%s8406_s6 + $0x250] sm:$0xff] }
  0x36   : > { %11758 = vst [vmem:[#allocation63_spill] sm:$0xff] %v8630_v27  ;;  %11759 = vst [vmem:[#allocation64_spill] sm:$0xff] %v8633_v31  ;;  %v8639_v19 = vld [vmem:[%s8406_s6 + $0x258] sm:$0xff]  ;;  %v8642_v23 = vld [vmem:[%s8406_s6 + $0x260] sm:$0xff] }
  0x37   : > { %11760 = vst [vmem:[#allocation65_spill] sm:$0xff] %v8636_v43  ;;  %11761 = vst [vmem:[#allocation66_spill] sm:$0xff] %v8639_v19  ;;  %v8645_v11 = vld [vmem:[%s8406_s6 + $0x268] sm:$0xff]  ;;  %v8648_v39 = vld [vmem:[%s8406_s6 + $0x270] sm:$0xff] }
  0x38   : > { %11762 = vst [vmem:[#allocation67_spill] sm:$0xff] %v8642_v23  ;;  %11763 = vst [vmem:[#allocation68_spill] sm:$0xff] %v8645_v11  ;;  %v8651_v15 = vld [vmem:[%s8406_s6 + $0x278] sm:$0xff]  ;;  %v8654_v3 = vld [vmem:[%s8406_s6 + $0x280] sm:$0xff] }
  0x39   : > { %11764 = vst [vmem:[#allocation69_spill] sm:$0xff] %v8648_v39  ;;  %11765 = vst [vmem:[#allocation70_spill] sm:$0xff] %v8651_v15  ;;  %v8657_v7 = vld [vmem:[%s8406_s6 + $0x288] sm:$0xff]  ;;  %v8660_v19 = vld [vmem:[%s8406_s6 + $0x290] sm:$0xff] }
  0x3a   : > { %11766 = vst [vmem:[#allocation71_spill] sm:$0xff] %v8654_v3  ;;  %11767 = vst [vmem:[#allocation72_spill] sm:$0xff] %v8657_v7  ;;  %v8663_v31 = vld [vmem:[%s8406_s6 + $0x298] sm:$0xff]  ;;  %v8666_v11 = vld [vmem:[%s8406_s6 + $0x2a0] sm:$0xff]  ;;  %v6678_v3 = vcombine.high (!%p6665_p6), %v8441_v9, %v8453_v13 }
  0x3b   : > { %11768 = vst [vmem:[#allocation73_spill] sm:$0xff] %v8660_v19  ;;  %11769 = vst [vmem:[#allocation74_spill] sm:$0xff] %v8663_v31  ;;  %v8669_v55 = vld [vmem:[%s8406_s6 + $0x2a8] sm:$0xff]  ;;  %v8672_v15 = vld [vmem:[%s8406_s6 + $0x2b0] sm:$0xff] }
  0x3c   : > { %11770 = vst [vmem:[#allocation75_spill] sm:$0xff] %v8666_v11  ;;  %11771 = vst [vmem:[#allocation76_spill] sm:$0xff] %v8669_v55  ;;  %v8675_v35 = vld [vmem:[%s8406_s6 + $0x2b8] sm:$0xff]  ;;  %v8678_v7 = vld [vmem:[%s8406_s6 + $0x2c0] sm:$0xff] }
  0x3d   : > { %11772 = vst [vmem:[#allocation77_spill] sm:$0xff] %v8672_v15  ;;  %11773 = vst [vmem:[#allocation78_spill] sm:$0xff] %v8675_v35  ;;  %v8681_v19 = vld [vmem:[%s8406_s6 + $0x2c8] sm:$0xff]  ;;  %v8684_v31 = vld [vmem:[%s8406_s6 + $0x2d0] sm:$0xff] }
  0x3e   : > { %11774 = vst [vmem:[#allocation79_spill] sm:$0xff] %v8678_v7  ;;  %11775 = vst [vmem:[#allocation80_spill] sm:$0xff] %v8681_v19  ;;  %v8687_v43 = vld [vmem:[%s8406_s6 + $0x2d8] sm:$0xff]  ;;  %v8690_v55 = vld [vmem:[%s8406_s6 + $0x2e0] sm:$0xff] }
  0x3f   : > { %11776 = vst [vmem:[#allocation81_spill] sm:$0xff] %v8684_v31  ;;  %11777 = vst [vmem:[#allocation82_spill] sm:$0xff] %v8687_v43  ;;  %v8693_v15 = vld [vmem:[%s8406_s6 + $0x2e8] sm:$0xff]  ;;  %v8696_v35 = vld [vmem:[%s8406_s6 + $0x2f0] sm:$0xff] }
  0x40   : > { %11778 = vst [vmem:[#allocation83_spill] sm:$0xff] %v8690_v55  ;;  %11779 = vst [vmem:[#allocation84_spill] sm:$0xff] %v8693_v15  ;;  %v8699_v39 = vld [vmem:[%s8406_s6 + $0x2f8] sm:$0xff]  ;;  %v8702_v19 = vld [vmem:[%s8406_s6 + $0x300] sm:$0xff] }
  0x41   : > { %11780 = vst [vmem:[#allocation85_spill] sm:$0xff] %v8696_v35  ;;  %11781 = vst [vmem:[#allocation86_spill] sm:$0xff] %v8699_v39  ;;  %v8705_v31 = vld [vmem:[%s8406_s6 + $0x308] sm:$0xff]  ;;  %v8708_v43 = vld [vmem:[%s8406_s6 + $0x310] sm:$0xff] }
  0x42   : > { %11782 = vst [vmem:[#allocation87_spill] sm:$0xff] %v8702_v19  ;;  %11783 = vst [vmem:[#allocation88_spill] sm:$0xff] %v8705_v31  ;;  %v8711_v59 = vld [vmem:[%s8406_s6 + $0x318] sm:$0xff]  ;;  %v8714_v15 = vld [vmem:[%s8406_s6 + $0x320] sm:$0xff] }
  0x43   : > { %11784 = vst [vmem:[#allocation89_spill] sm:$0xff] %v8708_v43  ;;  %11785 = vst [vmem:[#allocation90_spill] sm:$0xff] %v8711_v59  ;;  %v8717_v35 = vld [vmem:[%s8406_s6 + $0x328] sm:$0xff]  ;;  %v8720_v39 = vld [vmem:[%s8406_s6 + $0x330] sm:$0xff] }
  0x44   : > { %11786 = vst [vmem:[#allocation91_spill] sm:$0xff] %v8714_v15  ;;  %11787 = vst [vmem:[#allocation92_spill] sm:$0xff] %v8717_v35  ;;  %v8723_v63 = vld [vmem:[%s8406_s6 + $0x338] sm:$0xff]  ;;  %v8726_v31 = vld [vmem:[%s8406_s6 + $0x340] sm:$0xff] }
  0x45   : > { %11788 = vst [vmem:[#allocation93_spill] sm:$0xff] %v8720_v39  ;;  %11789 = vst [vmem:[#allocation94_spill] sm:$0xff] %v8723_v63  ;;  %v8729_v43 = vld [vmem:[%s8406_s6 + $0x348] sm:$0xff]  ;;  %v8732_v59 = vld [vmem:[%s8406_s6 + $0x350] sm:$0xff] }
  0x46   : > { %11790 = vst [vmem:[#allocation95_spill] sm:$0xff] %v8726_v31  ;;  %11791 = vst [vmem:[#allocation96_spill] sm:$0xff] %v8729_v43  ;;  %v8735_v58 = vld [vmem:[%s8406_s6 + $0x358] sm:$0xff]  ;;  %v8738_v35 = vld [vmem:[%s8406_s6 + $0x360] sm:$0xff] }
  0x47   : > { %11792 = vst [vmem:[#allocation97_spill] sm:$0xff] %v8732_v59  ;;  %11793 = vst [vmem:[#allocation98_spill] sm:$0xff] %v8735_v58  ;;  %v8741_v39 = vld [vmem:[%s8406_s6 + $0x368] sm:$0xff]  ;;  %v8744_v63 = vld [vmem:[%s8406_s6 + $0x370] sm:$0xff] }
  0x48   : > { %11794 = vst [vmem:[#allocation99_spill] sm:$0xff] %v8738_v35  ;;  %11795 = vst [vmem:[#allocation100_spill] sm:$0xff] %v8741_v39  ;;  %v8747_v62 = vld [vmem:[%s8406_s6 + $0x378] sm:$0xff]  ;;  %v8750_v43 = vld [vmem:[%s8406_s6 + $0x380] sm:$0xff] }
  0x49   : > { %11796 = vst [vmem:[#allocation101_spill] sm:$0xff] %v8744_v63  ;;  %11797 = vst [vmem:[#allocation102_spill] sm:$0xff] %v8747_v62  ;;  %v8753_v59 = vld [vmem:[%s8406_s6 + $0x388] sm:$0xff]  ;;  %v8756_v58 = vld [vmem:[%s8406_s6 + $0x390] sm:$0xff] }
  0x4a   : > { %11798 = vst [vmem:[#allocation103_spill] sm:$0xff] %v8750_v43  ;;  %11799 = vst [vmem:[#allocation104_spill] sm:$0xff] %v8753_v59  ;;  %v8759_v50 = vld [vmem:[%s8406_s6 + $0x398] sm:$0xff]  ;;  %v8762_v39 = vld [vmem:[%s8406_s6 + $0x3a0] sm:$0xff] }
  0x4b   : > { %11800 = vst [vmem:[#allocation105_spill] sm:$0xff] %v8756_v58  ;;  %11801 = vst [vmem:[#allocation106_spill] sm:$0xff] %v8759_v50  ;;  %v8765_v63 = vld [vmem:[%s8406_s6 + $0x3a8] sm:$0xff]  ;;  %v8768_v62 = vld [vmem:[%s8406_s6 + $0x3b0] sm:$0xff] }
  0x4c   : > { %11802 = vst [vmem:[#allocation107_spill] sm:$0xff] %v8762_v39  ;;  %11803 = vst [vmem:[#allocation108_spill] sm:$0xff] %v8765_v63  ;;  %v8771_v54 = vld [vmem:[%s8406_s6 + $0x3b8] sm:$0xff]  ;;  %v8774_v59 = vld [vmem:[%s8406_s6 + $0x3c0] sm:$0xff] }
  0x4d   : > { %11804 = vst [vmem:[#allocation109_spill] sm:$0xff] %v8768_v62  ;;  %11805 = vst [vmem:[#allocation110_spill] sm:$0xff] %v8771_v54  ;;  %v8777_v58 = vld [vmem:[%s8406_s6 + $0x3c8] sm:$0xff]  ;;  %v8780_v50 = vld [vmem:[%s8406_s6 + $0x3d0] sm:$0xff] }
  0x4e   : > { %11806 = vst [vmem:[#allocation111_spill] sm:$0xff] %v8774_v59  ;;  %11807 = vst [vmem:[#allocation112_spill] sm:$0xff] %v8777_v58  ;;  %v8783_v43 = vld [vmem:[%s8406_s6 + $0x3d8] sm:$0xff]  ;;  %v8786_v63 = vld [vmem:[%s8406_s6 + $0x3e0] sm:$0xff] }
  0x4f   : > { %11808 = vst [vmem:[#allocation113_spill] sm:$0xff] %v8780_v50  ;;  %11809 = vst [vmem:[#allocation114_spill] sm:$0xff] %v8783_v43  ;;  %v8789_v62 = vld [vmem:[%s8406_s6 + $0x3e8] sm:$0xff]  ;;  %v8792_v54 = vld [vmem:[%s8406_s6 + $0x3f0] sm:$0xff] }
  0x50   : > { %11810 = vst [vmem:[#allocation115_spill] sm:$0xff] %v8786_v63  ;;  %11811 = vst [vmem:[#allocation116_spill] sm:$0xff] %v8789_v62  ;;  %v8795_v59 = vld [vmem:[%s8406_s6 + $0x3f8] sm:$0xff]  ;;  %v8798_v58 = vld [vmem:[%s8406_s6 + $0x400] sm:$0xff] }
  0x51   : > { %11812 = vst [vmem:[#allocation117_spill] sm:$0xff] %v8792_v54  ;;  %11813 = vst [vmem:[#allocation118_spill] sm:$0xff] %v8795_v59  ;;  %v8801_v50 = vld [vmem:[%s8406_s6 + $0x408] sm:$0xff]  ;;  %v8804_v43 = vld [vmem:[%s8406_s6 + $0x410] sm:$0xff] }
  0x52   : > { %11814 = vst [vmem:[#allocation119_spill] sm:$0xff] %v8798_v58  ;;  %11815 = vst [vmem:[#allocation120_spill] sm:$0xff] %v8801_v50  ;;  %v8807_v63 = vld [vmem:[%s8406_s6 + $0x418] sm:$0xff]  ;;  %v8810_v62 = vld [vmem:[%s8406_s6 + $0x420] sm:$0xff] }
  0x53   : > { %11816 = vst [vmem:[#allocation121_spill] sm:$0xff] %v8804_v43  ;;  %11817 = vst [vmem:[#allocation122_spill] sm:$0xff] %v8807_v63  ;;  %v8813_v54 = vld [vmem:[%s8406_s6 + $0x428] sm:$0xff]  ;;  %v8816_v59 = vld [vmem:[%s8406_s6 + $0x430] sm:$0xff] }
  0x54   : > { %11818 = vst [vmem:[#allocation123_spill] sm:$0xff] %v8810_v62  ;;  %11819 = vst [vmem:[#allocation124_spill] sm:$0xff] %v8813_v54  ;;  %v8819_v58 = vld [vmem:[%s8406_s6 + $0x438] sm:$0xff]  ;;  %v8822_v50 = vld [vmem:[%s8406_s6 + $0x440] sm:$0xff] }
  0x55   : > { %11820 = vst [vmem:[#allocation125_spill] sm:$0xff] %v8816_v59  ;;  %11821 = vst [vmem:[#allocation126_spill] sm:$0xff] %v8819_v58  ;;  %v8825_v43 = vld [vmem:[%s8406_s6 + $0x448] sm:$0xff]  ;;  %v8828_v63 = vld [vmem:[%s8406_s6 + $0x450] sm:$0xff] }
  0x56   : > { %11822 = vst [vmem:[#allocation127_spill] sm:$0xff] %v8822_v50  ;;  %11823 = vst [vmem:[#allocation128_spill] sm:$0xff] %v8825_v43  ;;  %v8831_v62 = vld [vmem:[%s8406_s6 + $0x458] sm:$0xff]  ;;  %v8834_v54 = vld [vmem:[%s8406_s6 + $0x460] sm:$0xff] }
  0x57   : > { %11824 = vst [vmem:[#allocation129_spill] sm:$0xff] %v8828_v63  ;;  %11825 = vst [vmem:[#allocation130_spill] sm:$0xff] %v8831_v62  ;;  %v8837_v59 = vld [vmem:[%s8406_s6 + $0x468] sm:$0xff]  ;;  %v8840_v58 = vld [vmem:[%s8406_s6 + $0x470] sm:$0xff] }
  0x58   : > { %11826 = vst [vmem:[#allocation131_spill] sm:$0xff] %v8834_v54  ;;  %11827 = vst [vmem:[#allocation132_spill] sm:$0xff] %v8837_v59  ;;  %v8843_v50 = vld [vmem:[%s8406_s6 + $0x478] sm:$0xff]  ;;  %v8846_v43 = vld [vmem:[%s8406_s6 + $0x480] sm:$0xff] }
  0x59   : > { %11828 = vst [vmem:[#allocation133_spill] sm:$0xff] %v8840_v58  ;;  %11829 = vst [vmem:[#allocation134_spill] sm:$0xff] %v8843_v50  ;;  %v8849_v63 = vld [vmem:[%s8406_s6 + $0x488] sm:$0xff]  ;;  %v8852_v62 = vld [vmem:[%s8406_s6 + $0x490] sm:$0xff] }
  0x5a   : > { %11830 = vst [vmem:[#allocation135_spill] sm:$0xff] %v8846_v43  ;;  %11831 = vst [vmem:[#allocation136_spill] sm:$0xff] %v8849_v63  ;;  %v8855_v54 = vld [vmem:[%s8406_s6 + $0x498] sm:$0xff]  ;;  %v8858_v59 = vld [vmem:[%s8406_s6 + $0x4a0] sm:$0xff] }
  0x5b   : > { %11832 = vst [vmem:[#allocation137_spill] sm:$0xff] %v8852_v62  ;;  %11833 = vst [vmem:[#allocation138_spill] sm:$0xff] %v8855_v54  ;;  %v8861_v58 = vld [vmem:[%s8406_s6 + $0x4a8] sm:$0xff]  ;;  %v8864_v50 = vld [vmem:[%s8406_s6 + $0x4b0] sm:$0xff] }
  0x5c   : > { %11834 = vst [vmem:[#allocation139_spill] sm:$0xff] %v8858_v59  ;;  %11835 = vst [vmem:[#allocation140_spill] sm:$0xff] %v8861_v58  ;;  %v8867_v43 = vld [vmem:[%s8406_s6 + $0x4b8] sm:$0xff]  ;;  %v8870_v63 = vld [vmem:[%s8406_s6 + $0x4c0] sm:$0xff] }
  0x5d   : > { %11836 = vst [vmem:[#allocation141_spill] sm:$0xff] %v8864_v50  ;;  %11837 = vst [vmem:[#allocation142_spill] sm:$0xff] %v8867_v43  ;;  %v8873_v62 = vld [vmem:[%s8406_s6 + $0x4c8] sm:$0xff]  ;;  %v8876_v54 = vld [vmem:[%s8406_s6 + $0x4d0] sm:$0xff] }
  0x5e   : > { %11838 = vst [vmem:[#allocation143_spill] sm:$0xff] %v8870_v63  ;;  %11839 = vst [vmem:[#allocation144_spill] sm:$0xff] %v8873_v62  ;;  %v8879_v59 = vld [vmem:[%s8406_s6 + $0x4d8] sm:$0xff]  ;;  %v8882_v58 = vld [vmem:[%s8406_s6 + $0x4e0] sm:$0xff] }
  0x5f   : > { %11840 = vst [vmem:[#allocation145_spill] sm:$0xff] %v8876_v54  ;;  %11841 = vst [vmem:[#allocation146_spill] sm:$0xff] %v8879_v59  ;;  %v8885_v50 = vld [vmem:[%s8406_s6 + $0x4e8] sm:$0xff]  ;;  %v8888_v43 = vld [vmem:[%s8406_s6 + $0x4f0] sm:$0xff] }
  0x60   : > { %11842 = vst [vmem:[#allocation147_spill] sm:$0xff] %v8882_v58  ;;  %11843 = vst [vmem:[#allocation148_spill] sm:$0xff] %v8885_v50  ;;  %v8891_v63 = vld [vmem:[%s8406_s6 + $0x4f8] sm:$0xff]  ;;  %v8894_v62 = vld [vmem:[%s8406_s6 + $0x500] sm:$0xff] }
  0x61   : > { %11844 = vst [vmem:[#allocation149_spill] sm:$0xff] %v8888_v43  ;;  %11845 = vst [vmem:[#allocation150_spill] sm:$0xff] %v8891_v63  ;;  %v8897_v54 = vld [vmem:[%s8406_s6 + $0x508] sm:$0xff]  ;;  %v8900_v59 = vld [vmem:[%s8406_s6 + $0x510] sm:$0xff] }
  0x62   : > { %11846 = vst [vmem:[#allocation151_spill] sm:$0xff] %v8894_v62  ;;  %11847 = vst [vmem:[#allocation152_spill] sm:$0xff] %v8897_v54  ;;  %v8903_v58 = vld [vmem:[%s8406_s6 + $0x518] sm:$0xff]  ;;  %v8906_v50 = vld [vmem:[%s8406_s6 + $0x520] sm:$0xff] }
  0x63   : > { %11848 = vst [vmem:[#allocation153_spill] sm:$0xff] %v8900_v59  ;;  %11849 = vst [vmem:[#allocation154_spill] sm:$0xff] %v8903_v58  ;;  %v8909_v43 = vld [vmem:[%s8406_s6 + $0x528] sm:$0xff]  ;;  %v8912_v63 = vld [vmem:[%s8406_s6 + $0x530] sm:$0xff] }
  0x64   : > { %11850 = vst [vmem:[#allocation155_spill] sm:$0xff] %v8906_v50  ;;  %11851 = vst [vmem:[#allocation156_spill] sm:$0xff] %v8909_v43  ;;  %v8915_v62 = vld [vmem:[%s8406_s6 + $0x538] sm:$0xff]  ;;  %v8918_v54 = vld [vmem:[%s8406_s6 + $0x540] sm:$0xff] }
  0x65   : > { %11852 = vst [vmem:[#allocation157_spill] sm:$0xff] %v8912_v63  ;;  %11853 = vst [vmem:[#allocation158_spill] sm:$0xff] %v8915_v62  ;;  %v8921_v59 = vld [vmem:[%s8406_s6 + $0x548] sm:$0xff]  ;;  %v8924_v58 = vld [vmem:[%s8406_s6 + $0x550] sm:$0xff] }
  0x66   : > { %11854 = vst [vmem:[#allocation159_spill] sm:$0xff] %v8918_v54  ;;  %11855 = vst [vmem:[#allocation160_spill] sm:$0xff] %v8921_v59  ;;  %v8927_v50 = vld [vmem:[%s8406_s6 + $0x558] sm:$0xff]  ;;  %v8930_v43 = vld [vmem:[%s8406_s6 + $0x560] sm:$0xff] }
  0x67   : > { %11856 = vst [vmem:[#allocation161_spill] sm:$0xff] %v8924_v58  ;;  %11857 = vst [vmem:[#allocation162_spill] sm:$0xff] %v8927_v50  ;;  %v8933_v63 = vld [vmem:[%s8406_s6 + $0x568] sm:$0xff]  ;;  %v8936_v62 = vld [vmem:[%s8406_s6 + $0x570] sm:$0xff] }
  0x68   : > { %11858 = vst [vmem:[#allocation163_spill] sm:$0xff] %v8930_v43  ;;  %11859 = vst [vmem:[#allocation164_spill] sm:$0xff] %v8933_v63  ;;  %v8939_v54 = vld [vmem:[%s8406_s6 + $0x578] sm:$0xff]  ;;  %v8942_v59 = vld [vmem:[%s8406_s6 + $0x580] sm:$0xff] }
  0x69   : > { %11860 = vst [vmem:[#allocation165_spill] sm:$0xff] %v8936_v62  ;;  %11861 = vst [vmem:[#allocation166_spill] sm:$0xff] %v8939_v54  ;;  %v8945_v58 = vld [vmem:[%s8406_s6 + $0x588] sm:$0xff]  ;;  %v8948_v50 = vld [vmem:[%s8406_s6 + $0x590] sm:$0xff] }
  0x6a   : > { %11862 = vst [vmem:[#allocation167_spill] sm:$0xff] %v8942_v59  ;;  %11863 = vst [vmem:[#allocation168_spill] sm:$0xff] %v8945_v58  ;;  %v8951_v43 = vld [vmem:[%s8406_s6 + $0x598] sm:$0xff]  ;;  %v8954_v63 = vld [vmem:[%s8406_s6 + $0x5a0] sm:$0xff] }
  0x6b   : > { %11864 = vst [vmem:[#allocation169_spill] sm:$0xff] %v8948_v50  ;;  %11865 = vst [vmem:[#allocation170_spill] sm:$0xff] %v8951_v43  ;;  %v8957_v62 = vld [vmem:[%s8406_s6 + $0x5a8] sm:$0xff]  ;;  %v8960_v54 = vld [vmem:[%s8406_s6 + $0x5b0] sm:$0xff] }
  0x6c   : > { %11866 = vst [vmem:[#allocation171_spill] sm:$0xff] %v8954_v63  ;;  %11867 = vst [vmem:[#allocation172_spill] sm:$0xff] %v8957_v62  ;;  %v8963_v59 = vld [vmem:[%s8406_s6 + $0x5b8] sm:$0xff]  ;;  %v8966_v58 = vld [vmem:[%s8406_s6 + $0x5c0] sm:$0xff] }
  0x6d   : > { %11868 = vst [vmem:[#allocation173_spill] sm:$0xff] %v8960_v54  ;;  %11869 = vst [vmem:[#allocation174_spill] sm:$0xff] %v8963_v59  ;;  %v8969_v50 = vld [vmem:[%s8406_s6 + $0x5c8] sm:$0xff]  ;;  %v8972_v43 = vld [vmem:[%s8406_s6 + $0x5d0] sm:$0xff] }
  0x6e   : > { %11870 = vst [vmem:[#allocation175_spill] sm:$0xff] %v8966_v58  ;;  %11871 = vst [vmem:[#allocation176_spill] sm:$0xff] %v8969_v50  ;;  %v8975_v63 = vld [vmem:[%s8406_s6 + $0x5d8] sm:$0xff]  ;;  %v8978_v62 = vld [vmem:[%s8406_s6 + $0x5e0] sm:$0xff] }
  0x6f   : > { %11872 = vst [vmem:[#allocation177_spill] sm:$0xff] %v8972_v43  ;;  %11873 = vst [vmem:[#allocation178_spill] sm:$0xff] %v8975_v63  ;;  %v8981_v54 = vld [vmem:[%s8406_s6 + $0x5e8] sm:$0xff]  ;;  %v8984_v59 = vld [vmem:[%s8406_s6 + $0x5f0] sm:$0xff] }
  0x70   : > { %11874 = vst [vmem:[#allocation179_spill] sm:$0xff] %v8978_v62  ;;  %11875 = vst [vmem:[#allocation180_spill] sm:$0xff] %v8981_v54  ;;  %v8987_v58 = vld [vmem:[%s8406_s6 + $0x5f8] sm:$0xff]  ;;  %v8990_v50 = vld [vmem:[%s8406_s6 + $0x600] sm:$0xff] }
  0x71   : > { %11876 = vst [vmem:[#allocation181_spill] sm:$0xff] %v8984_v59  ;;  %11877 = vst [vmem:[#allocation182_spill] sm:$0xff] %v8987_v58  ;;  %v8993_v43 = vld [vmem:[%s8406_s6 + $0x608] sm:$0xff]  ;;  %v8996_v63 = vld [vmem:[%s8406_s6 + $0x610] sm:$0xff] }
  0x72   : > { %11878 = vst [vmem:[#allocation183_spill] sm:$0xff] %v8990_v50  ;;  %11879 = vst [vmem:[#allocation184_spill] sm:$0xff] %v8993_v43  ;;  %v8999_v62 = vld [vmem:[%s8406_s6 + $0x618] sm:$0xff]  ;;  %v9002_v54 = vld [vmem:[%s8406_s6 + $0x620] sm:$0xff] }
  0x73   : > { %11880 = vst [vmem:[#allocation185_spill] sm:$0xff] %v8996_v63  ;;  %11881 = vst [vmem:[#allocation186_spill] sm:$0xff] %v8999_v62  ;;  %v9005_v59 = vld [vmem:[%s8406_s6 + $0x628] sm:$0xff]  ;;  %v9008_v58 = vld [vmem:[%s8406_s6 + $0x630] sm:$0xff] }
  0x74   : > { %11882 = vst [vmem:[#allocation187_spill] sm:$0xff] %v9002_v54  ;;  %11883 = vst [vmem:[#allocation188_spill] sm:$0xff] %v9005_v59  ;;  %v9011_v50 = vld [vmem:[%s8406_s6 + $0x638] sm:$0xff]  ;;  %v9014_v43 = vld [vmem:[%s8406_s6 + $0x640] sm:$0xff] }
  0x75   : > { %11884 = vst [vmem:[#allocation189_spill] sm:$0xff] %v9008_v58  ;;  %11885 = vst [vmem:[#allocation190_spill] sm:$0xff] %v9011_v50  ;;  %v9017_v63 = vld [vmem:[%s8406_s6 + $0x648] sm:$0xff]  ;;  %v9020_v62 = vld [vmem:[%s8406_s6 + $0x650] sm:$0xff] }
  0x76   : > { %11886 = vst [vmem:[#allocation191_spill] sm:$0xff] %v9014_v43  ;;  %11887 = vst [vmem:[#allocation192_spill] sm:$0xff] %v9017_v63  ;;  %v9023_v54 = vld [vmem:[%s8406_s6 + $0x658] sm:$0xff]  ;;  %v9026_v59 = vld [vmem:[%s8406_s6 + $0x660] sm:$0xff] }
  0x77   : > { %11888 = vst [vmem:[#allocation193_spill] sm:$0xff] %v9020_v62  ;;  %11889 = vst [vmem:[#allocation194_spill] sm:$0xff] %v9023_v54  ;;  %v9029_v58 = vld [vmem:[%s8406_s6 + $0x668] sm:$0xff]  ;;  %v9032_v50 = vld [vmem:[%s8406_s6 + $0x670] sm:$0xff] }
  0x78   : > { %11890 = vst [vmem:[#allocation195_spill] sm:$0xff] %v9026_v59  ;;  %11891 = vst [vmem:[#allocation196_spill] sm:$0xff] %v9029_v58  ;;  %v9035_v43 = vld [vmem:[%s8406_s6 + $0x678] sm:$0xff]  ;;  %v9038_v63 = vld [vmem:[%s8406_s6 + $0x680] sm:$0xff] }
  0x79   : > { %11892 = vst [vmem:[#allocation197_spill] sm:$0xff] %v9032_v50  ;;  %11893 = vst [vmem:[#allocation198_spill] sm:$0xff] %v9035_v43  ;;  %v9041_v62 = vld [vmem:[%s8406_s6 + $0x688] sm:$0xff]  ;;  %v9044_v54 = vld [vmem:[%s8406_s6 + $0x690] sm:$0xff] }
  0x7a   : > { %11894 = vst [vmem:[#allocation199_spill] sm:$0xff] %v9038_v63  ;;  %11895 = vst [vmem:[#allocation200_spill] sm:$0xff] %v9041_v62  ;;  %v9047_v59 = vld [vmem:[%s8406_s6 + $0x698] sm:$0xff]  ;;  %v9050_v58 = vld [vmem:[%s8406_s6 + $0x6a0] sm:$0xff] }
  0x7b   : > { %11896 = vst [vmem:[#allocation201_spill] sm:$0xff] %v9044_v54  ;;  %11897 = vst [vmem:[#allocation202_spill] sm:$0xff] %v9047_v59  ;;  %v9053_v50 = vld [vmem:[%s8406_s6 + $0x6a8] sm:$0xff]  ;;  %v9056_v43 = vld [vmem:[%s8406_s6 + $0x6b0] sm:$0xff] }
  0x7c   : > { %11898 = vst [vmem:[#allocation203_spill] sm:$0xff] %v9050_v58  ;;  %11899 = vst [vmem:[#allocation204_spill] sm:$0xff] %v9053_v50  ;;  %v9059_v63 = vld [vmem:[%s8406_s6 + $0x6b8] sm:$0xff]  ;;  %v9062_v62 = vld [vmem:[%s8406_s6 + $0x6c0] sm:$0xff] }
  0x7d   : > { %11900 = vst [vmem:[#allocation205_spill] sm:$0xff] %v9056_v43  ;;  %11901 = vst [vmem:[#allocation206_spill] sm:$0xff] %v9059_v63  ;;  %v9065_v54 = vld [vmem:[%s8406_s6 + $0x6c8] sm:$0xff]  ;;  %v9068_v59 = vld [vmem:[%s8406_s6 + $0x6d0] sm:$0xff] }
  0x7e   : > { %11902 = vst [vmem:[#allocation207_spill] sm:$0xff] %v9062_v62  ;;  %11903 = vst [vmem:[#allocation208_spill] sm:$0xff] %v9065_v54  ;;  %v9071_v58 = vld [vmem:[%s8406_s6 + $0x6d8] sm:$0xff]  ;;  %v9074_v50 = vld [vmem:[%s8406_s6 + $0x6e0] sm:$0xff] }
  0x7f   : > { %11904 = vst [vmem:[#allocation209_spill] sm:$0xff] %v9068_v59  ;;  %11905 = vst [vmem:[#allocation210_spill] sm:$0xff] %v9071_v58  ;;  %v9077_v43 = vld [vmem:[%s8406_s6 + $0x6e8] sm:$0xff]  ;;  %v9080_v63 = vld [vmem:[%s8406_s6 + $0x6f0] sm:$0xff] }
  0x80   : > { %11906 = vst [vmem:[#allocation211_spill] sm:$0xff] %v9074_v50  ;;  %11907 = vst [vmem:[#allocation212_spill] sm:$0xff] %v9077_v43  ;;  %v9083_v62 = vld [vmem:[%s8406_s6 + $0x6f8] sm:$0xff]  ;;  %v9086_v54 = vld [vmem:[%s8406_s6 + $0x700] sm:$0xff] }
  0x81   : > { %11908 = vst [vmem:[#allocation213_spill] sm:$0xff] %v9080_v63  ;;  %11909 = vst [vmem:[#allocation214_spill] sm:$0xff] %v9083_v62  ;;  %v9089_v59 = vld [vmem:[%s8406_s6 + $0x708] sm:$0xff]  ;;  %v9092_v58 = vld [vmem:[%s8406_s6 + $0x710] sm:$0xff] }
  0x82   : > { %11910 = vst [vmem:[#allocation215_spill] sm:$0xff] %v9086_v54  ;;  %11911 = vst [vmem:[#allocation216_spill] sm:$0xff] %v9089_v59  ;;  %v9095_v50 = vld [vmem:[%s8406_s6 + $0x718] sm:$0xff]  ;;  %v9098_v43 = vld [vmem:[%s8406_s6 + $0x720] sm:$0xff] }
  0x83   : > { %11912 = vst [vmem:[#allocation217_spill] sm:$0xff] %v9092_v58  ;;  %11913 = vst [vmem:[#allocation218_spill] sm:$0xff] %v9095_v50  ;;  %v9101_v63 = vld [vmem:[%s8406_s6 + $0x728] sm:$0xff]  ;;  %v9104_v62 = vld [vmem:[%s8406_s6 + $0x730] sm:$0xff] }
  0x84   : > { %11914 = vst [vmem:[#allocation219_spill] sm:$0xff] %v9098_v43  ;;  %11915 = vst [vmem:[#allocation220_spill] sm:$0xff] %v9101_v63  ;;  %v9107_v54 = vld [vmem:[%s8406_s6 + $0x738] sm:$0xff]  ;;  %v9110_v59 = vld [vmem:[%s8406_s6 + $0x740] sm:$0xff] }
  0x85   : > { %11916 = vst [vmem:[#allocation221_spill] sm:$0xff] %v9104_v62  ;;  %11917 = vst [vmem:[#allocation222_spill] sm:$0xff] %v9107_v54  ;;  %v9113_v58 = vld [vmem:[%s8406_s6 + $0x748] sm:$0xff]  ;;  %v9116_v50 = vld [vmem:[%s8406_s6 + $0x750] sm:$0xff] }
  0x86   : > { %11918 = vst [vmem:[#allocation223_spill] sm:$0xff] %v9110_v59  ;;  %11919 = vst [vmem:[#allocation224_spill] sm:$0xff] %v9113_v58  ;;  %v9119_v43 = vld [vmem:[%s8406_s6 + $0x758] sm:$0xff]  ;;  %v9122_v63 = vld [vmem:[%s8406_s6 + $0x760] sm:$0xff] }
  0x87   : > { %11920 = vst [vmem:[#allocation225_spill] sm:$0xff] %v9116_v50  ;;  %11921 = vst [vmem:[#allocation226_spill] sm:$0xff] %v9119_v43  ;;  %v9125_v62 = vld [vmem:[%s8406_s6 + $0x768] sm:$0xff]  ;;  %v9128_v54 = vld [vmem:[%s8406_s6 + $0x770] sm:$0xff] }
  0x88   : > { %11922 = vst [vmem:[#allocation227_spill] sm:$0xff] %v9122_v63  ;;  %11923 = vst [vmem:[#allocation228_spill] sm:$0xff] %v9125_v62  ;;  %v9131_v59 = vld [vmem:[%s8406_s6 + $0x778] sm:$0xff]  ;;  %v9134_v58 = vld [vmem:[%s8406_s6 + $0x780] sm:$0xff] }
  0x89   : > { %11924 = vst [vmem:[#allocation229_spill] sm:$0xff] %v9128_v54  ;;  %11925 = vst [vmem:[#allocation230_spill] sm:$0xff] %v9131_v59  ;;  %v9137_v39 = vld [vmem:[%s8406_s6 + $0x788] sm:$0xff]  ;;  %v9140_v50 = vld [vmem:[%s8406_s6 + $0x790] sm:$0xff] }
  0x8a   : > { %11926 = vst [vmem:[#allocation231_spill] sm:$0xff] %v9134_v58  ;;  %11927 = vst [vmem:[#allocation232_spill] sm:$0xff] %v9137_v39  ;;  %v9143_v43 = vld [vmem:[%s8406_s6 + $0x798] sm:$0xff]  ;;  %v9146_v42 = vld [vmem:[%s8406_s6 + $0x7a0] sm:$0xff] }
  0x8b   : > { %11928 = vst [vmem:[#allocation233_spill] sm:$0xff] %v9140_v50  ;;  %11929 = vst [vmem:[#allocation234_spill] sm:$0xff] %v9143_v43  ;;  %v9149_v63 = vld [vmem:[%s8406_s6 + $0x7a8] sm:$0xff]  ;;  %v9152_v62 = vld [vmem:[%s8406_s6 + $0x7b0] sm:$0xff]  ;;  %484 = sbr.rel (%p6665_p6) target bundleno = 1215 (0x4bf), region = 44 }
  0x8c   : > { %11930 = vst [vmem:[#allocation235_spill] sm:$0xff] %v9146_v42  ;;  %11931 = vst [vmem:[#allocation236_spill] sm:$0xff] %v9149_v63  ;;  %v9155_v46 = vld [vmem:[%s8406_s6 + $0x7b8] sm:$0xff]  ;;  %v9158_v54 = vld [vmem:[%s8406_s6 + $0x7c0] sm:$0xff]  ;;  %v8332_v63 = vmov (!%p6665_p6), 0  }
  0x8d   : > { %11932 = vst [vmem:[#allocation237_spill] sm:$0xff] %v9152_v62  ;;  %11933 = vst [vmem:[#allocation238_spill] sm:$0xff] %v9155_v46  ;;  %v9161_v59 = vld [vmem:[%s8406_s6 + $0x7c8] sm:$0xff]  ;;  %v9164_v31 = vld [vmem:[%s8406_s6 + $0x7d0] sm:$0xff]  ;;  %2284 = vmatprep.subr.bf16.mxu1 (!%p6665_p6), %v8332_v63  ;;  %2573 = vmatprep.subr.bf16.mxu0 (!%p6665_p6), %v8332_v63 }
  0x8e   : > { %11934 = vst [vmem:[#allocation239_spill] sm:$0xff] %v9158_v54  ;;  %11935 = vst [vmem:[#allocation240_spill] sm:$0xff] %v9161_v59  ;;  %v9167_v58 = vld [vmem:[%s8406_s6 + $0x7d8] sm:$0xff]  ;;  %v9170_v39 = vld [vmem:[%s8406_s6 + $0x7e0] sm:$0xff]  ;;  %v6668_v59 = vcombine.high (!%p6665_p6), %v8409_v0, %v8426_v4 }
  0x8f   : > { %11936 = vst [vmem:[#allocation241_spill] sm:$0xff] %v9164_v31  ;;  %11937 = vst [vmem:[#allocation242_spill] sm:$0xff] %v9167_v58  ;;  %v9173_v50 = vld [vmem:[%s8406_s6 + $0x7e8] sm:$0xff]  ;;  %v9176_v43 = vld [vmem:[%s8406_s6 + $0x7f0] sm:$0xff]  ;;  %v6670_v58 = vcombine.high (!%p6665_p6), %v8412_v1, %v8429_v5  ;;  %v6675_v1 = vcombine.low (!%p6665_p6), %v8438_v8, %v8450_v12 }
  0x90   : > { %11938 = vst [vmem:[#allocation243_spill] sm:$0xff] %v9170_v39  ;;  %11939 = vst [vmem:[#allocation244_spill] sm:$0xff] %v9173_v50  ;;  %v9179_v42 = vld [vmem:[%s8406_s6 + $0x7f8] sm:$0xff]  ;;  %v8220_v46 = vld [vmem:[%s11205_s1] sm:$0xff] (!%p6665_p6)   ;;  %2316 = vmatprep.mubr.bf16.mxu1 (!%p6665_p6), %v6668_v59 }
  0x91   : > { %11940 = vst [vmem:[#allocation245_spill] sm:$0xff] %v9176_v43  ;;  %11941 = vst [vmem:[#allocation246_spill] sm:$0xff] %v9179_v42  ;;  %v9194_v42 = vld [vmem:[%s11205_s1 + $0x80] sm:$0xff] (!%p6665_p6)   ;;  %2285 = vmatpush1.bf16.msra.mxu1 (!%p6665_p6), %v8220_v46  ;;  %v8222_v50 = vld [vmem:[%s11205_s1 + $0x8] sm:$0xff] (!%p6665_p6)   ;;  %2605 = vmatprep.mubr.bf16.mxu0 (!%p6665_p6), %v6670_v58 }
  0x92   : > { %2574 = vmatpush1.bf16.msra.mxu0 %v9194_v42  ;;  %2286 = vmatprep.subr.bf16.mxu1 %v8332_v63  ;;  %v9204_v31 = vld [vmem:[%s11205_s1 + $0x88] sm:$0xff]   ;;  %v8224_v46 = vld [vmem:[%s11205_s1 + $0x10] sm:$0xff]   ;;  %v9226_v58 = vld [vmem:[%s11205_s1 + $0x98] sm:$0xff]  }
  0x93   : > { %2575 = vmatprep.subr.bf16.mxu0 %v8332_v63  ;;  %v9215_v59 = vld [vmem:[%s11205_s1 + $0x90] sm:$0xff]   ;;  %v9237_v43 = vld [vmem:[%s11205_s1 + $0xa0] sm:$0xff]   ;;  %v9248_v62 = vld [vmem:[%s11205_s1 + $0xa8] sm:$0xff]  }
  0x94   : > { %v9259_v54 = vld [vmem:[%s11205_s1 + $0xb0] sm:$0xff]   ;;  %v9270_v39 = vld [vmem:[%s11205_s1 + $0xb8] sm:$0xff]   ;;  %v9281_v35 = vld [vmem:[%s11205_s1 + $0xc0] sm:$0xff]  }
  0x95   : > { %2287 = vmatpush1.bf16.msra.mxu1 %v8222_v50  ;;  %v8226_v50 = vld [vmem:[%s11205_s1 + $0x18] sm:$0xff]   ;;  %v9292_v34 = vld [vmem:[%s11205_s1 + $0xc8] sm:$0xff]   ;;  %v9303_v38 = vld [vmem:[%s11205_s1 + $0xd0] sm:$0xff]  }
  0x96   : > { %2576 = vmatpush1.bf16.msra.mxu0 %v9204_v31  ;;  %2288 = vmatprep.subr.bf16.mxu1 %v8332_v63  ;;  %v9314_v19 = vld [vmem:[%s11205_s1 + $0xd8] sm:$0xff]   ;;  %v9325_v15 = vld [vmem:[%s11205_s1 + $0xe0] sm:$0xff]   ;;  %v9336_v26 = vld [vmem:[%s11205_s1 + $0xe8] sm:$0xff]  }
  0x97   : > { %2577 = vmatprep.subr.bf16.mxu0 %v8332_v63  ;;  %v8248_v30 = vld [vmem:[%s11205_s1 + $0x70] sm:$0xff]   ;;  %v8250_v7 = vld [vmem:[%s11205_s1 + $0x78] sm:$0xff]   ;;  %v8252_v18 = vld [vmem:[%s11205_s1 + $0x100] sm:$0xff]  }
  0x98   : > { %v9356_v55 = vld [vmem:[%s11205_s1 + $0xf8] sm:$0xff]  }
  0x99   : > { %2289 = vmatpush1.bf16.msra.mxu1 %v8224_v46  ;;  %v8228_v46 = vld [vmem:[%s11205_s1 + $0x20] sm:$0xff]  }
  0x9a   : > { %2578 = vmatpush1.bf16.msra.mxu0 %v9215_v59  ;;  %2290 = vmatprep.subr.bf16.mxu1 %v8332_v63 }
  0x9b   : > { %2579 = vmatprep.subr.bf16.mxu0 %v8332_v63 }
  0x9d   : > { %2291 = vmatpush1.bf16.msra.mxu1 %v8226_v50  ;;  %v8230_v50 = vld [vmem:[%s11205_s1 + $0x28] sm:$0xff]  }
  0x9e   : > { %2580 = vmatpush1.bf16.msra.mxu0 %v9226_v58  ;;  %2292 = vmatprep.subr.bf16.mxu1 %v8332_v63 }
  0x9f   : > { %2581 = vmatprep.subr.bf16.mxu0 %v8332_v63 }
  0xa1   : > { %2293 = vmatpush1.bf16.msra.mxu1 %v8228_v46  ;;  %v8232_v46 = vld [vmem:[%s11205_s1 + $0x30] sm:$0xff]  }
  0xa2   : > { %2582 = vmatpush1.bf16.msra.mxu0 %v9237_v43  ;;  %2294 = vmatprep.subr.bf16.mxu1 %v8332_v63 }
  0xa3   : > { %2583 = vmatprep.subr.bf16.mxu0 %v8332_v63 }
  0xa5   : > { %2295 = vmatpush1.bf16.msra.mxu1 %v8230_v50  ;;  %v8234_v50 = vld [vmem:[%s11205_s1 + $0x38] sm:$0xff]  }
  0xa6   : > { %2584 = vmatpush1.bf16.msra.mxu0 %v9248_v62  ;;  %2296 = vmatprep.subr.bf16.mxu1 %v8332_v63 }
  0xa7   : > { %2585 = vmatprep.subr.bf16.mxu0 %v8332_v63 }
  0xa9   : > { %2297 = vmatpush1.bf16.msra.mxu1 %v8232_v46  ;;  %v8236_v46 = vld [vmem:[%s11205_s1 + $0x40] sm:$0xff]  }
  0xaa   : > { %2586 = vmatpush1.bf16.msra.mxu0 %v9259_v54  ;;  %2298 = vmatprep.subr.bf16.mxu1 %v8332_v63 }
  0xab   : > { %2587 = vmatprep.subr.bf16.mxu0 %v8332_v63 }
  0xad   : > { %2299 = vmatpush1.bf16.msra.mxu1 %v8234_v50  ;;  %v8238_v50 = vld [vmem:[%s11205_s1 + $0x48] sm:$0xff]  }
  0xae   : > { %2588 = vmatpush1.bf16.msra.mxu0 %v9270_v39  ;;  %2300 = vmatprep.subr.bf16.mxu1 %v8332_v63 }
  0xaf   : > { %2589 = vmatprep.subr.bf16.mxu0 %v8332_v63 }
  0xb1   : > { %2301 = vmatpush1.bf16.msra.mxu1 %v8236_v46  ;;  %v8240_v46 = vld [vmem:[%s11205_s1 + $0x50] sm:$0xff]  }
  0xb2   : > { %2590 = vmatpush1.bf16.msra.mxu0 %v9281_v35  ;;  %2302 = vmatprep.subr.bf16.mxu1 %v8332_v63 }
  0xb3   : > { %2591 = vmatprep.subr.bf16.mxu0 %v8332_v63 }
  0xb5   : > { %2303 = vmatpush1.bf16.msra.mxu1 %v8238_v50  ;;  %v8242_v50 = vld [vmem:[%s11205_s1 + $0x58] sm:$0xff]  }
  0xb6   : > { %2592 = vmatpush1.bf16.msra.mxu0 %v9292_v34  ;;  %2304 = vmatprep.subr.bf16.mxu1 %v8332_v63 }
  0xb7   : > { %2593 = vmatprep.subr.bf16.mxu0 %v8332_v63 }
  0xb9   : > { %2305 = vmatpush1.bf16.msra.mxu1 %v8240_v46  ;;  %v8244_v46 = vld [vmem:[%s11205_s1 + $0x60] sm:$0xff]  }
  0xba   : > { %2594 = vmatpush1.bf16.msra.mxu0 %v9303_v38  ;;  %2306 = vmatprep.subr.bf16.mxu1 %v8332_v63 }
  0xbb   : > { %2595 = vmatprep.subr.bf16.mxu0 %v8332_v63 }
  0xbd   : > { %2307 = vmatpush1.bf16.msra.mxu1 %v8242_v50  ;;  %v8246_v50 = vld [vmem:[%s11205_s1 + $0x68] sm:$0xff]  }
  0xbe   : > { %2596 = vmatpush1.bf16.msra.mxu0 %v9314_v19  ;;  %2308 = vmatprep.subr.bf16.mxu1 %v8332_v63 }
  0xbf   : > { %2597 = vmatprep.subr.bf16.mxu0 %v8332_v63 }
  0xc1   : > { %2309 = vmatpush1.bf16.msra.mxu1 %v8244_v46  ;;  %v9345_v46 = vld [vmem:[%s11205_s1 + $0xf0] sm:$0xff]  }
  0xc2   : > { %2598 = vmatpush1.bf16.msra.mxu0 %v9325_v15  ;;  %2310 = vmatprep.subr.bf16.mxu1 %v8332_v63 }
  0xc3   : > { %2599 = vmatprep.subr.bf16.mxu0 %v8332_v63 }
  0xc5   : > { %2311 = vmatpush1.bf16.msra.mxu1 %v8246_v50  ;;  %v6667_v50 = vcombine.low %v8409_v0, %v8426_v4 }
  0xc6   : > { %2600 = vmatpush1.bf16.msra.mxu0 %v9336_v26  ;;  %2312 = vmatprep.subr.bf16.mxu1 %v8332_v63 }
  0xc7   : > { %2601 = vmatprep.subr.bf16.mxu0 %v8332_v63 }
  0xc9   : > { %2313 = vmatpush1.bf16.msra.mxu1 %v8248_v30  ;;  %v6676_v30 = vcombine.high %v8438_v8, %v8450_v12 }
  0xca   : > { %2602 = vmatpush1.bf16.msra.mxu0 %v9345_v46  ;;  %2314 = vmatprep.subr.bf16.mxu1 %v8332_v63 }
  0xcb   : > { %2603 = vmatprep.subr.bf16.mxu0 %v8332_v63 }
  0xcd   : > { %2315 = vmatpush1.bf16.msra.mxu1 %v8250_v7  ;;  %v8253_v7 = vld [vmem:[%s11205_s1 + $0x108] sm:$0xff]  }
  0xce   : > { %2604 = vmatpush1.bf16.msra.mxu0 %v9356_v55  ;;  %7377 = vmatprep.subr.bf16.mxu1 %v8332_v63 }
  0xcf   : > { %2862 = vmatprep.subr.bf16.mxu0 %v8332_v63 }
  0xd0   : > { %2317 = vmatmul.mubr.bf16.vlgmr.msra.gmra.mrb[0].mxu1 %v6667_v50  ;;  %v6677_v50 = vcombine.low %v8441_v9, %v8453_v13  ;;  %v12142_v13 = vld [vmem:[#allocation186_spill] sm:$0xff] }
  0xd1   : > { %2606 = vmatmul.mubr.bf16.vlgmr.msra.gmra.mrb[0].mxu0 %v6669_v22  ;;  %2324 = vmatprep.mubr.bf16.mxu1 %v6676_v30  ;;  %v6686_v22 = vcombine.high %v8465_v17, %v8477_v21  ;;  %v6683_v30 = vcombine.low %v8462_v16, %v8474_v20 }
  0xd2   : > { %2863 = vmatpush1.bf16.msra.mxu0 %v8252_v18  ;;  %2613 = vmatprep.mubr.bf16.mxu0 %v6678_v3  ;;  %v6684_v18 = vcombine.high %v8462_v16, %v8474_v20  ;;  %v8254_v3 = vld [vmem:[%s11205_s1 + $0x110] sm:$0xff]  }
  0xd3   : > { %2864 = vmatprep.subr.bf16.mxu0 %v8332_v63  ;;  %7393 = vmatpush1.bf16.msra.mxu1 %v9194_v42  ;;  %v8255_v42 = vld [vmem:[%s11205_s1 + $0x118] sm:$0xff]  }
  0xd4   : > { %7378 = vmatprep.subr.bf16.mxu1 %v8332_v63 }
  0xd6   : > { %2865 = vmatpush1.bf16.msra.mxu0 %v8253_v7  ;;  %v8256_v7 = vld [vmem:[%s11205_s1 + $0x120] sm:$0xff]  }
  0xd7   : > { %2866 = vmatprep.subr.bf16.mxu0 %v8332_v63  ;;  %7394 = vmatpush1.bf16.msra.mxu1 %v9204_v31  ;;  %v6692_v31 = vcombine.high %v8486_v24, %v8498_v28 }
  0xd8   : > { %2325 = vmatmul.mubr.bf16.gmra.mrb[4].mxu1 %v6675_v1  ;;  %7379 = vmatprep.subr.bf16.mxu1 %v8332_v63  ;;  %v6685_v1 = vcombine.low %v8465_v17, %v8477_v21  ;;  %v12140_v21 = vld [vmem:[#allocation178_spill] sm:$0xff] }
  0xd9   : > { %2614 = vmatmul.mubr.bf16.gmra.mrb[4].mxu0 %v6677_v50  ;;  %2332 = vmatprep.mubr.bf16.mxu1 %v6684_v18  ;;  %v6694_v50 = vcombine.high %v8489_v25, %v8501_v29  ;;  %v6691_v18 = vcombine.low %v8486_v24, %v8498_v28 }
  0xda   : > { %2867 = vmatpush1.bf16.msra.mxu0 %v8254_v3  ;;  %2621 = vmatprep.mubr.bf16.mxu0 %v6686_v22  ;;  %v6700_v3 = vcombine.high %v8510_v32, %v8522_v36  ;;  %v8258_v22 = vld [vmem:[%s11205_s1 + $0x130] sm:$0xff]  }
  0xdb   : > { %2868 = vmatprep.subr.bf16.mxu0 %v8332_v63  ;;  %7395 = vmatpush1.bf16.msra.mxu1 %v9215_v59  ;;  %v8257_v59 = vld [vmem:[%s11205_s1 + $0x128] sm:$0xff]  }
  0xdc   : > { %7380 = vmatprep.subr.bf16.mxu1 %v8332_v63 }
  0xde   : > { %2869 = vmatpush1.bf16.msra.mxu0 %v8255_v42  ;;  %v6702_v42 = vcombine.high %v8513_v33, %v8525_v37 }
  0xdf   : > { %2870 = vmatprep.subr.bf16.mxu0 %v8332_v63  ;;  %7396 = vmatpush1.bf16.msra.mxu1 %v9226_v58  ;;  %v6693_v58 = vcombine.low %v8489_v25, %v8501_v29  ;;  %v12138_v29 = vld [vmem:[#allocation170_spill] sm:$0xff] }
  0xe0   : > { %2333 = vmatmul.mubr.bf16.gmra.mrb[8].mxu1 %v6683_v30  ;;  %7381 = vmatprep.subr.bf16.mxu1 %v8332_v63  ;;  %v6699_v30 = vcombine.low %v8510_v32, %v8522_v36 }
  0xe1   : > { %2622 = vmatmul.mubr.bf16.gmra.mrb[8].mxu0 %v6685_v1  ;;  %2340 = vmatprep.mubr.bf16.mxu1 %v6692_v31  ;;  %v6708_v1 = vcombine.high %v8534_v40, %v8546_v44  ;;  %v8260_v31 = vld [vmem:[%s11205_s1 + $0x140] sm:$0xff]  }
  0xe2   : > { %2871 = vmatpush1.bf16.msra.mxu0 %v8256_v7  ;;  %2629 = vmatprep.mubr.bf16.mxu0 %v6694_v50  ;;  %v6710_v7 = vcombine.high %v8537_v41, %v8549_v45  ;;  %v6707_v50 = vcombine.low %v8534_v40, %v8546_v44 }
  0xe3   : > { %2872 = vmatprep.subr.bf16.mxu0 %v8332_v63  ;;  %7397 = vmatpush1.bf16.msra.mxu1 %v9237_v43  ;;  %v8259_v43 = vld [vmem:[%s11205_s1 + $0x138] sm:$0xff]  }
  0xe4   : > { %7382 = vmatprep.subr.bf16.mxu1 %v8332_v63 }
  0xe6   : > { %2873 = vmatpush1.bf16.msra.mxu0 %v8257_v59  ;;  %v6716_v59 = vcombine.high %v8558_v48, %v8570_v52 }
  0xe7   : > { %2874 = vmatprep.subr.bf16.mxu0 %v8332_v63  ;;  %7398 = vmatpush1.bf16.msra.mxu1 %v9248_v62  ;;  %v6701_v62 = vcombine.low %v8513_v33, %v8525_v37  ;;  %v12043_v37 = vld [vmem:[#allocation213_spill] sm:$0xff] }
  0xe8   : > { %2341 = vmatmul.mubr.bf16.gmra.mrb[12].mxu1 %v6691_v18  ;;  %7383 = vmatprep.subr.bf16.mxu1 %v8332_v63  ;;  %v8262_v18 = vld [vmem:[%s11205_s1 + $0x150] sm:$0xff]  }
  0xe9   : > { %2630 = vmatmul.mubr.bf16.gmra.mrb[12].mxu0 %v6693_v58  ;;  %2348 = vmatprep.mubr.bf16.mxu1 %v6700_v3  ;;  %v6718_v58 = vcombine.high %v8561_v49, %v8573_v53  ;;  %v6715_v3 = vcombine.low %v8558_v48, %v8570_v52  ;;  %v12150_v52 = vld [vmem:[#allocation218_spill] sm:$0xff] }
  0xea   : > { %2875 = vmatpush1.bf16.msra.mxu0 %v8258_v22  ;;  %2637 = vmatprep.mubr.bf16.mxu0 %v6702_v42  ;;  %v6724_v22 = vcombine.high %v8582_v56, %v8594_v60  ;;  %v8264_v42 = vld [vmem:[%s11205_s1 + $0x160] sm:$0xff]  }
  0xeb   : > { %2876 = vmatprep.subr.bf16.mxu0 %v8332_v63  ;;  %7399 = vmatpush1.bf16.msra.mxu1 %v9259_v54  ;;  %v8261_v54 = vld [vmem:[%s11205_s1 + $0x148] sm:$0xff]  }
  0xec   : > { %7384 = vmatprep.subr.bf16.mxu1 %v8332_v63 }
  0xee   : > { %2877 = vmatpush1.bf16.msra.mxu0 %v8259_v43  ;;  %v6726_v43 = vcombine.high %v8585_v57, %v8597_v61 }
  0xef   : > { %2878 = vmatprep.subr.bf16.mxu0 %v8332_v63  ;;  %7400 = vmatpush1.bf16.msra.mxu1 %v9270_v39  ;;  %v6709_v39 = vcombine.low %v8537_v41, %v8549_v45  ;;  %v12039_v45 = vld [vmem:[#allocation205_spill] sm:$0xff] }
  0xf0   : > { %2349 = vmatmul.mubr.bf16.gmra.mrb[16].mxu1 %v6699_v30  ;;  %7385 = vmatprep.subr.bf16.mxu1 %v8332_v63  ;;  %v6723_v30 = vcombine.low %v8582_v56, %v8594_v60 }
  0xf1   : > { %2638 = vmatmul.mubr.bf16.gmra.mrb[16].mxu0 %v6701_v62  ;;  %2356 = vmatprep.mubr.bf16.mxu1 %v6708_v1  ;;  %v6732_v62 = vcombine.high %v8606_v51, %v8618_v47  ;;  %v8266_v1 = vld [vmem:[%s11205_s1 + $0x170] sm:$0xff]  }
  0xf2   : > { %2879 = vmatpush1.bf16.msra.mxu0 %v8260_v31  ;;  %2645 = vmatprep.mubr.bf16.mxu0 %v6710_v7  ;;  %v6672_v31 = vcombine.high %v8415_v2, %v8432_v6  ;;  %v6731_v7 = vcombine.low %v8606_v51, %v8618_v47  ;;  %v12148_v47 = vld [vmem:[#allocation210_spill] sm:$0xff] }
  0xf3   : > { %2880 = vmatprep.subr.bf16.mxu0 %v8332_v63  ;;  %7401 = vmatpush1.bf16.msra.mxu1 %v9281_v35  ;;  %v8263_v35 = vld [vmem:[%s11205_s1 + $0x158] sm:$0xff]  }
  0xf4   : > { %7386 = vmatprep.subr.bf16.mxu1 %v8332_v63 }
  0xf6   : > { %2881 = vmatpush1.bf16.msra.mxu0 %v8261_v54  ;;  %v6740_v54 = vcombine.high %v8630_v27, %v8642_v23 }
  0xf7   : > { %2882 = vmatprep.subr.bf16.mxu0 %v8332_v63  ;;  %7402 = vmatpush1.bf16.msra.mxu1 %v9292_v34  ;;  %v6717_v34 = vcombine.low %v8561_v49, %v8573_v53  ;;  %v12035_v53 = vld [vmem:[#allocation197_spill] sm:$0xff] }
  0xf8   : > { %2357 = vmatmul.mubr.bf16.gmra.mrb[20].mxu1 %v6707_v50  ;;  %7387 = vmatprep.subr.bf16.mxu1 %v8332_v63  ;;  %v8268_v50 = vld [vmem:[%s11205_s1 + $0x180] sm:$0xff]  }
  0xf9   : > { %2646 = vmatmul.mubr.bf16.gmra.mrb[20].mxu0 %v6709_v39  ;;  %2364 = vmatprep.mubr.bf16.mxu1 %v6716_v59  ;;  %v6680_v39 = vcombine.high %v8444_v10, %v8456_v14  ;;  %v6739_v59 = vcombine.low %v8630_v27, %v8642_v23  ;;  %v12146_v23 = vld [vmem:[#allocation202_spill] sm:$0xff] }
  0xfa   : > { %2883 = vmatpush1.bf16.msra.mxu0 %v8262_v18  ;;  %2653 = vmatprep.mubr.bf16.mxu0 %v6718_v58  ;;  %v6679_v18 = vcombine.low %v8444_v10, %v8456_v14  ;;  %v11942_v58 = vld [vmem:[#allocation71_spill] sm:$0xff] }
  0xfb   : > { %2884 = vmatprep.subr.bf16.mxu0 %v8332_v63  ;;  %7403 = vmatpush1.bf16.msra.mxu1 %v9303_v38  ;;  %v8265_v38 = vld [vmem:[%s11205_s1 + $0x168] sm:$0xff]  }
  0xfc   : > { %7388 = vmatprep.subr.bf16.mxu1 %v8332_v63 }
  0xfe   : > { %2885 = vmatpush1.bf16.msra.mxu0 %v8263_v35  ;;  %v11943_v35 = vld [vmem:[#allocation15_spill] sm:$0xff] }
  0xff   : > { %2886 = vmatprep.subr.bf16.mxu0 %v8332_v63  ;;  %7404 = vmatpush1.bf16.msra.mxu1 %v9314_v19  ;;  %v6725_v19 = vcombine.low %v8585_v57, %v8597_v61  ;;  %v12031_v61 = vld [vmem:[#allocation189_spill] sm:$0xff] }
 0x100   : > { %2365 = vmatmul.mubr.bf16.gmra.mrb[24].mxu1 %v6715_v3  ;;  %7389 = vmatprep.subr.bf16.mxu1 %v8332_v63  ;;  %v11944_v3 = vld [vmem:[#allocation12_spill] sm:$0xff] }
 0x101   : > { %2654 = vmatmul.mubr.bf16.gmra.mrb[24].mxu0 %v6717_v34  ;;  %2372 = vmatprep.mubr.bf16.mxu1 %v6724_v22  ;;  %v6688_v34 = vcombine.high %v11944_v3, %v11943_v35  ;;  %v8270_v22 = vld [vmem:[%s11205_s1 + $0x190] sm:$0xff]  }
 0x102   : > { %2887 = vmatpush1.bf16.msra.mxu0 %v8264_v42  ;;  %2661 = vmatprep.mubr.bf16.mxu0 %v6726_v43  ;;  %v8271_v42 = vld [vmem:[%s11205_s1 + $0x198] sm:$0xff]   ;;  %v6747_v43 = vcombine.low %v11942_v58, %v8666_v11 }
 0x103   : > { %2888 = vmatprep.subr.bf16.mxu0 %v8332_v63  ;;  %7405 = vmatpush1.bf16.msra.mxu1 %v9325_v15  ;;  %v8267_v15 = vld [vmem:[%s11205_s1 + $0x178] sm:$0xff]  }
 0x104   : > { %7390 = vmatprep.subr.bf16.mxu1 %v8332_v63 }
 0x106   : > { %2889 = vmatpush1.bf16.msra.mxu0 %v8265_v38  ;;  %v6687_v38 = vcombine.low %v11944_v3, %v11943_v35  ;;  %v8274_v35 = vld [vmem:[%s11205_s1 + $0x1b0] sm:$0xff]   ;;  %v8275_v3 = vld [vmem:[%s11205_s1 + $0x1b8] sm:$0xff]  }
 0x107   : > { %2890 = vmatprep.subr.bf16.mxu0 %v8332_v63  ;;  %7406 = vmatpush1.bf16.msra.mxu1 %v9336_v26  ;;  %v6671_v26 = vcombine.low %v8415_v2, %v8432_v6 }
 0x108   : > { %2373 = vmatmul.mubr.bf16.gmra.mrb[28].mxu1 %v6723_v30  ;;  %7391 = vmatprep.subr.bf16.mxu1 %v8332_v63  ;;  %v11945_v30 = vld [vmem:[#allocation83_spill] sm:$0xff] }
 0x109   : > { %2662 = vmatmul.mubr.bf16.gmra.mrb[28].mxu0 %v6725_v19  ;;  %2380 = vmatprep.mubr.bf16.mxu1 %v6732_v62  ;;  %v11946_v19 = vld [vmem:[#allocation79_spill] sm:$0xff] }
 0x10a   : > { %2891 = vmatpush1.bf16.msra.mxu0 %v8266_v1  ;;  %2894 = vmatprep.mubr.bf16.mxu0 %v6672_v31  ;;  %v6756_v62 = vcombine.high %v11946_v19, %v11945_v30  ;;  %v11947_v1 = vld [vmem:[#allocation21_spill] sm:$0xff]  ;;  %v11948_v31 = vld [vmem:[#allocation18_spill] sm:$0xff] }
 0x10b   : > { %2892 = vmatprep.subr.bf16.mxu0 %v8332_v63  ;;  %7407 = vmatpush1.bf16.msra.mxu1 %v9345_v46  ;;  %v8269_v46 = vld [vmem:[%s11205_s1 + $0x188] sm:$0xff]  }
 0x10c   : > { %7392 = vmatprep.subr.bf16.mxu1 %v8332_v63 }
 0x10e   : > { %2893 = vmatpush1.bf16.msra.mxu0 %v8267_v15  ;;  %v6696_v15 = vcombine.high %v11948_v31, %v11947_v1 }
 0x10f   : > { %3151 = vmatprep.subr.bf16.mxu0 %v8332_v63  ;;  %7408 = vmatpush1.bf16.msra.mxu1 %v9356_v55  ;;  %v6748_v55 = vcombine.high %v11942_v58, %v8666_v11  ;;  %v11952_v58 = vld [vmem:[#allocation25_spill] sm:$0xff]  ;;  %v12144_v11 = vld [vmem:[#allocation194_spill] sm:$0xff] }
 0x110   : > { %2381 = vmatmul.mubr.bf16.gmra.mrb[32].mxu1 %v6731_v7  ;;  %v8272_v7 = vld [vmem:[%s11205_s1 + $0x1a0] sm:$0xff]  }
 0x111   : > { %2895 = vmatmul.mubr.bf16.vlgmr.msra.gmra.mrb[0].mxu0 %v6671_v26  ;;  %2388 = vmatprep.mubr.bf16.mxu1 %v6740_v54  ;;  %v8273_v26 = vld [vmem:[%s11205_s1 + $0x1a8] sm:$0xff]   ;;  %v6755_v54 = vcombine.low %v11946_v19, %v11945_v30  ;;  %v11955_v30 = vld [vmem:[#allocation37_spill] sm:$0xff] }
 0x112   : > { %3152 = vmatpush1.bf16.msra.mxu0 %v8268_v50  ;;  %2902 = vmatprep.mubr.bf16.mxu0 %v6680_v39  ;;  %v6695_v50 = vcombine.low %v11948_v31, %v11947_v1  ;;  %v11949_v39 = vld [vmem:[#allocation91_spill] sm:$0xff]  ;;  %v11956_v19 = vld [vmem:[#allocation33_spill] sm:$0xff]  ;;  %v8277_v31 = vld [vmem:[%s11205_s1 + $0x1c8] sm:$0xff]  }
 0x113   : > { %3153 = vmatprep.subr.bf16.mxu0 %v8332_v63  ;;  %v8276_v1 = vld [vmem:[%s11205_s1 + $0x1c0] sm:$0xff]  }
 0x116   : > { %3154 = vmatpush1.bf16.msra.mxu0 %v8269_v46  ;;  %v11950_v46 = vld [vmem:[#allocation87_spill] sm:$0xff] }
 0x117   : > { %3155 = vmatprep.subr.bf16.mxu0 %v8332_v63 }
 0x118   : > { %2389 = vmatmul.mubr.bf16.gmra.mrb[36].mxu1 %v6739_v59  ;;  %v6764_v59 = vcombine.high %v11950_v46, %v11949_v39 }
 0x119   : > { %2903 = vmatmul.mubr.bf16.gmra.mrb[4].mxu0 %v6679_v18  ;;  %2396 = vmatprep.mubr.bf16.mxu1 %v6748_v55  ;;  %v11951_v18 = vld [vmem:[#allocation29_spill] sm:$0xff] }
 0x11a   : > { %2910 = vmatprep.mubr.bf16.mxu0 %v6688_v34  ;;  %3156 = vmatpush1.bf16.msra.mxu0 %v8270_v22  ;;  %v6704_v55 = vcombine.high %v11952_v58, %v11951_v18  ;;  %v6763_v34 = vcombine.low %v11950_v46, %v11949_v39  ;;  %v6703_v22 = vcombine.low %v11952_v58, %v11951_v18  ;;  %v11959_v39 = vld [vmem:[#allocation45_spill] sm:$0xff] }
 0x11b   : > { %3157 = vmatprep.subr.bf16.mxu0 %v8332_v63  ;;  %v11960_v46 = vld [vmem:[#allocation41_spill] sm:$0xff] }
 0x11c   : > { %v8278_v18 = vld [vmem:[%s11205_s1 + $0x1d0] sm:$0xff]  }
 0x11e   : > { %3158 = vmatpush1.bf16.msra.mxu0 %v8271_v42  ;;  %v11953_v42 = vld [vmem:[#allocation99_spill] sm:$0xff] }
 0x11f   : > { %3159 = vmatprep.subr.bf16.mxu0 %v8332_v63 }
 0x120   : > { %2397 = vmatmul.mubr.bf16.gmra.mrb[40].mxu1 %v6747_v43  ;;  %v11954_v43 = vld [vmem:[#allocation95_spill] sm:$0xff] }
 0x121   : > { %2911 = vmatmul.mubr.bf16.gmra.mrb[8].mxu0 %v6687_v38  ;;  %2404 = vmatprep.mubr.bf16.mxu1 %v6756_v62  ;;  %v6772_v38 = vcombine.high %v11954_v43, %v11953_v42  ;;  %v6712_v62 = vcombine.high %v11956_v19, %v11955_v30 }
 0x122   : > { %2918 = vmatprep.mubr.bf16.mxu0 %v6696_v15  ;;  %3160 = vmatpush1.bf16.msra.mxu0 %v8272_v7  ;;  %v6771_v15 = vcombine.low %v11954_v43, %v11953_v42  ;;  %v6711_v7 = vcombine.low %v11956_v19, %v11955_v30  ;;  %v11964_v42 = vld [vmem:[#allocation49_spill] sm:$0xff] }
 0x123   : > { %3161 = vmatprep.subr.bf16.mxu0 %v8332_v63 }
 0x126   : > { %3162 = vmatpush1.bf16.msra.mxu0 %v8273_v26  ;;  %v11957_v26 = vld [vmem:[#allocation107_spill] sm:$0xff] }
 0x127   : > { %3163 = vmatprep.subr.bf16.mxu0 %v8332_v63 }
 0x128   : > { %2405 = vmatmul.mubr.bf16.gmra.mrb[44].mxu1 %v6755_v54  ;;  %v11958_v54 = vld [vmem:[#allocation103_spill] sm:$0xff] }
 0x129   : > { %2919 = vmatmul.mubr.bf16.gmra.mrb[12].mxu0 %v6695_v50  ;;  %2412 = vmatprep.mubr.bf16.mxu1 %v6764_v59  ;;  %v6780_v50 = vcombine.high %v11958_v54, %v11957_v26  ;;  %v6720_v59 = vcombine.high %v11960_v46, %v11959_v39  ;;  %v6779_v58 = vcombine.low %v11958_v54, %v11957_v26 }
 0x12a   : > { %2926 = vmatprep.mubr.bf16.mxu0 %v6704_v55  ;;  %3164 = vmatpush1.bf16.msra.mxu0 %v8274_v35  ;;  %v6719_v55 = vcombine.low %v11960_v46, %v11959_v39  ;;  %v11961_v35 = vld [vmem:[#allocation115_spill] sm:$0xff] }
 0x12b   : > { %3165 = vmatprep.subr.bf16.mxu0 %v8332_v63  ;;  %v11969_v39 = vld [vmem:[#allocation131_spill] sm:$0xff] }
 0x12c   : > { %v11970_v46 = vld [vmem:[#allocation127_spill] sm:$0xff] }
 0x12e   : > { %3166 = vmatpush1.bf16.msra.mxu0 %v8275_v3  ;;  %v11962_v3 = vld [vmem:[#allocation111_spill] sm:$0xff] }
 0x12f   : > { %3167 = vmatprep.subr.bf16.mxu0 %v8332_v63  ;;  %v6787_v30 = vcombine.low %v11962_v3, %v11961_v35 }
 0x130   : > { %2413 = vmatmul.mubr.bf16.gmra.mrb[48].mxu1 %v6763_v34  ;;  %v6788_v34 = vcombine.high %v11962_v3, %v11961_v35  ;;  %v8280_v35 = vld [vmem:[%s11205_s1 + $0x1e0] sm:$0xff]   ;;  %v6803_v3 = vcombine.low %v11970_v46, %v11969_v39 }
 0x131   : > { %2927 = vmatmul.mubr.bf16.gmra.mrb[16].mxu0 %v6703_v22  ;;  %2420 = vmatprep.mubr.bf16.mxu1 %v6772_v38  ;;  %v11963_v22 = vld [vmem:[#allocation53_spill] sm:$0xff]  ;;  %v8279_v38 = vld [vmem:[%s11205_s1 + $0x1d8] sm:$0xff]  }
 0x132   : > { %2934 = vmatprep.mubr.bf16.mxu0 %v6712_v62  ;;  %3168 = vmatpush1.bf16.msra.mxu0 %v8276_v1  ;;  %v6728_v43 = vcombine.high %v11964_v42, %v11963_v22  ;;  %v6727_v19 = vcombine.low %v11964_v42, %v11963_v22  ;;  %v11965_v62 = vld [vmem:[#allocation123_spill] sm:$0xff] }
 0x133   : > { %3169 = vmatprep.subr.bf16.mxu0 %v8332_v63  ;;  %v11966_v1 = vld [vmem:[#allocation119_spill] sm:$0xff] }
 0x134   : > { %v6795_v54 = vcombine.low %v11966_v1, %v11965_v62  ;;  %v11973_v22 = vld [vmem:[#allocation139_spill] sm:$0xff] }
 0x135   : > { %v11974_v42 = vld [vmem:[#allocation135_spill] sm:$0xff] }
 0x136   : > { %3170 = vmatpush1.bf16.msra.mxu0 %v8277_v31  ;;  %v6796_v31 = vcombine.high %v11966_v1, %v11965_v62  ;;  %v6811_v62 = vcombine.low %v11974_v42, %v11973_v22 }
 0x137   : > { %3171 = vmatprep.subr.bf16.mxu0 %v8332_v63 }
 0x138   : > { %2421 = vmatmul.mubr.bf16.gmra.mrb[52].mxu1 %v6771_v15  ;;  %v11967_v15 = vld [vmem:[#allocation61_spill] sm:$0xff] }
 0x139   : > { %2935 = vmatmul.mubr.bf16.gmra.mrb[20].mxu0 %v6711_v7  ;;  %2428 = vmatprep.mubr.bf16.mxu1 %v6780_v50  ;;  %v11968_v7 = vld [vmem:[#allocation57_spill] sm:$0xff] }
 0x13a   : > { %2942 = vmatprep.mubr.bf16.mxu0 %v6720_v59  ;;  %3172 = vmatpush1.bf16.msra.mxu0 %v8278_v18  ;;  %v6736_v26 = vcombine.high %v11968_v7, %v11967_v15  ;;  %v6735_v50 = vcombine.low %v11968_v7, %v11967_v15  ;;  %v6804_v59 = vcombine.high %v11970_v46, %v11969_v39  ;;  %v11971_v18 = vld [vmem:[#allocation69_spill] sm:$0xff]  ;;  %v11978_v15 = vld [vmem:[#allocation143_spill] sm:$0xff]  ;;  %v8281_v39 = vld [vmem:[%s11205_s1 + $0x1e8] sm:$0xff]  }
 0x13b   : > { %3173 = vmatprep.subr.bf16.mxu0 %v8332_v63 }
 0x13e   : > { %3174 = vmatpush1.bf16.msra.mxu0 %v8279_v38  ;;  %v11975_v38 = vld [vmem:[#allocation77_spill] sm:$0xff] }
 0x13f   : > { %3175 = vmatprep.subr.bf16.mxu0 %v8332_v63 }
 0x140   : > { %2429 = vmatmul.mubr.bf16.gmra.mrb[56].mxu1 %v6779_v58  ;;  %v11972_v58 = vld [vmem:[#allocation65_spill] sm:$0xff] }
 0x141   : > { %2943 = vmatmul.mubr.bf16.gmra.mrb[24].mxu0 %v6719_v55  ;;  %2436 = vmatprep.mubr.bf16.mxu1 %v6788_v34  ;;  %v6744_v55 = vcombine.high %v11972_v58, %v11971_v18  ;;  %v6743_v34 = vcombine.low %v11972_v58, %v11971_v18  ;;  %v11981_v18 = vld [vmem:[#allocation155_spill] sm:$0xff] }
 0x142   : > { %2950 = vmatprep.mubr.bf16.mxu0 %v6728_v43  ;;  %3176 = vmatpush1.bf16.msra.mxu0 %v8280_v35  ;;  %v6812_v43 = vcombine.high %v11974_v42, %v11973_v22  ;;  %v11982_v58 = vld [vmem:[#allocation151_spill] sm:$0xff]  ;;  %v11983_v35 = vld [vmem:[#allocation93_spill] sm:$0xff] }
 0x143   : > { %3177 = vmatprep.subr.bf16.mxu0 %v8332_v63  ;;  %v6827_v22 = vcombine.low %v11982_v58, %v11981_v18 }
 0x146   : > { %3178 = vmatpush1.bf16.msra.mxu0 %v8281_v39  ;;  %v11991_v39 = vld [vmem:[#allocation109_spill] sm:$0xff] }
 0x147   : > { %3179 = vmatprep.subr.bf16.mxu0 %v8332_v63 }
 0x148   : > { %2437 = vmatmul.mubr.bf16.gmra.mrb[60].mxu1 %v6787_v30  ;;  %v11976_v30 = vld [vmem:[#allocation73_spill] sm:$0xff] }
 0x149   : > { %2951 = vmatmul.mubr.bf16.gmra.mrb[28].mxu0 %v6727_v19  ;;  %2444 = vmatprep.mubr.bf16.mxu1 %v6796_v31  ;;  %v6752_v19 = vcombine.high %v11976_v30, %v11975_v38  ;;  %v6751_v1 = vcombine.low %v11976_v30, %v11975_v38  ;;  %v11977_v31 = vld [vmem:[#allocation147_spill] sm:$0xff] }
 0x14a   : > { %2958 = vmatprep.mubr.bf16.mxu0 %v6736_v26  ;;  %v6820_v7 = vcombine.high %v11978_v15, %v11977_v31  ;;  %v11979_v26 = vld [vmem:[#allocation85_spill] sm:$0xff]  ;;  %v6819_v46 = vcombine.low %v11978_v15, %v11977_v31  ;;  %v11986_v38 = vld [vmem:[#allocation159_spill] sm:$0xff] }
 0x14b   : > { %v8282_v31 = vld [vmem:[%s11205_s1 + $0x1f0] sm:$0xff]  }
 0x14c   : > { %3180 = vmatpush1.bf16.msra.mxu0 %v8282_v31  ;;  %v12000_v31 = vld [vmem:[#allocation121_spill] sm:$0xff] }
 0x14d   : > { %3181 = vmatprep.subr.bf16.mxu0 %v8332_v63  ;;  %v11993_v63 = vld [vmem:[#allocation179_spill] sm:$0xff] }
 0x150   : > { %2445 = vmatmul.mubr.bf16.gmra.mrb[64].mxu1 %v6795_v54  ;;  %v11980_v54 = vld [vmem:[#allocation81_spill] sm:$0xff] }
 0x151   : > { %2959 = vmatmul.mubr.bf16.gmra.mrb[32].mxu0 %v6735_v50  ;;  %2452 = vmatprep.mubr.bf16.mxu1 %v6804_v59  ;;  %v6760_v50 = vcombine.high %v11980_v54, %v11979_v26  ;;  %v6759_v59 = vcombine.low %v11980_v54, %v11979_v26  ;;  %v11989_v26 = vld [vmem:[#allocation171_spill] sm:$0xff] }
 0x152   : > { %2966 = vmatprep.mubr.bf16.mxu0 %v6744_v55  ;;  %v6828_v55 = vcombine.high %v11982_v58, %v11981_v18  ;;  %v11990_v54 = vld [vmem:[#allocation167_spill] sm:$0xff] }
 0x153   : > { %v6843_v18 = vcombine.low %v11990_v54, %v11989_v26 }
 0x158   : > { %2453 = vmatmul.mubr.bf16.gmra.mrb[68].mxu1 %v6803_v3  ;;  %v11984_v3 = vld [vmem:[#allocation89_spill] sm:$0xff] }
 0x159   : > { %2967 = vmatmul.mubr.bf16.gmra.mrb[36].mxu0 %v6743_v34  ;;  %2460 = vmatprep.mubr.bf16.mxu1 %v6812_v43  ;;  %v6768_v34 = vcombine.high %v11984_v3, %v11983_v35  ;;  %v6767_v42 = vcombine.low %v11984_v3, %v11983_v35  ;;  %v11985_v43 = vld [vmem:[#allocation163_spill] sm:$0xff]  ;;  %v11995_v3 = vld [vmem:[#allocation117_spill] sm:$0xff] }
 0x15a   : > { %2974 = vmatprep.mubr.bf16.mxu0 %v6752_v19  ;;  %v6836_v30 = vcombine.high %v11986_v38, %v11985_v43  ;;  %v11987_v19 = vld [vmem:[#allocation101_spill] sm:$0xff]  ;;  %v6835_v15 = vcombine.low %v11986_v38, %v11985_v43 }
 0x160   : > { %2461 = vmatmul.mubr.bf16.gmra.mrb[72].mxu1 %v6811_v62  ;;  %v11988_v62 = vld [vmem:[#allocation97_spill] sm:$0xff] }
 0x161   : > { %2975 = vmatmul.mubr.bf16.gmra.mrb[40].mxu0 %v6751_v1  ;;  %2468 = vmatprep.mubr.bf16.mxu1 %v6820_v7  ;;  %v6776_v1 = vcombine.high %v11988_v62, %v11987_v19  ;;  %v6775_v7 = vcombine.low %v11988_v62, %v11987_v19  ;;  %v11998_v19 = vld [vmem:[#allocation183_spill] sm:$0xff] }
 0x162   : > { %2982 = vmatprep.mubr.bf16.mxu0 %v6760_v50  ;;  %v6844_v50 = vcombine.high %v11990_v54, %v11989_v26  ;;  %v12001_v54 = vld [vmem:[#allocation195_spill] sm:$0xff] }
 0x168   : > { %2469 = vmatmul.mubr.bf16.gmra.mrb[76].mxu1 %v6819_v46  ;;  %v11992_v46 = vld [vmem:[#allocation105_spill] sm:$0xff] }
 0x169   : > { %2983 = vmatmul.mubr.bf16.gmra.mrb[44].mxu0 %v6759_v59  ;;  %2476 = vmatprep.mubr.bf16.mxu1 %v6828_v55  ;;  %v6784_v59 = vcombine.high %v11992_v46, %v11991_v39  ;;  %v6783_v58 = vcombine.low %v11992_v46, %v11991_v39  ;;  %v11994_v55 = vld [vmem:[#allocation175_spill] sm:$0xff]  ;;  %v12003_v46 = vld [vmem:[#allocation133_spill] sm:$0xff] }
 0x16a   : > { %2990 = vmatprep.mubr.bf16.mxu0 %v6768_v34  ;;  %v6852_v35 = vcombine.high %v11994_v55, %v11993_v63  ;;  %v11996_v34 = vld [vmem:[#allocation113_spill] sm:$0xff]  ;;  %v6851_v43 = vcombine.low %v11994_v55, %v11993_v63  ;;  %v12005_v55 = vld [vmem:[#allocation203_spill] sm:$0xff] }
 0x16b   : > { %v6791_v38 = vcombine.low %v11996_v34, %v11995_v3 }
 0x170   : > { %2477 = vmatmul.mubr.bf16.gmra.mrb[80].mxu1 %v6827_v22  ;;  %v6792_v22 = vcombine.high %v11996_v34, %v11995_v3  ;;  %v12007_v34 = vld [vmem:[#allocation141_spill] sm:$0xff] }
 0x171   : > { %2991 = vmatmul.mubr.bf16.gmra.mrb[48].mxu0 %v6767_v42  ;;  %2484 = vmatprep.mubr.bf16.mxu1 %v6836_v30  ;;  %v8283_v42 = vld [vmem:[%s11205_s1 + $0x1f8] sm:$0xff]   ;;  %v11997_v30 = vld [vmem:[#allocation187_spill] sm:$0xff] }
 0x172   : > { %2998 = vmatprep.mubr.bf16.mxu0 %v6776_v1  ;;  %3182 = vmatpush1.bf16.msra.mxu0 %v8283_v42  ;;  %v6860_v62 = vcombine.high %v11998_v19, %v11997_v30  ;;  %v11999_v1 = vld [vmem:[#allocation125_spill] sm:$0xff] }
 0x173   : > { %v6799_v26 = vcombine.low %v12000_v31, %v11999_v1 }
 0x178   : > { %2485 = vmatmul.mubr.bf16.gmra.mrb[84].mxu1 %v6835_v15  ;;  %v6800_v15 = vcombine.high %v12000_v31, %v11999_v1  ;;  %v12011_v1 = vld [vmem:[#allocation149_spill] sm:$0xff] }
 0x179   : > { %2999 = vmatmul.mubr.bf16.gmra.mrb[52].mxu0 %v6775_v7  ;;  %2492 = vmatprep.mubr.bf16.mxu1 %v6844_v50  ;;  %v6859_v7 = vcombine.low %v11998_v19, %v11997_v30  ;;  %v12002_v50 = vld [vmem:[#allocation191_spill] sm:$0xff]  ;;  %v12012_v31 = vld [vmem:[#allocation145_spill] sm:$0xff] }
 0x17a   : > { %3006 = vmatprep.mubr.bf16.mxu0 %v6784_v59  ;;  %v6868_v39 = vcombine.high %v12002_v50, %v12001_v54  ;;  %v12004_v59 = vld [vmem:[#allocation129_spill] sm:$0xff]  ;;  %v12009_v30 = vld [vmem:[#allocation211_spill] sm:$0xff] }
 0x17b   : > { %v6807_v63 = vcombine.low %v12004_v59, %v12003_v46  ;;  %v12010_v19 = vld [vmem:[#allocation207_spill] sm:$0xff] }
 0x180   : > { %2493 = vmatmul.mubr.bf16.gmra.mrb[88].mxu1 %v6843_v18  ;;  %v6808_v18 = vcombine.high %v12004_v59, %v12003_v46  ;;  %v12014_v46 = vld [vmem:[#allocation215_spill] sm:$0xff] }
 0x181   : > { %3007 = vmatmul.mubr.bf16.gmra.mrb[56].mxu0 %v6783_v58  ;;  %2500 = vmatprep.mubr.bf16.mxu1 %v6852_v35  ;;  %v6867_v58 = vcombine.low %v12002_v50, %v12001_v54  ;;  %v12006_v35 = vld [vmem:[#allocation199_spill] sm:$0xff]  ;;  %v6823_v50 = vcombine.low %v12012_v31, %v12011_v1 }
 0x182   : > { %3014 = vmatprep.mubr.bf16.mxu0 %v6792_v22  ;;  %v6876_v3 = vcombine.high %v12006_v35, %v12005_v55  ;;  %v12008_v22 = vld [vmem:[#allocation137_spill] sm:$0xff] }
 0x183   : > { %v6816_v42 = vcombine.high %v12008_v22, %v12007_v34 }
 0x188   : > { %2501 = vmatmul.mubr.bf16.gmra.mrb[92].mxu1 %v6851_v43  ;;  %v6875_v43 = vcombine.low %v12006_v35, %v12005_v55 }
 0x189   : > { %3015 = vmatmul.mubr.bf16.gmra.mrb[60].mxu0 %v6791_v38  ;;  %2508 = vmatprep.mubr.bf16.mxu1 %v6860_v62  ;;  %v6815_v38 = vcombine.low %v12008_v22, %v12007_v34  ;;  %v6884_v62 = vcombine.high %v12010_v19, %v12009_v30 }
 0x18a   : > { %3022 = vmatprep.mubr.bf16.mxu0 %v6800_v15  ;;  %v6824_v15 = vcombine.high %v12012_v31, %v12011_v1  ;;  %v12020_v1 = vld [vmem:[#allocation161_spill] sm:$0xff] }
 0x190   : > { %2509 = vmatmul.mubr.bf16.gmra.mrb[96].mxu1 %v6859_v7 }
 0x191   : > { %3023 = vmatmul.mubr.bf16.gmra.mrb[64].mxu0 %v6799_v26  ;;  %2516 = vmatprep.mubr.bf16.mxu1 %v6868_v39  ;;  %v6883_v26 = vcombine.low %v12010_v19, %v12009_v30  ;;  %v12013_v39 = vld [vmem:[#allocation219_spill] sm:$0xff] }
 0x192   : > { %3030 = vmatprep.mubr.bf16.mxu0 %v6808_v18  ;;  %v6892_v59 = vcombine.high %v12014_v46, %v12013_v39  ;;  %v6891_v34 = vcombine.low %v12014_v46, %v12013_v39  ;;  %v12021_v46 = vld [vmem:[#allocation235_spill] sm:$0xff] }
 0x198   : > { %2517 = vmatmul.mubr.bf16.gmra.mrb[100].mxu1 %v6867_v58  ;;  %v12015_v58 = vld [vmem:[#allocation157_spill] sm:$0xff] }
 0x199   : > { %3031 = vmatmul.mubr.bf16.gmra.mrb[68].mxu0 %v6807_v63  ;;  %2524 = vmatprep.mubr.bf16.mxu1 %v6876_v3  ;;  %v12016_v63 = vld [vmem:[#allocation153_spill] sm:$0xff] }
 0x19a   : > { %3038 = vmatprep.mubr.bf16.mxu0 %v6816_v42  ;;  %v6832_v55 = vcombine.high %v12016_v63, %v12015_v58  ;;  %v6831_v42 = vcombine.low %v12016_v63, %v12015_v58 }
 0x1a0   : > { %2525 = vmatmul.mubr.bf16.gmra.mrb[104].mxu1 %v6875_v43  ;;  %v12017_v43 = vld [vmem:[#allocation227_spill] sm:$0xff] }
 0x1a1   : > { %3039 = vmatmul.mubr.bf16.gmra.mrb[72].mxu0 %v6815_v38  ;;  %2532 = vmatprep.mubr.bf16.mxu1 %v6884_v62  ;;  %v12018_v38 = vld [vmem:[#allocation223_spill] sm:$0xff]  ;;  %v12019_v62 = vld [vmem:[#allocation165_spill] sm:$0xff] }
 0x1a2   : > { %3046 = vmatprep.mubr.bf16.mxu0 %v6824_v15  ;;  %v6900_v30 = vcombine.high %v12018_v38, %v12017_v43  ;;  %v6840_v31 = vcombine.high %v12020_v1, %v12019_v62  ;;  %v6839_v39 = vcombine.low %v12020_v1, %v12019_v62  ;;  %v12025_v62 = vld [vmem:[#allocation243_spill] sm:$0xff] }
 0x1a3   : > { %v9738_v7 = vpop.f32.mrb[0].mxu1  ;;  %v12026_v1 = vld [vmem:[#allocation239_spill] sm:$0xff] }
 0x1a4   : > { %v2320_v54 = vpop.f32.mrb[1].mxu1 }
 0x1a5   : > { %v9746_v18 = vpop.f32.mrb[2].mxu1  ;;  %v6899_v54 = vcombine.low %v12018_v38, %v12017_v43 }
 0x1a6   : > { %v2323_v35 = vpop.f32.mrb[3].mxu1 }
 0x1a7   : > { %v12024_v35 = vld [vmem:[#allocation169_spill] sm:$0xff] }
 0x1a8   : > { %2533 = vmatmul.mubr.bf16.gmra.mrb[108].mxu1 %v6883_v26 }
 0x1a9   : > { %3047 = vmatmul.mubr.bf16.gmra.mrb[76].mxu0 %v6823_v50  ;;  %2540 = vmatprep.mubr.bf16.mxu1 %v6892_v59  ;;  %v12022_v59 = vld [vmem:[#allocation231_spill] sm:$0xff] }
 0x1aa   : > { %3054 = vmatprep.mubr.bf16.mxu0 %v6832_v55  ;;  %v6908_v58 = vcombine.high %v12022_v59, %v12021_v46  ;;  %v12023_v55 = vld [vmem:[#allocation173_spill] sm:$0xff]  ;;  %v6907_v43 = vcombine.low %v12022_v59, %v12021_v46  ;;  %v6915_v46 = vcombine.low %v12026_v1, %v12025_v62 }
 0x1ab   : > { %v9750_v3 = vpop.f32.mrb[4].mxu1 }
 0x1ac   : > { %v2328_v22 = vpop.f32.mrb[5].mxu1 }
 0x1ad   : > { %v9758_v19 = vpop.f32.mrb[6].mxu1 }
 0x1ae   : > { %v2331_v15 = vpop.f32.mrb[7].mxu1 }
 0x1b0   : > { %2541 = vmatmul.mubr.bf16.gmra.mrb[112].mxu1 %v6891_v34  ;;  %v6848_v34 = vcombine.high %v12024_v35, %v12023_v55 }
 0x1b1   : > { %3055 = vmatmul.mubr.bf16.gmra.mrb[80].mxu0 %v6831_v42  ;;  %2548 = vmatprep.mubr.bf16.mxu1 %v6900_v30  ;;  %v6847_v30 = vcombine.low %v12024_v35, %v12023_v55  ;;  %v12029_v35 = vld [vmem:[#allocation60_spill] sm:$0xff] }
 0x1b2   : > { %3062 = vmatprep.mubr.bf16.mxu0 %v6840_v31  ;;  %v6916_v31 = vcombine.high %v12026_v1, %v12025_v62 }
 0x1b3   : > { %v9762_v26 = vpop.f32.mrb[8].mxu1 }
 0x1b4   : > { %v2336_v50 = vpop.f32.mrb[9].mxu1 }
 0x1b5   : > { %v9770_v63 = vpop.f32.mrb[10].mxu1  ;;  %v12027_v50 = vld [vmem:[#allocation181_spill] sm:$0xff] }
 0x1b6   : > { %v2339_v22 = vpop.f32.mrb[11].mxu1 }
 0x1b7   : > { %v12028_v22 = vld [vmem:[#allocation177_spill] sm:$0xff] }
 0x1b8   : > { %2549 = vmatmul.mubr.bf16.gmra.mrb[116].mxu1 %v6899_v54  ;;  %v6856_v54 = vcombine.high %v12028_v22, %v12027_v50  ;;  %v6855_v55 = vcombine.low %v12028_v22, %v12027_v50  ;;  %v12033_v22 = vld [vmem:[#allocation68_spill] sm:$0xff] }
 0x1b9   : > { %3063 = vmatmul.mubr.bf16.gmra.mrb[84].mxu0 %v6839_v39  ;;  %2556 = vmatprep.mubr.bf16.mxu1 %v6908_v58 }
 0x1ba   : > { %3070 = vmatprep.mubr.bf16.mxu0 %v6848_v34  ;;  %v12030_v34 = vld [vmem:[#allocation56_spill] sm:$0xff] }
 0x1bb   : > { %v9774_v42 = vpop.f32.mrb[12].mxu1  ;;  %v6733_v62 = vcombine.low %v12030_v34, %v12029_v35 }
 0x1bc   : > { %v2344_v38 = vpop.f32.mrb[13].mxu1 }
 0x1bd   : > { %v9782_v15 = vpop.f32.mrb[14].mxu1  ;;  %v6734_v38 = vcombine.high %v12030_v34, %v12029_v35 }
 0x1be   : > { %v2347_v39 = vpop.f32.mrb[15].mxu1 }
 0x1bf   : > { %v12032_v39 = vld [vmem:[#allocation185_spill] sm:$0xff] }
 0x1c0   : > { %2557 = vmatmul.mubr.bf16.gmra.mrb[120].mxu1 %v6907_v43  ;;  %v6864_v43 = vcombine.high %v12032_v39, %v12031_v61  ;;  %v6863_v50 = vcombine.low %v12032_v39, %v12031_v61  ;;  %v12037_v39 = vld [vmem:[#allocation76_spill] sm:$0xff] }
 0x1c1   : > { %3071 = vmatmul.mubr.bf16.gmra.mrb[88].mxu0 %v6847_v30  ;;  %2564 = vmatprep.mubr.bf16.mxu1 %v6916_v31 }
 0x1c2   : > { %3078 = vmatprep.mubr.bf16.mxu0 %v6856_v54  ;;  %v12034_v54 = vld [vmem:[#allocation64_spill] sm:$0xff] }
 0x1c3   : > { %v9786_v58 = vpop.f32.mrb[16].mxu1  ;;  %v6741_v35 = vcombine.low %v12034_v54, %v12033_v22 }
 0x1c4   : > { %v2352_v59 = vpop.f32.mrb[17].mxu1 }
 0x1c5   : > { %v9794_v57 = vpop.f32.mrb[18].mxu1  ;;  %v6742_v59 = vcombine.high %v12034_v54, %v12033_v22 }
 0x1c6   : > { %v2355_v30 = vpop.f32.mrb[19].mxu1 }
 0x1c7   : > { %v12036_v30 = vld [vmem:[#allocation193_spill] sm:$0xff] }
 0x1c8   : > { %2565 = vmatmul.mubr.bf16.gmra.mrb[124].mxu1 %v6915_v46  ;;  %v6872_v46 = vcombine.high %v12036_v30, %v12035_v53  ;;  %v6871_v61 = vcombine.low %v12036_v30, %v12035_v53  ;;  %v12041_v30 = vld [vmem:[#allocation84_spill] sm:$0xff] }
 0x1c9   : > { %3079 = vmatmul.mubr.bf16.gmra.mrb[92].mxu0 %v6855_v55  ;;  %2669 = vmatprep.mubr.bf16.mxu1 %v6734_v38 }
 0x1ca   : > { %3086 = vmatprep.mubr.bf16.mxu0 %v6864_v43  ;;  %v12038_v43 = vld [vmem:[#allocation72_spill] sm:$0xff] }
 0x1cb   : > { %v9798_v31 = vpop.f32.mrb[20].mxu1  ;;  %v6749_v22 = vcombine.low %v12038_v43, %v12037_v39 }
 0x1cc   : > { %v2360_v1 = vpop.f32.mrb[21].mxu1 }
 0x1cd   : > { %v9806_v49 = vpop.f32.mrb[22].mxu1  ;;  %v6750_v1 = vcombine.high %v12038_v43, %v12037_v39 }
 0x1ce   : > { %v2363_v55 = vpop.f32.mrb[23].mxu1 }
 0x1cf   : > { %v12040_v55 = vld [vmem:[#allocation201_spill] sm:$0xff] }
 0x1d0   : > { %2670 = vmatmul.mubr.bf16.vlgmr.msra.gmra.mrb[32].mxu1 %v6733_v62  ;;  %v6880_v62 = vcombine.high %v12040_v55, %v12039_v45  ;;  %v6879_v53 = vcombine.low %v12040_v55, %v12039_v45  ;;  %v12045_v45 = vld [vmem:[#allocation92_spill] sm:$0xff] }
 0x1d1   : > { %3087 = vmatmul.mubr.bf16.gmra.mrb[96].mxu0 %v6863_v50  ;;  %2677 = vmatprep.mubr.bf16.mxu1 %v6742_v59 }
 0x1d2   : > { %3094 = vmatprep.mubr.bf16.mxu0 %v6872_v46  ;;  %v12042_v46 = vld [vmem:[#allocation80_spill] sm:$0xff] }
 0x1d3   : > { %v9810_v38 = vpop.f32.mrb[24].mxu1  ;;  %v6757_v39 = vcombine.low %v12042_v46, %v12041_v30 }
 0x1d4   : > { %v2368_v34 = vpop.f32.mrb[25].mxu1 }
 0x1d5   : > { %v9818_v41 = vpop.f32.mrb[26].mxu1  ;;  %v6758_v34 = vcombine.high %v12042_v46, %v12041_v30  ;;  %v12049_v30 = vld [vmem:[#allocation100_spill] sm:$0xff] }
 0x1d6   : > { %v2371_v50 = vpop.f32.mrb[27].mxu1  ;;  %v12050_v46 = vld [vmem:[#allocation96_spill] sm:$0xff] }
 0x1d7   : > { %v12044_v50 = vld [vmem:[#allocation209_spill] sm:$0xff] }
 0x1d8   : > { %2678 = vmatmul.mubr.bf16.gmra.mrb[36].mxu1 %v6741_v35  ;;  %v6888_v35 = vcombine.high %v12044_v50, %v12043_v37  ;;  %v6887_v43 = vcombine.low %v12044_v50, %v12043_v37  ;;  %v12051_v37 = vld [vmem:[#allocation229_spill] sm:$0xff] }
 0x1d9   : > { %3095 = vmatmul.mubr.bf16.gmra.mrb[100].mxu0 %v6871_v61  ;;  %2685 = vmatprep.mubr.bf16.mxu1 %v6750_v1  ;;  %v12046_v1 = vld [vmem:[#allocation88_spill] sm:$0xff]  ;;  %v12052_v50 = vld [vmem:[#allocation225_spill] sm:$0xff] }
 0x1da   : > { %3102 = vmatprep.mubr.bf16.mxu0 %v6880_v62  ;;  %v6766_v55 = vcombine.high %v12046_v1, %v12045_v45  ;;  %v12047_v62 = vld [vmem:[#allocation221_spill] sm:$0xff] }
 0x1db   : > { %v9822_v59 = vpop.f32.mrb[28].mxu1 }
 0x1dc   : > { %v2376_v54 = vpop.f32.mrb[29].mxu1 }
 0x1dd   : > { %v9830_v33 = vpop.f32.mrb[30].mxu1  ;;  %v12048_v54 = vld [vmem:[#allocation217_spill] sm:$0xff] }
 0x1de   : > { %v2379_v61 = vpop.f32.mrb[31].mxu1  ;;  %v6896_v25 = vcombine.high %v12048_v54, %v12047_v62 }
 0x1df   : > { %v6773_v61 = vcombine.low %v12050_v46, %v12049_v30 }
 0x1e0   : > { %2686 = vmatmul.mubr.bf16.gmra.mrb[40].mxu1 %v6749_v22  ;;  %v6765_v22 = vcombine.low %v12046_v1, %v12045_v45  ;;  %v12055_v1 = vld [vmem:[#allocation237_spill] sm:$0xff] }
 0x1e1   : > { %3103 = vmatmul.mubr.bf16.gmra.mrb[104].mxu0 %v6879_v53  ;;  %2693 = vmatprep.mubr.bf16.mxu1 %v6758_v34  ;;  %v6895_v53 = vcombine.low %v12048_v54, %v12047_v62  ;;  %v6774_v34 = vcombine.high %v12050_v46, %v12049_v30  ;;  %v12058_v30 = vld [vmem:[#allocation112_spill] sm:$0xff] }
 0x1e2   : > { %3110 = vmatprep.mubr.bf16.mxu0 %v6888_v35  ;;  %v6904_v35 = vcombine.high %v12052_v50, %v12051_v37 }
 0x1e8   : > { %2694 = vmatmul.mubr.bf16.gmra.mrb[44].mxu1 %v6757_v39  ;;  %v12053_v39 = vld [vmem:[#allocation108_spill] sm:$0xff] }
 0x1e9   : > { %3111 = vmatmul.mubr.bf16.gmra.mrb[108].mxu0 %v6887_v43  ;;  %2701 = vmatprep.mubr.bf16.mxu1 %v6766_v55  ;;  %v12054_v43 = vld [vmem:[#allocation104_spill] sm:$0xff]  ;;  %v12056_v55 = vld [vmem:[#allocation233_spill] sm:$0xff] }
 0x1ea   : > { %3118 = vmatprep.mubr.bf16.mxu0 %v6896_v25  ;;  %v6903_v25 = vcombine.low %v12052_v50, %v12051_v37  ;;  %v6782_v45 = vcombine.high %v12054_v43, %v12053_v39  ;;  %v6912_v62 = vcombine.high %v12056_v55, %v12055_v1  ;;  %v6781_v54 = vcombine.low %v12054_v43, %v12053_v39  ;;  %v12060_v37 = vld [vmem:[#allocation241_spill] sm:$0xff]  ;;  %v12062_v39 = vld [vmem:[#allocation120_spill] sm:$0xff] }
 0x1f0   : > { %2702 = vmatmul.mubr.bf16.gmra.mrb[48].mxu1 %v6765_v22  ;;  %v6911_v22 = vcombine.low %v12056_v55, %v12055_v1  ;;  %v12064_v1 = vld [vmem:[#allocation4_spill] sm:$0xff] }
 0x1f1   : > { %3119 = vmatmul.mubr.bf16.gmra.mrb[112].mxu0 %v6895_v53  ;;  %2709 = vmatprep.mubr.bf16.mxu1 %v6774_v34  ;;  %v12057_v53 = vld [vmem:[#allocation116_spill] sm:$0xff]  ;;  %v12059_v34 = vld [vmem:[#allocation245_spill] sm:$0xff] }
 0x1f2   : > { %3126 = vmatprep.mubr.bf16.mxu0 %v6904_v35  ;;  %v6790_v46 = vcombine.high %v12058_v30, %v12057_v53  ;;  %v6920_v50 = vcombine.high %v12060_v37, %v12059_v34  ;;  %v6789_v35 = vcombine.low %v12058_v30, %v12057_v53  ;;  %v12066_v53 = vld [vmem:[#allocation128_spill] sm:$0xff] }
 0x1f8   : > { %2710 = vmatmul.mubr.bf16.gmra.mrb[52].mxu1 %v6773_v61  ;;  %v6919_v61 = vcombine.low %v12060_v37, %v12059_v34  ;;  %v12068_v34 = vld [vmem:[#allocation8_spill] sm:$0xff] }
 0x1f9   : > { %3127 = vmatmul.mubr.bf16.gmra.mrb[116].mxu0 %v6903_v25  ;;  %2717 = vmatprep.mubr.bf16.mxu1 %v6782_v45  ;;  %v12061_v25 = vld [vmem:[#allocation124_spill] sm:$0xff]  ;;  %v12063_v45 = vld [vmem:[#allocation6_spill] sm:$0xff] }
 0x1fa   : > { %3134 = vmatprep.mubr.bf16.mxu0 %v6912_v62  ;;  %v6798_v43 = vcombine.high %v12062_v39, %v12061_v25  ;;  %v6674_v55 = vcombine.high %v12064_v1, %v12063_v45  ;;  %v6797_v62 = vcombine.low %v12062_v39, %v12061_v25  ;;  %v12070_v25 = vld [vmem:[#allocation136_spill] sm:$0xff] }
 0x200   : > { %2718 = vmatmul.mubr.bf16.gmra.mrb[56].mxu1 %v6781_v54  ;;  %v6673_v54 = vcombine.low %v12064_v1, %v12063_v45  ;;  %v12072_v45 = vld [vmem:[#allocation13_spill] sm:$0xff] }
 0x201   : > { %3135 = vmatmul.mubr.bf16.gmra.mrb[120].mxu0 %v6911_v22  ;;  %2725 = vmatprep.mubr.bf16.mxu1 %v6790_v46  ;;  %v12065_v22 = vld [vmem:[#allocation132_spill] sm:$0xff]  ;;  %v12067_v46 = vld [vmem:[#allocation10_spill] sm:$0xff] }
 0x202   : > { %3142 = vmatprep.mubr.bf16.mxu0 %v6920_v50  ;;  %v6806_v30 = vcombine.high %v12066_v53, %v12065_v22  ;;  %v6682_v37 = vcombine.high %v12068_v34, %v12067_v46  ;;  %v6805_v50 = vcombine.low %v12066_v53, %v12065_v22  ;;  %v12074_v22 = vld [vmem:[#allocation144_spill] sm:$0xff] }
 0x208   : > { %2726 = vmatmul.mubr.bf16.gmra.mrb[60].mxu1 %v6789_v35  ;;  %v6681_v35 = vcombine.low %v12068_v34, %v12067_v46  ;;  %v12076_v46 = vld [vmem:[#allocation19_spill] sm:$0xff] }
 0x209   : > { %3143 = vmatmul.mubr.bf16.gmra.mrb[124].mxu0 %v6919_v61  ;;  %2733 = vmatprep.mubr.bf16.mxu1 %v6798_v43  ;;  %v12069_v61 = vld [vmem:[#allocation140_spill] sm:$0xff] }
 0x20a   : > { %3183 = vmatprep.mubr.bf16.mxu0 %v6674_v55  ;;  %v6814_v39 = vcombine.high %v12070_v25, %v12069_v61  ;;  %v12071_v43 = vld [vmem:[#allocation16_spill] sm:$0xff]  ;;  %v6813_v55 = vcombine.low %v12070_v25, %v12069_v61 }
 0x20b   : > { %v6690_v1 = vcombine.high %v12072_v45, %v12071_v43  ;;  %v12078_v61 = vld [vmem:[#allocation152_spill] sm:$0xff] }
 0x210   : > { %2734 = vmatmul.mubr.bf16.gmra.mrb[64].mxu1 %v6797_v62  ;;  %v6689_v62 = vcombine.low %v12072_v45, %v12071_v43  ;;  %v12080_v43 = vld [vmem:[#allocation26_spill] sm:$0xff] }
 0x211   : > { %3184 = vmatmul.mubr.bf16.vlgmr.msra.gmra.mrb[0].mxu0 %v6673_v54  ;;  %2741 = vmatprep.mubr.bf16.mxu1 %v6806_v30  ;;  %v12073_v54 = vld [vmem:[#allocation148_spill] sm:$0xff]  ;;  %v12075_v30 = vld [vmem:[#allocation22_spill] sm:$0xff] }
 0x212   : > { %3191 = vmatprep.mubr.bf16.mxu0 %v6682_v37  ;;  %v6822_v53 = vcombine.high %v12074_v22, %v12073_v54  ;;  %v6698_v34 = vcombine.high %v12076_v46, %v12075_v30  ;;  %v6821_v37 = vcombine.low %v12074_v22, %v12073_v54  ;;  %v12081_v54 = vld [vmem:[#allocation164_spill] sm:$0xff] }
 0x213   : > { %v12082_v22 = vld [vmem:[#allocation160_spill] sm:$0xff] }
 0x218   : > { %2742 = vmatmul.mubr.bf16.gmra.mrb[68].mxu1 %v6805_v50  ;;  %v6697_v50 = vcombine.low %v12076_v46, %v12075_v30  ;;  %v12083_v30 = vld [vmem:[#allocation38_spill] sm:$0xff] }
 0x219   : > { %3192 = vmatmul.mubr.bf16.gmra.mrb[4].mxu0 %v6681_v35  ;;  %2749 = vmatprep.mubr.bf16.mxu1 %v6814_v39  ;;  %v12077_v35 = vld [vmem:[#allocation156_spill] sm:$0xff]  ;;  %v12079_v39 = vld [vmem:[#allocation30_spill] sm:$0xff] }
 0x21a   : > { %3199 = vmatprep.mubr.bf16.mxu0 %v6690_v1  ;;  %v6830_v25 = vcombine.high %v12078_v61, %v12077_v35  ;;  %v6706_v45 = vcombine.high %v12080_v43, %v12079_v39  ;;  %v6829_v1 = vcombine.low %v12078_v61, %v12077_v35  ;;  %v12084_v46 = vld [vmem:[#allocation34_spill] sm:$0xff]  ;;  %v12085_v35 = vld [vmem:[#allocation172_spill] sm:$0xff] }
 0x21b   : > { %v12086_v61 = vld [vmem:[#allocation168_spill] sm:$0xff] }
 0x220   : > { %2750 = vmatmul.mubr.bf16.gmra.mrb[72].mxu1 %v6813_v55  ;;  %v8284_v55 = vld [vmem:[%s11207_s3] sm:$0xff]  }
 0x221   : > { %3200 = vmatmul.mubr.bf16.gmra.mrb[8].mxu0 %v6689_v62  ;;  %2757 = vmatprep.mubr.bf16.mxu1 %v6822_v53  ;;  %v6705_v62 = vcombine.low %v12080_v43, %v12079_v39  ;;  %v6838_v53 = vcombine.high %v12082_v22, %v12081_v54  ;;  %v12087_v39 = vld [vmem:[#allocation46_spill] sm:$0xff] }
 0x222   : > { %3207 = vmatprep.mubr.bf16.mxu0 %v6698_v34  ;;  %v6714_v34 = vcombine.high %v12084_v46, %v12083_v30  ;;  %7297 = vmatprep.subr.bf16.mxu1 %v8284_v55  ;;  %v12088_v43 = vld [vmem:[#allocation42_spill] sm:$0xff] }
 0x223   : > { %7298 = vmatpush3.bf16.msra.mxu1 %v8284_v55  ;;  %v6721_v55 = vcombine.low %v12088_v43, %v12087_v39 }
 0x228   : > { %2758 = vmatmul.mubr.bf16.gmra.mrb[76].mxu1 %v6821_v37  ;;  %v6837_v37 = vcombine.low %v12082_v22, %v12081_v54  ;;  %v12090_v54 = vld [vmem:[#allocation176_spill] sm:$0xff] }
 0x229   : > { %3208 = vmatmul.mubr.bf16.gmra.mrb[12].mxu0 %v6697_v50  ;;  %2765 = vmatprep.mubr.bf16.mxu1 %v6830_v25  ;;  %v6713_v50 = vcombine.low %v12084_v46, %v12083_v30  ;;  %v6846_v25 = vcombine.high %v12086_v61, %v12085_v35  ;;  %v12092_v30 = vld [vmem:[#allocation50_spill] sm:$0xff] }
 0x22a   : > { %3215 = vmatprep.mubr.bf16.mxu0 %v6706_v45  ;;  %v6722_v45 = vcombine.high %v12088_v43, %v12087_v39  ;;  %v12095_v39 = vld [vmem:[#allocation62_spill] sm:$0xff] }
 0x22b   : > { %v12096_v43 = vld [vmem:[#allocation58_spill] sm:$0xff] }
 0x230   : > { %2766 = vmatmul.mubr.bf16.gmra.mrb[80].mxu1 %v6829_v1  ;;  %v6845_v1 = vcombine.low %v12086_v61, %v12085_v35  ;;  %v12093_v35 = vld [vmem:[#allocation188_spill] sm:$0xff] }
 0x231   : > { %3216 = vmatmul.mubr.bf16.gmra.mrb[16].mxu0 %v6705_v62  ;;  %2773 = vmatprep.mubr.bf16.mxu1 %v6838_v53  ;;  %v12089_v62 = vld [vmem:[#allocation180_spill] sm:$0xff]  ;;  %v12091_v53 = vld [vmem:[#allocation54_spill] sm:$0xff] }
 0x232   : > { %3223 = vmatprep.mubr.bf16.mxu0 %v6714_v34  ;;  %v6854_v22 = vcombine.high %v12090_v54, %v12089_v62  ;;  %v6730_v46 = vcombine.high %v12092_v30, %v12091_v53  ;;  %v6853_v34 = vcombine.low %v12090_v54, %v12089_v62  ;;  %v12094_v61 = vld [vmem:[#allocation184_spill] sm:$0xff] }
 0x233   : > { %v12097_v62 = vld [vmem:[#allocation196_spill] sm:$0xff] }
 0x234   : > { %v12098_v54 = vld [vmem:[#allocation192_spill] sm:$0xff] }
 0x238   : > { %2774 = vmatmul.mubr.bf16.gmra.mrb[84].mxu1 %v6837_v37  ;;  %v8285_v37 = vld [vmem:[%s11207_s3 + $0x8] sm:$0xff]  }
 0x239   : > { %3224 = vmatmul.mubr.bf16.gmra.mrb[20].mxu0 %v6713_v50  ;;  %2781 = vmatprep.mubr.bf16.mxu1 %v6846_v25  ;;  %v6729_v50 = vcombine.low %v12092_v30, %v12091_v53  ;;  %v6862_v25 = vcombine.high %v12094_v61, %v12093_v35  ;;  %v12099_v53 = vld [vmem:[#allocation70_spill] sm:$0xff] }
 0x23a   : > { %3231 = vmatprep.mubr.bf16.mxu0 %v6722_v45  ;;  %v6738_v45 = vcombine.high %v12096_v43, %v12095_v39  ;;  %7299 = vmatprep.subr.bf16.mxu1 %v8285_v37  ;;  %v12100_v30 = vld [vmem:[#allocation66_spill] sm:$0xff] }
 0x23b   : > { %7300 = vmatpush3.bf16.msra.mxu1 %v8285_v37  ;;  %v6745_v37 = vcombine.low %v12100_v30, %v12099_v53 }
 0x240   : > { %2782 = vmatmul.mubr.bf16.gmra.mrb[88].mxu1 %v6845_v1  ;;  %v6861_v1 = vcombine.low %v12094_v61, %v12093_v35  ;;  %v12102_v35 = vld [vmem:[#allocation200_spill] sm:$0xff] }
 0x241   : > { %3232 = vmatmul.mubr.bf16.gmra.mrb[24].mxu0 %v6721_v55  ;;  %2789 = vmatprep.mubr.bf16.mxu1 %v6854_v22  ;;  %v6737_v55 = vcombine.low %v12096_v43, %v12095_v39  ;;  %v6870_v22 = vcombine.high %v12098_v54, %v12097_v62  ;;  %v12104_v39 = vld [vmem:[#allocation74_spill] sm:$0xff] }
 0x242   : > { %3239 = vmatprep.mubr.bf16.mxu0 %v6730_v46  ;;  %v6746_v46 = vcombine.high %v12100_v30, %v12099_v53  ;;  %v12107_v53 = vld [vmem:[#allocation86_spill] sm:$0xff] }
 0x243   : > { %v12108_v30 = vld [vmem:[#allocation82_spill] sm:$0xff] }
 0x248   : > { %2790 = vmatmul.mubr.bf16.gmra.mrb[92].mxu1 %v6853_v34  ;;  %v6869_v34 = vcombine.low %v12098_v54, %v12097_v62  ;;  %v12105_v62 = vld [vmem:[#allocation212_spill] sm:$0xff] }
 0x249   : > { %3240 = vmatmul.mubr.bf16.gmra.mrb[28].mxu0 %v6729_v50  ;;  %2797 = vmatprep.mubr.bf16.mxu1 %v6862_v25  ;;  %v12101_v50 = vld [vmem:[#allocation204_spill] sm:$0xff]  ;;  %v12103_v25 = vld [vmem:[#allocation78_spill] sm:$0xff] }
 0x24a   : > { %3247 = vmatprep.mubr.bf16.mxu0 %v6738_v45  ;;  %v6878_v61 = vcombine.high %v12102_v35, %v12101_v50  ;;  %v6754_v43 = vcombine.high %v12104_v39, %v12103_v25  ;;  %v8286_v45 = vld [vmem:[%s11207_s3 + $0x10] sm:$0xff]   ;;  %v12106_v54 = vld [vmem:[#allocation208_spill] sm:$0xff] }
 0x24b   : > { %7301 = vmatprep.subr.bf16.mxu1 %v8286_v45 }
 0x24c   : > { %7302 = vmatpush3.bf16.msra.mxu1 %v8286_v45  ;;  %v12112_v45 = vld [vmem:[#allocation90_spill] sm:$0xff] }
 0x250   : > { %2798 = vmatmul.mubr.bf16.gmra.mrb[96].mxu1 %v6861_v1  ;;  %v6877_v1 = vcombine.low %v12102_v35, %v12101_v50  ;;  %v6885_v50 = vcombine.low %v12106_v54, %v12105_v62  ;;  %v6761_v35 = vcombine.low %v12108_v30, %v12107_v53 }
 0x251   : > { %3248 = vmatmul.mubr.bf16.gmra.mrb[32].mxu0 %v6737_v55  ;;  %2805 = vmatprep.mubr.bf16.mxu1 %v6870_v22  ;;  %v6753_v55 = vcombine.low %v12104_v39, %v12103_v25  ;;  %v6886_v22 = vcombine.high %v12106_v54, %v12105_v62  ;;  %v12110_v25 = vld [vmem:[#allocation216_spill] sm:$0xff]  ;;  %v8290_v62 = vld [vmem:[%s11207_s3 + $0x30] sm:$0xff]  }
 0x252   : > { %3255 = vmatprep.mubr.bf16.mxu0 %v6746_v46  ;;  %v6762_v46 = vcombine.high %v12108_v30, %v12107_v53  ;;  %v12113_v53 = vld [vmem:[#allocation228_spill] sm:$0xff] }
 0x253   : > { %v12114_v30 = vld [vmem:[#allocation224_spill] sm:$0xff] }
 0x258   : > { %2806 = vmatmul.mubr.bf16.gmra.mrb[100].mxu1 %v6869_v34  ;;  %v8287_v34 = vld [vmem:[%s11207_s3 + $0x18] sm:$0xff]  }
 0x259   : > { %3256 = vmatmul.mubr.bf16.gmra.mrb[36].mxu0 %v6745_v37  ;;  %2813 = vmatprep.mubr.bf16.mxu1 %v6878_v61  ;;  %v8288_v37 = vld [vmem:[%s11207_s3 + $0x20] sm:$0xff]   ;;  %v12109_v61 = vld [vmem:[#allocation220_spill] sm:$0xff] }
 0x25a   : > { %3263 = vmatprep.mubr.bf16.mxu0 %v6754_v43  ;;  %7303 = vmatprep.subr.bf16.mxu1 %v8287_v34  ;;  %v6894_v39 = vcombine.high %v12110_v25, %v12109_v61  ;;  %v12111_v43 = vld [vmem:[#allocation94_spill] sm:$0xff]  ;;  %v6893_v54 = vcombine.low %v12110_v25, %v12109_v61  ;;  %v6901_v61 = vcombine.low %v12114_v30, %v12113_v53 }
 0x25b   : > { %7304 = vmatpush3.bf16.msra.mxu1 %v8287_v34  ;;  %v12115_v34 = vld [vmem:[#allocation102_spill] sm:$0xff] }
 0x25c   : > { %7305 = vmatprep.subr.bf16.mxu1 %v8288_v37 }
 0x25f   : > { %7306 = vmatpush3.bf16.msra.mxu1 %v8288_v37  ;;  %v12116_v37 = vld [vmem:[#allocation98_spill] sm:$0xff] }
 0x260   : > { %2814 = vmatmul.mubr.bf16.gmra.mrb[104].mxu1 %v6877_v1  ;;  %v6770_v1 = vcombine.high %v12112_v45, %v12111_v43  ;;  %v6777_v25 = vcombine.low %v12116_v37, %v12115_v34 }
 0x261   : > { %3264 = vmatmul.mubr.bf16.gmra.mrb[40].mxu0 %v6753_v55  ;;  %2821 = vmatprep.mubr.bf16.mxu1 %v6886_v22  ;;  %v8289_v55 = vld [vmem:[%s11207_s3 + $0x28] sm:$0xff]   ;;  %v6769_v22 = vcombine.low %v12112_v45, %v12111_v43 }
 0x262   : > { %3271 = vmatprep.mubr.bf16.mxu0 %v6762_v46  ;;  %7307 = vmatprep.subr.bf16.mxu1 %v8289_v55  ;;  %v6902_v46 = vcombine.high %v12114_v30, %v12113_v53  ;;  %v12118_v43 = vld [vmem:[#allocation232_spill] sm:$0xff] }
 0x263   : > { %7308 = vmatpush3.bf16.msra.mxu1 %v8289_v55  ;;  %v12120_v55 = vld [vmem:[#allocation106_spill] sm:$0xff]  ;;  %v12121_v53 = vld [vmem:[#allocation244_spill] sm:$0xff] }
 0x264   : > { %7309 = vmatprep.subr.bf16.mxu1 %v8290_v62  ;;  %v12122_v30 = vld [vmem:[#allocation240_spill] sm:$0xff] }
 0x267   : > { %7310 = vmatpush3.bf16.msra.mxu1 %v8290_v62 }
 0x268   : > { %2822 = vmatmul.mubr.bf16.gmra.mrb[108].mxu1 %v6885_v50  ;;  %v6778_v50 = vcombine.high %v12116_v37, %v12115_v34  ;;  %v12123_v34 = vld [vmem:[#allocation118_spill] sm:$0xff] }
 0x269   : > { %3272 = vmatmul.mubr.bf16.gmra.mrb[44].mxu0 %v6761_v35  ;;  %2829 = vmatprep.mubr.bf16.mxu1 %v6894_v39  ;;  %v8291_v35 = vld [vmem:[%s11207_s3 + $0x38] sm:$0xff]   ;;  %v12117_v39 = vld [vmem:[#allocation236_spill] sm:$0xff] }
 0x26a   : > { %3279 = vmatprep.mubr.bf16.mxu0 %v6770_v1  ;;  %7311 = vmatprep.subr.bf16.mxu1 %v8291_v35  ;;  %v6910_v45 = vcombine.high %v12118_v43, %v12117_v39  ;;  %v12119_v1 = vld [vmem:[#allocation110_spill] sm:$0xff] }
 0x26b   : > { %7312 = vmatpush3.bf16.msra.mxu1 %v8291_v35  ;;  %v6786_v62 = vcombine.high %v12120_v55, %v12119_v1  ;;  %v12124_v37 = vld [vmem:[#allocation114_spill] sm:$0xff]  ;;  %v6917_v35 = vcombine.low %v12122_v30, %v12121_v53 }
 0x270   : > { %2830 = vmatmul.mubr.bf16.gmra.mrb[112].mxu1 %v6893_v54  ;;  %v6909_v54 = vcombine.low %v12118_v43, %v12117_v39  ;;  %v12126_v39 = vld [vmem:[#allocation122_spill] sm:$0xff] }
 0x271   : > { %3280 = vmatmul.mubr.bf16.gmra.mrb[48].mxu0 %v6769_v22  ;;  %2837 = vmatprep.mubr.bf16.mxu1 %v6902_v46  ;;  %v6785_v22 = vcombine.low %v12120_v55, %v12119_v1  ;;  %v6918_v46 = vcombine.high %v12122_v30, %v12121_v53  ;;  %v12127_v1 = vld [vmem:[#allocation134_spill] sm:$0xff] }
 0x272   : > { %3287 = vmatprep.mubr.bf16.mxu0 %v6778_v50  ;;  %v6794_v50 = vcombine.high %v12124_v37, %v12123_v34  ;;  %v12128_v55 = vld [vmem:[#allocation130_spill] sm:$0xff] }
 0x273   : > { %v12130_v53 = vld [vmem:[#allocation138_spill] sm:$0xff] }
 0x278   : > { %2838 = vmatmul.mubr.bf16.gmra.mrb[116].mxu1 %v6901_v61  ;;  %v6793_v61 = vcombine.low %v12124_v37, %v12123_v34  ;;  %v12131_v34 = vld [vmem:[#allocation150_spill] sm:$0xff] }
 0x279   : > { %3288 = vmatmul.mubr.bf16.gmra.mrb[52].mxu0 %v6777_v25  ;;  %2845 = vmatprep.mubr.bf16.mxu1 %v6910_v45  ;;  %v12125_v25 = vld [vmem:[#allocation126_spill] sm:$0xff] }
 0x27a   : > { %3295 = vmatprep.mubr.bf16.mxu0 %v6786_v62  ;;  %v6802_v43 = vcombine.high %v12126_v39, %v12125_v25  ;;  %v6801_v45 = vcombine.low %v12126_v39, %v12125_v25  ;;  %v6810_v62 = vcombine.high %v12128_v55, %v12127_v1  ;;  %v12132_v37 = vld [vmem:[#allocation146_spill] sm:$0xff] }
 0x27b   : > { %v6825_v39 = vcombine.low %v12132_v37, %v12131_v34 }
 0x280   : > { %2846 = vmatmul.mubr.bf16.gmra.mrb[120].mxu1 %v6909_v54  ;;  %v6809_v54 = vcombine.low %v12128_v55, %v12127_v1  ;;  %v12134_v1 = vld [vmem:[#allocation154_spill] sm:$0xff] }
 0x281   : > { %3296 = vmatmul.mubr.bf16.gmra.mrb[56].mxu0 %v6785_v22  ;;  %2853 = vmatprep.mubr.bf16.mxu1 %v6918_v46  ;;  %v12129_v22 = vld [vmem:[#allocation142_spill] sm:$0xff] }
 0x282   : > { %3303 = vmatprep.mubr.bf16.mxu0 %v6794_v50  ;;  %v6818_v30 = vcombine.high %v12130_v53, %v12129_v22  ;;  %v6817_v46 = vcombine.low %v12130_v53, %v12129_v22  ;;  %v6826_v50 = vcombine.high %v12132_v37, %v12131_v34 }
 0x288   : > { %2854 = vmatmul.mubr.bf16.gmra.mrb[124].mxu1 %v6917_v35 }
 0x289   : > { %3304 = vmatmul.mubr.bf16.gmra.mrb[60].mxu0 %v6793_v61 }
 0x28a   : > { %3311 = vmatprep.mubr.bf16.mxu0 %v6802_v43 }
 0x291   : > { %3312 = vmatmul.mubr.bf16.gmra.mrb[64].mxu0 %v6801_v45  ;;  %v12133_v45 = vld [vmem:[#allocation158_spill] sm:$0xff] }
 0x292   : > { %3319 = vmatprep.mubr.bf16.mxu0 %v6810_v62  ;;  %v6834_v55 = vcombine.high %v12134_v1, %v12133_v45  ;;  %v6833_v53 = vcombine.low %v12134_v1, %v12133_v45 }
 0x299   : > { %3320 = vmatmul.mubr.bf16.gmra.mrb[68].mxu0 %v6809_v54 }
 0x29a   : > { %3327 = vmatprep.mubr.bf16.mxu0 %v6818_v30 }
 0x2a1   : > { %3328 = vmatmul.mubr.bf16.gmra.mrb[72].mxu0 %v6817_v46  ;;  %v12135_v46 = vld [vmem:[#allocation166_spill] sm:$0xff] }
 0x2a2   : > { %3335 = vmatprep.mubr.bf16.mxu0 %v6826_v50  ;;  %v12136_v50 = vld [vmem:[#allocation162_spill] sm:$0xff] }
 0x2a3   : > { %v10036_v35 = vpop.f32.mrb[32].mxu1 }
 0x2a4   : > { %v2673_v61 = vpop.f32.mrb[33].mxu1 }
 0x2a5   : > { %v10038_v25 = vpop.f32.mrb[34].mxu1  ;;  %v6842_v61 = vcombine.high %v12136_v50, %v12135_v46 }
 0x2a6   : > { %v2676_v43 = vpop.f32.mrb[35].mxu1 }
 0x2a9   : > { %3336 = vmatmul.mubr.bf16.gmra.mrb[76].mxu0 %v6825_v39  ;;  %v6841_v39 = vcombine.low %v12136_v50, %v12135_v46 }
 0x2aa   : > { %3343 = vmatprep.mubr.bf16.mxu0 %v6834_v55 }
 0x2ab   : > { %v10044_v62 = vpop.f32.mrb[36].mxu1 }
 0x2ac   : > { %v2681_v54 = vpop.f32.mrb[37].mxu1 }
 0x2ad   : > { %v10046_v22 = vpop.f32.mrb[38].mxu1  ;;  %v12137_v54 = vld [vmem:[#allocation174_spill] sm:$0xff] }
 0x2ae   : > { %v2684_v30 = vpop.f32.mrb[39].mxu1  ;;  %v6850_v17 = vcombine.high %v12138_v29, %v12137_v54 }
 0x2b1   : > { %3344 = vmatmul.mubr.bf16.gmra.mrb[80].mxu0 %v6833_v53  ;;  %v6849_v53 = vcombine.low %v12138_v29, %v12137_v54 }
 0x2b2   : > { %3351 = vmatprep.mubr.bf16.mxu0 %v6842_v61 }
 0x2b3   : > { %v10052_v34 = vpop.f32.mrb[40].mxu1 }
 0x2b4   : > { %v2689_v37 = vpop.f32.mrb[41].mxu1 }
 0x2b5   : > { %v10054_v43 = vpop.f32.mrb[42].mxu1  ;;  %v12139_v37 = vld [vmem:[#allocation182_spill] sm:$0xff] }
 0x2b6   : > { %v2692_v55 = vpop.f32.mrb[43].mxu1  ;;  %v6858_v9 = vcombine.high %v12140_v21, %v12139_v37 }
 0x2b9   : > { %3352 = vmatmul.mubr.bf16.gmra.mrb[84].mxu0 %v6841_v39 }
 0x2ba   : > { %3359 = vmatprep.mubr.bf16.mxu0 %v6850_v17  ;;  %v6857_v17 = vcombine.low %v12140_v21, %v12139_v37 }
 0x2bb   : > { %v10060_v45 = vpop.f32.mrb[44].mxu1 }
 0x2bc   : > { %v2697_v1 = vpop.f32.mrb[45].mxu1 }
 0x2bd   : > { %v10062_v30 = vpop.f32.mrb[46].mxu1  ;;  %v12141_v1 = vld [vmem:[#allocation190_spill] sm:$0xff] }
 0x2be   : > { %v2700_v61 = vpop.f32.mrb[47].mxu1  ;;  %v6866_v5 = vcombine.high %v12142_v13, %v12141_v1 }
 0x2c1   : > { %3360 = vmatmul.mubr.bf16.gmra.mrb[88].mxu0 %v6849_v53 }
 0x2c2   : > { %3367 = vmatprep.mubr.bf16.mxu0 %v6858_v9  ;;  %v6865_v9 = vcombine.low %v12142_v13, %v12141_v1 }
 0x2c3   : > { %v10068_v46 = vpop.f32.mrb[48].mxu1 }
 0x2c4   : > { %v2705_v50 = vpop.f32.mrb[49].mxu1 }
 0x2c5   : > { %v10070_v55 = vpop.f32.mrb[50].mxu1  ;;  %v12143_v50 = vld [vmem:[#allocation198_spill] sm:$0xff] }
 0x2c6   : > { %v2708_v39 = vpop.f32.mrb[51].mxu1  ;;  %v6874_v27 = vcombine.high %v12144_v11, %v12143_v50 }
 0x2c9   : > { %3368 = vmatmul.mubr.bf16.gmra.mrb[92].mxu0 %v6857_v17 }
 0x2ca   : > { %3375 = vmatprep.mubr.bf16.mxu0 %v6866_v5  ;;  %v6873_v5 = vcombine.low %v12144_v11, %v12143_v50  ;;  %v10103_v11 = vld [vmem:[%s11206_s2] ss:$0 sm:$0xff] }
 0x2cb   : > { %v10076_v29 = vpop.f32.mrb[52].mxu1 }
 0x2cc   : > { %v2713_v54 = vpop.f32.mrb[53].mxu1 }
 0x2cd   : > { %v10078_v61 = vpop.f32.mrb[54].mxu1  ;;  %v12145_v54 = vld [vmem:[#allocation206_spill] sm:$0xff] }
 0x2ce   : > { %v2716_v53 = vpop.f32.mrb[55].mxu1  ;;  %v6882_v51 = vcombine.high %v12146_v23, %v12145_v54 }
 0x2d1   : > { %3376 = vmatmul.mubr.bf16.gmra.mrb[96].mxu0 %v6865_v9 }
 0x2d2   : > { %3383 = vmatprep.mubr.bf16.mxu0 %v6874_v27  ;;  %v6881_v27 = vcombine.low %v12146_v23, %v12145_v54  ;;  %v2322_v23 = vadd.f32 %v10103_v11, %v9746_v18  ;;  %v2327_v18 = vadd.f32 %v10103_v11, %v9750_v3  ;;  %v12152_v3 = vld [vmem:[#allocation226_spill] sm:$0xff] }
 0x2d3   : > { %v10084_v21 = vpop.f32.mrb[56].mxu1 }
 0x2d4   : > { %v2721_v37 = vpop.f32.mrb[57].mxu1 }
 0x2d5   : > { %v10086_v39 = vpop.f32.mrb[58].mxu1  ;;  %v12147_v37 = vld [vmem:[#allocation214_spill] sm:$0xff] }
 0x2d6   : > { %v2724_v17 = vpop.f32.mrb[59].mxu1  ;;  %v6890_v56 = vcombine.high %v12148_v47, %v12147_v37  ;;  %v6889_v60 = vcombine.low %v12148_v47, %v12147_v37  ;;  %v2330_v47 = vadd.f32 %v10103_v11, %v9758_v19  ;;  %v2335_v19 = vadd.f32 %v10103_v11, %v9762_v26  ;;  %v12154_v26 = vld [vmem:[#allocation234_spill] sm:$0xff] }
 0x2d9   : > { %3384 = vmatmul.mubr.bf16.gmra.mrb[100].mxu0 %v6873_v5 }
 0x2da   : > { %3391 = vmatprep.mubr.bf16.mxu0 %v6882_v51  ;;  %v2319_v51 = vadd.f32 %v10103_v11, %v9738_v7 }
 0x2db   : > { %v10092_v13 = vpop.f32.mrb[60].mxu1 }
 0x2dc   : > { %v2729_v1 = vpop.f32.mrb[61].mxu1 }
 0x2dd   : > { %v10094_v53 = vpop.f32.mrb[62].mxu1 }
 0x2de   : > { %v2732_v9 = vpop.f32.mrb[63].mxu1 }
 0x2e1   : > { %3392 = vmatmul.mubr.bf16.gmra.mrb[104].mxu0 %v6881_v27 }
 0x2e2   : > { %3399 = vmatprep.mubr.bf16.mxu0 %v6890_v56  ;;  %v12149_v56 = vld [vmem:[#allocation222_spill] sm:$0xff] }
 0x2e3   : > { %v10107_v50 = vpop.f32.mrb[64].mxu1  ;;  %v6898_v40 = vcombine.high %v12150_v52, %v12149_v56 }
 0x2e4   : > { %v3185_v5 = vpop.f32.mrb[0].mxu0  ;;  %v2737_v17 = vpop.f32.mrb[65].mxu1 }
 0x2e5   : > { %v7410_v54 = vadd.f32 %v3185_v5, %v2319_v51  ;;  %v3187_v1 = vpop.f32.mrb[1].mxu0  ;;  %v10111_v9 = vpop.f32.mrb[66].mxu1 }
 0x2e6   : > { %v3188_v48 = vpop.f32.mrb[2].mxu0  ;;  %v2740_v27 = vpop.f32.mrb[67].mxu1 }
 0x2e7   : > { %v7412_v7 = vadd.f32 %v3188_v48, %v2322_v23  ;;  %v3190_v44 = vpop.f32.mrb[3].mxu0  ;;  %v3440_v32 = vmax.f32 %v7410_v54, 0.0  ;;  %v12151_v23 = vld [vmem:[#allocation230_spill] sm:$0xff] }
 0x2e8   : > { %v6897_v44 = vcombine.low %v12150_v52, %v12149_v56  ;;  %v2338_v52 = vadd.f32 %v10103_v11, %v9770_v63  ;;  %v2343_v63 = vadd.f32 %v10103_v11, %v9774_v42  ;;  %v12156_v42 = vld [vmem:[#allocation242_spill] sm:$0xff] }
 0x2e9   : > { %v3441_v36 = vmax.f32 %v7412_v7, 0.0  ;;  %3400 = vmatmul.mubr.bf16.gmra.mrb[108].mxu0 %v6889_v60 }
 0x2ea   : > { %3407 = vmatprep.mubr.bf16.mxu0 %v6898_v40 }
 0x2eb   : > { %v3504_v51 = vpack.c.bf16 %v3441_v36, %v3440_v32  ;;  %v10119_v5 = vpop.f32.mrb[68].mxu1  ;;  %v6906_v32 = vcombine.high %v12152_v3, %v12151_v23 }
 0x2ec   : > { %v3193_v17 = vpop.f32.mrb[4].mxu0  ;;  %v2745_v1 = vpop.f32.mrb[69].mxu1 }
 0x2ed   : > { %v7414_v37 = vadd.f32 %v3193_v17, %v2327_v18  ;;  %v3195_v27 = vpop.f32.mrb[5].mxu0  ;;  %7313 = vmatprep.mubr.bf16.mxu1 %v3504_v51  ;;  %v10123_v48 = vpop.f32.mrb[70].mxu1 }
 0x2ee   : > { %v3196_v40 = vpop.f32.mrb[6].mxu0  ;;  %v2748_v60 = vpop.f32.mrb[71].mxu1 }
 0x2ef   : > { %v7416_v36 = vadd.f32 %v3196_v40, %v2330_v47  ;;  %v3198_v54 = vpop.f32.mrb[7].mxu0  ;;  %v3442_v7 = vmax.f32 %v7414_v37, 0.0  ;;  %v6905_v37 = vcombine.low %v12152_v3, %v12151_v23  ;;  %v2346_v23 = vadd.f32 %v10103_v11, %v9782_v15 }
 0x2f0   : > { %v2351_v15 = vadd.f32 %v10103_v11, %v9786_v58 }
 0x2f1   : > { %v3443_v1 = vmax.f32 %v7416_v36, 0.0  ;;  %3408 = vmatmul.mubr.bf16.gmra.mrb[112].mxu0 %v6897_v44 }
 0x2f2   : > { %3415 = vmatprep.mubr.bf16.mxu0 %v6906_v32  ;;  %v12153_v32 = vld [vmem:[#allocation238_spill] sm:$0xff] }
 0x2f3   : > { %v3505_v18 = vpack.c.bf16 %v3443_v1, %v3442_v7  ;;  %v10131_v51 = vpop.f32.mrb[72].mxu1  ;;  %v6914_v36 = vcombine.high %v12154_v26, %v12153_v32 }
 0x2f4   : > { %v3201_v17 = vpop.f32.mrb[8].mxu0  ;;  %v2753_v27 = vpop.f32.mrb[73].mxu1 }
 0x2f5   : > { %v7418_v56 = vadd.f32 %v3201_v17, %v2335_v19  ;;  %v3203_v60 = vpop.f32.mrb[9].mxu0  ;;  %7314 = vmatmul.mubr.bf16.vlgmr.msra.gmra.mrb[128].mxu1 %v3505_v18  ;;  %v10135_v47 = vpop.f32.mrb[74].mxu1 }
 0x2f6   : > { %v3204_v44 = vpop.f32.mrb[10].mxu0  ;;  %v2756_v40 = vpop.f32.mrb[75].mxu1 }
 0x2f7   : > { %v7420_v54 = vadd.f32 %v3204_v44, %v2338_v52  ;;  %v3206_v7 = vpop.f32.mrb[11].mxu0  ;;  %v3444_v1 = vmax.f32 %v7418_v56, 0.0  ;;  %v6913_v56 = vcombine.low %v12154_v26, %v12153_v32  ;;  %v2354_v32 = vadd.f32 %v10103_v11, %v9794_v57 }
 0x2f9   : > { %v3445_v27 = vmax.f32 %v7420_v54, 0.0  ;;  %3416 = vmatmul.mubr.bf16.gmra.mrb[116].mxu0 %v6905_v37 }
 0x2fa   : > { %3423 = vmatprep.mubr.bf16.mxu0 %v6914_v36  ;;  %v12155_v36 = vld [vmem:[#allocation246_spill] sm:$0xff] }
 0x2fb   : > { %v3506_v19 = vpack.c.bf16 %v3445_v27, %v3444_v1  ;;  %v10143_v18 = vpop.f32.mrb[76].mxu1  ;;  %v6922_v54 = vcombine.high %v12156_v42, %v12155_v36 }
 0x2fc   : > { %v3209_v17 = vpop.f32.mrb[12].mxu0  ;;  %v2761_v60 = vpop.f32.mrb[77].mxu1 }
 0x2fd   : > { %v7422_v3 = vadd.f32 %v3209_v17, %v2343_v63  ;;  %v3211_v40 = vpop.f32.mrb[13].mxu0  ;;  %7317 = vmatprep.mubr.bf16.mxu1 %v3506_v19  ;;  %v10147_v52 = vpop.f32.mrb[78].mxu1 }
 0x2fe   : > { %v3212_v37 = vpop.f32.mrb[14].mxu0  ;;  %v2764_v44 = vpop.f32.mrb[79].mxu1 }
 0x2ff   : > { %v7424_v7 = vadd.f32 %v3212_v37, %v2346_v23  ;;  %v3214_v1 = vpop.f32.mrb[15].mxu0  ;;  %v3446_v27 = vmax.f32 %v7422_v3, 0.0  ;;  %v6921_v3 = vcombine.low %v12156_v42, %v12155_v36 }
 0x301   : > { %v3447_v60 = vmax.f32 %v7424_v7, 0.0  ;;  %3424 = vmatmul.mubr.bf16.gmra.mrb[120].mxu0 %v6913_v56 }
 0x302   : > { %3431 = vmatprep.mubr.bf16.mxu0 %v6922_v54 }
 0x303   : > { %v3507_v63 = vpack.c.bf16 %v3447_v60, %v3446_v27  ;;  %v10155_v19 = vpop.f32.mrb[80].mxu1  ;;  %v2359_v27 = vadd.f32 %v10103_v11, %v9798_v31  ;;  %v2367_v31 = vadd.f32 %v10103_v11, %v9810_v38  ;;  %v2375_v38 = vadd.f32 %v10103_v11, %v9822_v59 }
 0x304   : > { %v3217_v17 = vpop.f32.mrb[16].mxu0  ;;  %v2769_v40 = vpop.f32.mrb[81].mxu1  ;;  %v7441_v59 = vadd.f32 %v10103_v11, %v10036_v35  ;;  %v7445_v35 = vadd.f32 %v10103_v11, %v10044_v62  ;;  %v7449_v62 = vadd.f32 %v10103_v11, %v10052_v34  ;;  %v7453_v34 = vadd.f32 %v10103_v11, %v10060_v45 }
 0x305   : > { %v7426_v26 = vadd.f32 %v3217_v17, %v2351_v15  ;;  %v3219_v44 = vpop.f32.mrb[17].mxu0  ;;  %7318 = vmatmul.mubr.bf16.gmra.mrb[132].mxu1 %v3507_v63  ;;  %v10159_v23 = vpop.f32.mrb[82].mxu1  ;;  %v2362_v17 = vadd.f32 %v10103_v11, %v9806_v49  ;;  %v2370_v49 = vadd.f32 %v10103_v11, %v9818_v41  ;;  %v2378_v41 = vadd.f32 %v10103_v11, %v9830_v33 }
 0x306   : > { %v3220_v56 = vpop.f32.mrb[18].mxu0  ;;  %v2772_v37 = vpop.f32.mrb[83].mxu1  ;;  %v7443_v33 = vadd.f32 %v10103_v11, %v10038_v25  ;;  %v7447_v25 = vadd.f32 %v10103_v11, %v10046_v22  ;;  %v7451_v22 = vadd.f32 %v10103_v11, %v10054_v43  ;;  %v7455_v43 = vadd.f32 %v10103_v11, %v10062_v30 }
 0x307   : > { %v7428_v54 = vadd.f32 %v3220_v56, %v2354_v32  ;;  %v3222_v58 = vpop.f32.mrb[19].mxu0  ;;  %v3448_v7 = vmax.f32 %v7426_v26, 0.0  ;;  %v7457_v45 = vadd.f32 %v10103_v11, %v10068_v46  ;;  %v7459_v30 = vadd.f32 %v10103_v11, %v10070_v55 }
 0x308   : > { %v7461_v46 = vadd.f32 %v10103_v11, %v10076_v29  ;;  %v7463_v55 = vadd.f32 %v10103_v11, %v10078_v61  ;;  %v7465_v29 = vadd.f32 %v10103_v11, %v10084_v21  ;;  %v7467_v61 = vadd.f32 %v10103_v11, %v10086_v39 }
 0x309   : > { %v3449_v1 = vmax.f32 %v7428_v54, 0.0  ;;  %3432 = vmatmul.mubr.bf16.gmra.mrb[124].mxu0 %v6921_v3  ;;  %v7469_v21 = vadd.f32 %v10103_v11, %v10092_v13  ;;  %v7471_v39 = vadd.f32 %v10103_v11, %v10094_v53  ;;  %v7473_v13 = vadd.f32 %v10103_v11, %v10107_v50 }
 0x30a   : > { %v7479_v50 = vadd.f32 %v10103_v11, %v10123_v48 }
 0x30b   : > { %v3508_v60 = vpack.c.bf16 %v3449_v1, %v3448_v7  ;;  %v10165_v57 = vpop.f32.mrb[84].mxu1 }
 0x30c   : > { %v3225_v15 = vpop.f32.mrb[20].mxu0  ;;  %v2777_v63 = vpop.f32.mrb[85].mxu1 }
 0x30d   : > { %v7430_v40 = vadd.f32 %v3225_v15, %v2359_v27  ;;  %v3227_v36 = vpop.f32.mrb[21].mxu0  ;;  %7321 = vmatprep.mubr.bf16.mxu1 %v3508_v60  ;;  %v10169_v42 = vpop.f32.mrb[86].mxu1 }
 0x30e   : > { %v3228_v32 = vpop.f32.mrb[22].mxu0  ;;  %v2780_v26 = vpop.f32.mrb[87].mxu1 }
 0x30f   : > { %v7432_v44 = vadd.f32 %v3228_v32, %v2362_v17  ;;  %v3230_v3 = vpop.f32.mrb[23].mxu0  ;;  %v3450_v56 = vmax.f32 %v7430_v40, 0.0 }
 0x311   : > { %v3451_v37 = vmax.f32 %v7432_v44, 0.0 }
 0x313   : > { %v3509_v54 = vpack.c.bf16 %v3451_v37, %v3450_v56  ;;  %v10173_v58 = vpop.f32.mrb[88].mxu1 }
 0x314   : > { %v3233_v7 = vpop.f32.mrb[24].mxu0  ;;  %v2785_v1 = vpop.f32.mrb[89].mxu1 }
 0x315   : > { %v7434_v27 = vadd.f32 %v3233_v7, %v2367_v31  ;;  %v3235_v60 = vpop.f32.mrb[25].mxu0  ;;  %7322 = vmatmul.mubr.bf16.gmra.mrb[136].mxu1 %v3509_v54  ;;  %v10177_v15 = vpop.f32.mrb[90].mxu1 }
 0x316   : > { %v3236_v63 = vpop.f32.mrb[26].mxu0  ;;  %v2788_v17 = vpop.f32.mrb[91].mxu1 }
 0x317   : > { %v7436_v40 = vadd.f32 %v3236_v63, %v2370_v49  ;;  %v3238_v36 = vpop.f32.mrb[27].mxu0  ;;  %v3452_v32 = vmax.f32 %v7434_v27, 0.0 }
 0x319   : > { %v3453_v26 = vmax.f32 %v7436_v40, 0.0 }
 0x31b   : > { %v3510_v44 = vpack.c.bf16 %v3453_v26, %v3452_v32  ;;  %v10181_v3 = vpop.f32.mrb[92].mxu1 }
 0x31c   : > { %v3241_v56 = vpop.f32.mrb[28].mxu0  ;;  %v2793_v37 = vpop.f32.mrb[93].mxu1 }
 0x31d   : > { %v7438_v31 = vadd.f32 %v3241_v56, %v2375_v38  ;;  %v3243_v54 = vpop.f32.mrb[29].mxu0  ;;  %7325 = vmatprep.mubr.bf16.mxu1 %v3510_v44  ;;  %v10185_v7 = vpop.f32.mrb[94].mxu1 }
 0x31e   : > { %v3244_v1 = vpop.f32.mrb[30].mxu0  ;;  %v2796_v49 = vpop.f32.mrb[95].mxu1 }
 0x31f   : > { %v7440_v27 = vadd.f32 %v3244_v1, %v2378_v41  ;;  %v3246_v60 = vpop.f32.mrb[31].mxu0  ;;  %v3454_v63 = vmax.f32 %v7438_v31, 0.0 }
 0x321   : > { %v3455_v17 = vmax.f32 %v7440_v27, 0.0 }
 0x323   : > { %v3511_v40 = vpack.c.bf16 %v3455_v17, %v3454_v63  ;;  %v10189_v36 = vpop.f32.mrb[96].mxu1 }
 0x324   : > { %v3249_v32 = vpop.f32.mrb[32].mxu0  ;;  %v2801_v26 = vpop.f32.mrb[97].mxu1 }
 0x325   : > { %v7442_v38 = vadd.f32 %v7441_v59, %v3249_v32  ;;  %v3251_v44 = vpop.f32.mrb[33].mxu0  ;;  %7326 = vmatmul.mubr.bf16.gmra.mrb[140].mxu1 %v3511_v40  ;;  %v10193_v56 = vpop.f32.mrb[98].mxu1 }
 0x326   : > { %v3252_v37 = vpop.f32.mrb[34].mxu0  ;;  %v2804_v41 = vpop.f32.mrb[99].mxu1 }
 0x327   : > { %v7444_v31 = vadd.f32 %v7443_v33, %v3252_v37  ;;  %v3254_v54 = vpop.f32.mrb[35].mxu0  ;;  %v3456_v1 = vmax.f32 %v7442_v38, 0.0 }
 0x329   : > { %v3457_v49 = vmax.f32 %v7444_v31, 0.0 }
 0x32b   : > { %v3512_v27 = vpack.c.bf16 %v3457_v49, %v3456_v1  ;;  %v10197_v60 = vpop.f32.mrb[100].mxu1 }
 0x32c   : > { %v3257_v63 = vpop.f32.mrb[36].mxu0  ;;  %v2809_v17 = vpop.f32.mrb[101].mxu1 }
 0x32d   : > { %v7446_v59 = vadd.f32 %v7445_v35, %v3257_v63  ;;  %v3259_v40 = vpop.f32.mrb[37].mxu0  ;;  %7329 = vmatprep.mubr.bf16.mxu1 %v3512_v27  ;;  %v10201_v32 = vpop.f32.mrb[102].mxu1 }
 0x32e   : > { %v3260_v26 = vpop.f32.mrb[38].mxu0  ;;  %v2812_v33 = vpop.f32.mrb[103].mxu1 }
 0x32f   : > { %v7448_v38 = vadd.f32 %v7447_v25, %v3260_v26  ;;  %v3262_v44 = vpop.f32.mrb[39].mxu0  ;;  %v3458_v37 = vmax.f32 %v7446_v59, 0.0 }
 0x331   : > { %v3459_v41 = vmax.f32 %v7448_v38, 0.0 }
 0x333   : > { %v3513_v31 = vpack.c.bf16 %v3459_v41, %v3458_v37  ;;  %v10205_v54 = vpop.f32.mrb[104].mxu1 }
 0x334   : > { %v3265_v1 = vpop.f32.mrb[40].mxu0  ;;  %v2817_v49 = vpop.f32.mrb[105].mxu1 }
 0x335   : > { %v7450_v35 = vadd.f32 %v7449_v62, %v3265_v1  ;;  %v3267_v27 = vpop.f32.mrb[41].mxu0  ;;  %7330 = vmatmul.mubr.bf16.gmra.mrb[144].mxu1 %v3513_v31  ;;  %v10209_v63 = vpop.f32.mrb[106].mxu1 }
 0x336   : > { %v3268_v17 = vpop.f32.mrb[42].mxu0  ;;  %v2820_v25 = vpop.f32.mrb[107].mxu1 }
 0x337   : > { %v7452_v59 = vadd.f32 %v7451_v22, %v3268_v17  ;;  %v3270_v40 = vpop.f32.mrb[43].mxu0  ;;  %v3460_v26 = vmax.f32 %v7450_v35, 0.0 }
 0x339   : > { %v3461_v33 = vmax.f32 %v7452_v59, 0.0 }
 0x33b   : > { %v3514_v38 = vpack.c.bf16 %v3461_v33, %v3460_v26  ;;  %v10213_v44 = vpop.f32.mrb[108].mxu1 }
 0x33c   : > { %v3273_v37 = vpop.f32.mrb[44].mxu0  ;;  %v2825_v41 = vpop.f32.mrb[109].mxu1 }
 0x33d   : > { %v7454_v62 = vadd.f32 %v7453_v34, %v3273_v37  ;;  %v3275_v31 = vpop.f32.mrb[45].mxu0  ;;  %7333 = vmatprep.mubr.bf16.mxu1 %v3514_v38  ;;  %v10217_v1 = vpop.f32.mrb[110].mxu1 }
 0x33e   : > { %v3276_v49 = vpop.f32.mrb[46].mxu0  ;;  %v2828_v22 = vpop.f32.mrb[111].mxu1 }
 0x33f   : > { %v7456_v35 = vadd.f32 %v7455_v43, %v3276_v49  ;;  %v3278_v27 = vpop.f32.mrb[47].mxu0  ;;  %v3462_v17 = vmax.f32 %v7454_v62, 0.0 }
 0x341   : > { %v3463_v25 = vmax.f32 %v7456_v35, 0.0 }
 0x343   : > { %v3515_v59 = vpack.c.bf16 %v3463_v25, %v3462_v17  ;;  %v10221_v40 = vpop.f32.mrb[112].mxu1 }
 0x344   : > { %v3281_v26 = vpop.f32.mrb[48].mxu0  ;;  %v2833_v33 = vpop.f32.mrb[113].mxu1 }
 0x345   : > { %v7458_v34 = vadd.f32 %v7457_v45, %v3281_v26  ;;  %v3283_v38 = vpop.f32.mrb[49].mxu0  ;;  %7334 = vmatmul.mubr.bf16.gmra.mrb[148].mxu1 %v3515_v59  ;;  %v10225_v37 = vpop.f32.mrb[114].mxu1 }
 0x346   : > { %v3284_v41 = vpop.f32.mrb[50].mxu0  ;;  %v2836_v43 = vpop.f32.mrb[115].mxu1 }
 0x347   : > { %v7460_v62 = vadd.f32 %v7459_v30, %v3284_v41  ;;  %v3286_v31 = vpop.f32.mrb[51].mxu0  ;;  %v3464_v49 = vmax.f32 %v7458_v34, 0.0 }
 0x349   : > { %v3465_v22 = vmax.f32 %v7460_v62, 0.0 }
 0x34b   : > { %v3516_v35 = vpack.c.bf16 %v3465_v22, %v3464_v49  ;;  %v10229_v27 = vpop.f32.mrb[116].mxu1 }
 0x34c   : > { %v3289_v17 = vpop.f32.mrb[52].mxu0  ;;  %v2841_v25 = vpop.f32.mrb[117].mxu1 }
 0x34d   : > { %v7462_v45 = vadd.f32 %v7461_v46, %v3289_v17  ;;  %v3291_v59 = vpop.f32.mrb[53].mxu0  ;;  %7337 = vmatprep.mubr.bf16.mxu1 %v3516_v35  ;;  %v10233_v26 = vpop.f32.mrb[118].mxu1 }
 0x34e   : > { %v3292_v33 = vpop.f32.mrb[54].mxu0  ;;  %v2844_v30 = vpop.f32.mrb[119].mxu1 }
 0x34f   : > { %v7464_v34 = vadd.f32 %v7463_v55, %v3292_v33  ;;  %v3294_v38 = vpop.f32.mrb[55].mxu0  ;;  %v3466_v41 = vmax.f32 %v7462_v45, 0.0 }
 0x351   : > { %v3467_v43 = vmax.f32 %v7464_v34, 0.0 }
 0x353   : > { %v3517_v62 = vpack.c.bf16 %v3467_v43, %v3466_v41  ;;  %v10237_v31 = vpop.f32.mrb[120].mxu1 }
 0x354   : > { %v3297_v49 = vpop.f32.mrb[56].mxu0  ;;  %v2849_v22 = vpop.f32.mrb[121].mxu1 }
 0x355   : > { %v7466_v46 = vadd.f32 %v7465_v29, %v3297_v49  ;;  %v3299_v35 = vpop.f32.mrb[57].mxu0  ;;  %7338 = vmatmul.mubr.bf16.gmra.mrb[152].mxu1 %v3517_v62  ;;  %v10241_v17 = vpop.f32.mrb[122].mxu1 }
 0x356   : > { %v3300_v25 = vpop.f32.mrb[58].mxu0  ;;  %v2852_v55 = vpop.f32.mrb[123].mxu1 }
 0x357   : > { %v7468_v45 = vadd.f32 %v7467_v61, %v3300_v25  ;;  %v3302_v59 = vpop.f32.mrb[59].mxu0  ;;  %v3468_v33 = vmax.f32 %v7466_v46, 0.0 }
 0x359   : > { %v3469_v30 = vmax.f32 %v7468_v45, 0.0 }
 0x35b   : > { %v3518_v34 = vpack.c.bf16 %v3469_v30, %v3468_v33  ;;  %v10245_v38 = vpop.f32.mrb[124].mxu1  ;;  %v7475_v33 = vadd.f32 %v10103_v11, %v10111_v9 }
 0x35c   : > { %v3305_v41 = vpop.f32.mrb[60].mxu0  ;;  %v2857_v43 = vpop.f32.mrb[125].mxu1 }
 0x35d   : > { %v7470_v29 = vadd.f32 %v7469_v21, %v3305_v41  ;;  %v3307_v62 = vpop.f32.mrb[61].mxu0  ;;  %7341 = vmatprep.mubr.bf16.mxu1 %v3518_v34  ;;  %v10249_v49 = vpop.f32.mrb[126].mxu1 }
 0x35e   : > { %v3308_v22 = vpop.f32.mrb[62].mxu0  ;;  %v2860_v61 = vpop.f32.mrb[127].mxu1 }
 0x35f   : > { %v7472_v46 = vadd.f32 %v7471_v39, %v3308_v22  ;;  %v3310_v35 = vpop.f32.mrb[63].mxu0  ;;  %v3470_v25 = vmax.f32 %v7470_v29, 0.0  ;;  %v7477_v39 = vadd.f32 %v10103_v11, %v10119_v5  ;;  %v7483_v5 = vadd.f32 %v10103_v11, %v10135_v47 }
 0x361   : > { %v3471_v55 = vmax.f32 %v7472_v46, 0.0 }
 0x363   : > { %v3519_v45 = vpack.c.bf16 %v3471_v55, %v3470_v25 }
 0x364   : > { %v3313_v59 = vpop.f32.mrb[64].mxu0 }
 0x365   : > { %v7474_v53 = vadd.f32 %v7473_v13, %v3313_v59  ;;  %v3315_v30 = vpop.f32.mrb[65].mxu0  ;;  %7342 = vmatmul.mubr.bf16.gmra.mrb[156].mxu1 %v3519_v45  ;;  %v7481_v45 = vadd.f32 %v10103_v11, %v10131_v51  ;;  %v7487_v51 = vadd.f32 %v10103_v11, %v10147_v52 }
 0x366   : > { %v3316_v21 = vpop.f32.mrb[66].mxu0 }
 0x367   : > { %v7476_v34 = vadd.f32 %v7475_v33, %v3316_v21  ;;  %v3318_v41 = vpop.f32.mrb[67].mxu0  ;;  %v3472_v43 = vmax.f32 %v7474_v53, 0.0 }
 0x369   : > { %v3473_v62 = vmax.f32 %v7476_v34, 0.0 }
 0x36b   : > { %v3520_v29 = vpack.c.bf16 %v3473_v62, %v3472_v43  ;;  %v7485_v62 = vadd.f32 %v10103_v11, %v10143_v18  ;;  %v7491_v18 = vadd.f32 %v10103_v11, %v10159_v23 }
 0x36c   : > { %v3321_v22 = vpop.f32.mrb[68].mxu0 }
 0x36d   : > { %v7478_v61 = vadd.f32 %v7477_v39, %v3321_v22  ;;  %v3323_v46 = vpop.f32.mrb[69].mxu0  ;;  %7345 = vmatprep.mubr.bf16.mxu1 %v3520_v29 }
 0x36e   : > { %v3324_v9 = vpop.f32.mrb[70].mxu0 }
 0x36f   : > { %v7480_v35 = vadd.f32 %v7479_v50, %v3324_v9  ;;  %v3326_v25 = vpop.f32.mrb[71].mxu0  ;;  %v3474_v55 = vmax.f32 %v7478_v61, 0.0 }
 0x370   : > { %v7489_v25 = vadd.f32 %v10103_v11, %v10155_v19  ;;  %v7495_v19 = vadd.f32 %v10103_v11, %v10169_v42 }
 0x371   : > { %v3475_v13 = vmax.f32 %v7480_v35, 0.0 }
 0x373   : > { %v3521_v59 = vpack.c.bf16 %v3475_v13, %v3474_v55 }
 0x374   : > { %v3329_v33 = vpop.f32.mrb[72].mxu0 }
 0x375   : > { %v7482_v53 = vadd.f32 %v7481_v45, %v3329_v33  ;;  %v3331_v30 = vpop.f32.mrb[73].mxu0  ;;  %7346 = vmatmul.mubr.bf16.gmra.mrb[160].mxu1 %v3521_v59 }
 0x376   : > { %v3332_v48 = vpop.f32.mrb[74].mxu0 }
 0x377   : > { %v7484_v21 = vadd.f32 %v7483_v5, %v3332_v48  ;;  %v3334_v34 = vpop.f32.mrb[75].mxu0  ;;  %v3476_v41 = vmax.f32 %v7482_v53, 0.0  ;;  %v7493_v48 = vadd.f32 %v10103_v11, %v10165_v57  ;;  %v7499_v57 = vadd.f32 %v10103_v11, %v10177_v15 }
 0x379   : > { %v3477_v43 = vmax.f32 %v7484_v21, 0.0 }
 0x37b   : > { %v3522_v39 = vpack.c.bf16 %v3477_v43, %v3476_v41 }
 0x37c   : > { %v3337_v29 = vpop.f32.mrb[76].mxu0 }
 0x37d   : > { %v7486_v22 = vadd.f32 %v7485_v62, %v3337_v29  ;;  %v3339_v50 = vpop.f32.mrb[77].mxu0  ;;  %7349 = vmatprep.mubr.bf16.mxu1 %v3522_v39 }
 0x37e   : > { %v3340_v47 = vpop.f32.mrb[78].mxu0 }
 0x37f   : > { %v7488_v61 = vadd.f32 %v7487_v51, %v3340_v47  ;;  %v3342_v46 = vpop.f32.mrb[79].mxu0  ;;  %v3478_v9 = vmax.f32 %v7486_v22, 0.0  ;;  %v7497_v22 = vadd.f32 %v10103_v11, %v10173_v58  ;;  %v7503_v58 = vadd.f32 %v10103_v11, %v10185_v7 }
 0x381   : > { %v3479_v35 = vmax.f32 %v7488_v61, 0.0 }
 0x383   : > { %v3523_v55 = vpack.c.bf16 %v3479_v35, %v3478_v9 }
 0x384   : > { %v3345_v13 = vpop.f32.mrb[80].mxu0 }
 0x385   : > { %v7490_v45 = vadd.f32 %v7489_v25, %v3345_v13  ;;  %v3347_v59 = vpop.f32.mrb[81].mxu0  ;;  %7350 = vmatmul.mubr.bf16.gmra.mrb[164].mxu1 %v3523_v55  ;;  %v7501_v13 = vadd.f32 %v10103_v11, %v10181_v3  ;;  %v7507_v3 = vadd.f32 %v10103_v11, %v10193_v56 }
 0x386   : > { %v3348_v52 = vpop.f32.mrb[82].mxu0 }
 0x387   : > { %v7492_v33 = vadd.f32 %v7491_v18, %v3348_v52  ;;  %v3350_v5 = vpop.f32.mrb[83].mxu0  ;;  %v3480_v53 = vmax.f32 %v7490_v45, 0.0 }
 0x389   : > { %v3481_v30 = vmax.f32 %v7492_v33, 0.0 }
 0x38b   : > { %v3524_v21 = vpack.c.bf16 %v3481_v30, %v3480_v53 }
 0x38c   : > { %v3353_v34 = vpop.f32.mrb[84].mxu0 }
 0x38d   : > { %v7494_v41 = vadd.f32 %v7493_v48, %v3353_v34  ;;  %v3355_v43 = vpop.f32.mrb[85].mxu0  ;;  %7353 = vmatprep.mubr.bf16.mxu1 %v3524_v21  ;;  %v7505_v48 = vadd.f32 %v10103_v11, %v10189_v36  ;;  %v7511_v36 = vadd.f32 %v10103_v11, %v10201_v32 }
 0x38e   : > { %v3356_v23 = vpop.f32.mrb[86].mxu0 }
 0x38f   : > { %v7496_v62 = vadd.f32 %v7495_v19, %v3356_v23  ;;  %v3358_v39 = vpop.f32.mrb[87].mxu0  ;;  %v3482_v29 = vmax.f32 %v7494_v41, 0.0 }
 0x391   : > { %v3483_v51 = vmax.f32 %v7496_v62, 0.0 }
 0x393   : > { %v3525_v50 = vpack.c.bf16 %v3483_v51, %v3482_v29  ;;  %v7509_v29 = vadd.f32 %v10103_v11, %v10197_v60  ;;  %v7515_v60 = vadd.f32 %v10103_v11, %v10209_v63 }
 0x394   : > { %v3361_v47 = vpop.f32.mrb[88].mxu0 }
 0x395   : > { %v7498_v61 = vadd.f32 %v7497_v22, %v3361_v47  ;;  %v3363_v46 = vpop.f32.mrb[89].mxu0  ;;  %7354 = vmatmul.mubr.bf16.gmra.mrb[168].mxu1 %v3525_v50 }
 0x396   : > { %v3364_v42 = vpop.f32.mrb[90].mxu0 }
 0x397   : > { %v7500_v9 = vadd.f32 %v7499_v57, %v3364_v42  ;;  %v3366_v35 = vpop.f32.mrb[91].mxu0  ;;  %v3484_v25 = vmax.f32 %v7498_v61, 0.0 }
 0x399   : > { %v3485_v55 = vmax.f32 %v7500_v9, 0.0  ;;  %v7513_v9 = vadd.f32 %v10103_v11, %v10205_v54  ;;  %v7519_v54 = vadd.f32 %v10103_v11, %v10217_v1 }
 0x39b   : > { %v3526_v18 = vpack.c.bf16 %v3485_v55, %v3484_v25 }
 0x39c   : > { %v3369_v45 = vpop.f32.mrb[92].mxu0 }
 0x39d   : > { %v7502_v59 = vadd.f32 %v7501_v13, %v3369_v45  ;;  %v3371_v52 = vpop.f32.mrb[93].mxu0  ;;  %7357 = vmatprep.mubr.bf16.mxu1 %v3526_v18 }
 0x39e   : > { %v3372_v15 = vpop.f32.mrb[94].mxu0  ;;  %v7517_v52 = vadd.f32 %v10103_v11, %v10213_v44  ;;  %v7523_v44 = vadd.f32 %v10103_v11, %v10225_v37 }
 0x39f   : > { %v7504_v33 = vadd.f32 %v7503_v58, %v3372_v15  ;;  %v3374_v5 = vpop.f32.mrb[95].mxu0  ;;  %v3486_v53 = vmax.f32 %v7502_v59, 0.0 }
 0x3a1   : > { %v3487_v30 = vmax.f32 %v7504_v33, 0.0 }
 0x3a3   : > { %v3527_v21 = vpack.c.bf16 %v3487_v30, %v3486_v53 }
 0x3a4   : > { %v3377_v34 = vpop.f32.mrb[96].mxu0 }
 0x3a5   : > { %v7506_v19 = vadd.f32 %v7505_v48, %v3377_v34  ;;  %v3379_v41 = vpop.f32.mrb[97].mxu0  ;;  %7358 = vmatmul.mubr.bf16.gmra.mrb[172].mxu1 %v3527_v21 }
 0x3a6   : > { %v3380_v7 = vpop.f32.mrb[98].mxu0 }
 0x3a7   : > { %v7508_v43 = vadd.f32 %v7507_v3, %v3380_v7  ;;  %v3382_v23 = vpop.f32.mrb[99].mxu0  ;;  %v3488_v62 = vmax.f32 %v7506_v19, 0.0  ;;  %v7521_v3 = vadd.f32 %v10103_v11, %v10221_v40  ;;  %v7525_v40 = vadd.f32 %v10103_v11, %v10229_v27 }
 0x3a9   : > { %v3489_v39 = vmax.f32 %v7508_v43, 0.0 }
 0x3ab   : > { %v3528_v51 = vpack.c.bf16 %v3489_v39, %v3488_v62 }
 0x3ac   : > { %v3385_v22 = vpop.f32.mrb[100].mxu0 }
 0x3ad   : > { %v7510_v50 = vadd.f32 %v7509_v29, %v3385_v22  ;;  %v3387_v47 = vpop.f32.mrb[101].mxu0  ;;  %7361 = vmatprep.mubr.bf16.mxu1 %v3528_v51 }
 0x3ae   : > { %v3388_v56 = vpop.f32.mrb[102].mxu0 }
 0x3af   : > { %v7512_v57 = vadd.f32 %v7511_v36, %v3388_v56  ;;  %v3390_v61 = vpop.f32.mrb[103].mxu0  ;;  %v3490_v46 = vmax.f32 %v7510_v50, 0.0 }
 0x3b0   : > { %v7527_v61 = vadd.f32 %v10103_v11, %v10233_v26  ;;  %v7531_v26 = vadd.f32 %v10103_v11, %v10241_v17 }
 0x3b1   : > { %v3491_v42 = vmax.f32 %v7512_v57, 0.0 }
 0x3b3   : > { %v3529_v35 = vpack.c.bf16 %v3491_v42, %v3490_v46 }
 0x3b4   : > { %v3393_v25 = vpop.f32.mrb[104].mxu0 }
 0x3b5   : > { %v7514_v55 = vadd.f32 %v7513_v9, %v3393_v25  ;;  %v3395_v13 = vpop.f32.mrb[105].mxu0  ;;  %7362 = vmatmul.mubr.bf16.gmra.mrb[176].mxu1 %v3529_v35 }
 0x3b6   : > { %v3396_v32 = vpop.f32.mrb[106].mxu0 }
 0x3b7   : > { %v7516_v18 = vadd.f32 %v7515_v60, %v3396_v32  ;;  %v3398_v45 = vpop.f32.mrb[107].mxu0  ;;  %v3492_v58 = vmax.f32 %v7514_v55, 0.0  ;;  %v7529_v55 = vadd.f32 %v10103_v11, %v10237_v31  ;;  %v7533_v31 = vadd.f32 %v10103_v11, %v10245_v38 }
 0x3b9   : > { %v3493_v59 = vmax.f32 %v7516_v18, 0.0 }
 0x3bb   : > { %v3530_v15 = vpack.c.bf16 %v3493_v59, %v3492_v58 }
 0x3bc   : > { %v3401_v33 = vpop.f32.mrb[108].mxu0 }
 0x3bd   : > { %v7518_v5 = vadd.f32 %v7517_v52, %v3401_v33  ;;  %v3403_v53 = vpop.f32.mrb[109].mxu0  ;;  %7365 = vmatprep.mubr.bf16.mxu1 %v3530_v15 }
 0x3be   : > { %v3404_v63 = vpop.f32.mrb[110].mxu0 }
 0x3bf   : > { %v7520_v30 = vadd.f32 %v7519_v54, %v3404_v63  ;;  %v3406_v48 = vpop.f32.mrb[111].mxu0  ;;  %v3494_v21 = vmax.f32 %v7518_v5, 0.0 }
 0x3c1   : > { %v3495_v34 = vmax.f32 %v7520_v30, 0.0 }
 0x3c3   : > { %v3531_v19 = vpack.c.bf16 %v3495_v34, %v3494_v21  ;;  %v7535_v34 = vadd.f32 %v10103_v11, %v10249_v49 }
 0x3c4   : > { %v3409_v41 = vpop.f32.mrb[112].mxu0 }
 0x3c5   : > { %v7522_v7 = vadd.f32 %v7521_v3, %v3409_v41  ;;  %v3411_v1 = vpop.f32.mrb[113].mxu0  ;;  %7366 = vmatmul.mubr.bf16.gmra.mrb[180].mxu1 %v3531_v19 }
 0x3c6   : > { %v3412_v43 = vpop.f32.mrb[114].mxu0 }
 0x3c7   : > { %v7524_v23 = vadd.f32 %v7523_v44, %v3412_v43  ;;  %v3414_v62 = vpop.f32.mrb[115].mxu0  ;;  %v3496_v29 = vmax.f32 %v7522_v7, 0.0 }
 0x3c8   : > { %v7315_v39 = vpop.f32.mrb[128].mxu1 }
 0x3c9   : > { %v3497_v51 = vmax.f32 %v7524_v23, 0.0  ;;  %v3634_v22 = vpop.f32.mrb[129].mxu1 }
 0x3ca   : > { %v7316_v36 = vpop.f32.mrb[130].mxu1 }
 0x3cb   : > { %v3532_v50 = vpack.c.bf16 %v3497_v51, %v3496_v29  ;;  %v3890_v47 = vpack.c.bf16 %v7316_v36, %v7315_v39  ;;  %v3637_v56 = vpop.f32.mrb[131].mxu1 }
 0x3cc   : > { %v3889_v57 = vpack.c.bf16 %v3637_v56, %v3634_v22  ;;  %v3417_v37 = vpop.f32.mrb[116].mxu0 }
 0x3cd   : > { %3926 = vst [vmem:[%s10309_s18 + $0x8] sm:$0xff] %v3890_v47  ;;  %v7526_v46 = vadd.f32 %v7525_v40, %v3417_v37  ;;  %v3419_v42 = vpop.f32.mrb[117].mxu0  ;;  %7369 = vmatprep.mubr.bf16.mxu1 %v3532_v50 }
 0x3ce   : > { %3925 = vst [vmem:[%s10309_s18] sm:$0xff] %v3889_v57  ;;  %v3420_v9 = vpop.f32.mrb[118].mxu0 }
 0x3cf   : > { %v7528_v35 = vadd.f32 %v7527_v61, %v3420_v9  ;;  %v3422_v27 = vpop.f32.mrb[119].mxu0  ;;  %v3498_v25 = vmax.f32 %v7526_v46, 0.0 }
 0x3d1   : > { %v3499_v60 = vmax.f32 %v7528_v35, 0.0 }
 0x3d3   : > { %v3533_v13 = vpack.c.bf16 %v3499_v60, %v3498_v25 }
 0x3d4   : > { %v3425_v32 = vpop.f32.mrb[120].mxu0 }
 0x3d5   : > { %v7530_v18 = vadd.f32 %v7529_v55, %v3425_v32  ;;  %v3427_v45 = vpop.f32.mrb[121].mxu0  ;;  %7370 = vmatmul.mubr.bf16.gmra.mrb[184].mxu1 %v3533_v13 }
 0x3d6   : > { %v3428_v58 = vpop.f32.mrb[122].mxu0 }
 0x3d7   : > { %v7532_v59 = vadd.f32 %v7531_v26, %v3428_v58  ;;  %v3430_v52 = vpop.f32.mrb[123].mxu0  ;;  %v3500_v33 = vmax.f32 %v7530_v18, 0.0 }
 0x3d8   : > { %v7319_v15 = vpop.f32.mrb[132].mxu1 }
 0x3d9   : > { %v3501_v54 = vmax.f32 %v7532_v59, 0.0  ;;  %v3650_v5 = vpop.f32.mrb[133].mxu1 }
 0x3da   : > { %v7320_v53 = vpop.f32.mrb[134].mxu1 }
 0x3db   : > { %v3534_v63 = vpack.c.bf16 %v3501_v54, %v3500_v33  ;;  %v3892_v30 = vpack.c.bf16 %v7320_v53, %v7319_v15  ;;  %v3653_v48 = vpop.f32.mrb[135].mxu1  ;;  %v8333_v53 = vmov 0.0  }
 0x3dc   : > { %v3891_v17 = vpack.c.bf16 %v3653_v48, %v3650_v5  ;;  %v3433_v21 = vpop.f32.mrb[124].mxu0  ;;  %3957 = vst [vmem:[%s8420_s10] sm:$0xff] %v8333_v53  ;;  %3958 = vst [vmem:[%s8420_s10 + $0x8] sm:$0xff] %v8333_v53 }
 0x3dd   : > { %3928 = vst [vmem:[%s10309_s18 + $0x18] sm:$0xff] %v3892_v30  ;;  %v7534_v3 = vadd.f32 %v7533_v31, %v3433_v21  ;;  %v3435_v19 = vpop.f32.mrb[125].mxu0  ;;  %7373 = vmatprep.mubr.bf16.mxu1 %v3534_v63  ;;  %3959 = vst [vmem:[%s8420_s10 + $0x10] sm:$0xff] %v8333_v53 }
 0x3de   : > { %3927 = vst [vmem:[%s10309_s18 + $0x10] sm:$0xff] %v3891_v17  ;;  %v3436_v41 = vpop.f32.mrb[126].mxu0  ;;  %3960 = vst [vmem:[%s8420_s10 + $0x18] sm:$0xff] %v8333_v53 }
 0x3df   : > { %v7536_v44 = vadd.f32 %v7535_v34, %v3436_v41  ;;  %v3438_v7 = vpop.f32.mrb[127].mxu0  ;;  %v3502_v1 = vmax.f32 %v7534_v3, 0.0  ;;  %3961 = vst [vmem:[%s8420_s10 + $0x20] sm:$0xff] %v8333_v53  ;;  %3962 = vst [vmem:[%s8420_s10 + $0x28] sm:$0xff] %v8333_v53 }
 0x3e0   : > { %3963 = vst [vmem:[%s8420_s10 + $0x30] sm:$0xff] %v8333_v53  ;;  %3964 = vst [vmem:[%s8420_s10 + $0x38] sm:$0xff] %v8333_v53 }
 0x3e1   : > { %v3503_v38 = vmax.f32 %v7536_v44, 0.0  ;;  %3965 = vst [vmem:[%s8420_s10 + $0x40] sm:$0xff] %v8333_v53  ;;  %3966 = vst [vmem:[%s8420_s10 + $0x48] sm:$0xff] %v8333_v53 }
 0x3e2   : > { %3967 = vst [vmem:[%s8420_s10 + $0x50] sm:$0xff] %v8333_v53  ;;  %3968 = vst [vmem:[%s8420_s10 + $0x58] sm:$0xff] %v8333_v53 }
 0x3e3   : > { %v3535_v43 = vpack.c.bf16 %v3503_v38, %v3502_v1  ;;  %3969 = vst [vmem:[%s8420_s10 + $0x60] sm:$0xff] %v8333_v53  ;;  %3970 = vst [vmem:[%s8420_s10 + $0x68] sm:$0xff] %v8333_v53 }
 0x3e4   : > { %3971 = vst [vmem:[%s8420_s10 + $0x70] sm:$0xff] %v8333_v53  ;;  %3972 = vst [vmem:[%s8420_s10 + $0x78] sm:$0xff] %v8333_v53 }
 0x3e5   : > { %7374 = vmatmul.mubr.bf16.gmra.mrb[188].mxu1 %v3535_v43  ;;  %3973 = vst [vmem:[%s8420_s10 + $0x80] sm:$0xff] %v8333_v53  ;;  %3974 = vst [vmem:[%s8420_s10 + $0x88] sm:$0xff] %v8333_v53 }
 0x3e6   : > { %3975 = vst [vmem:[%s8420_s10 + $0x90] sm:$0xff] %v8333_v53  ;;  %3976 = vst [vmem:[%s8420_s10 + $0x98] sm:$0xff] %v8333_v53 }
 0x3e7   : > { %3977 = vst [vmem:[%s8420_s10 + $0xa0] sm:$0xff] %v8333_v53  ;;  %3978 = vst [vmem:[%s8420_s10 + $0xa8] sm:$0xff] %v8333_v53 }
 0x3e8   : > { %v7323_v23 = vpop.f32.mrb[136].mxu1  ;;  %3979 = vst [vmem:[%s8420_s10 + $0xb0] sm:$0xff] %v8333_v53  ;;  %3980 = vst [vmem:[%s8420_s10 + $0xb8] sm:$0xff] %v8333_v53 }
 0x3e9   : > { %v3666_v62 = vpop.f32.mrb[137].mxu1  ;;  %3981 = vst [vmem:[%s8420_s10 + $0xc0] sm:$0xff] %v8333_v53  ;;  %3982 = vst [vmem:[%s8420_s10 + $0xc8] sm:$0xff] %v8333_v53 }
 0x3ea   : > { %v7324_v39 = vpop.f32.mrb[138].mxu1  ;;  %3983 = vst [vmem:[%s8420_s10 + $0xd0] sm:$0xff] %v8333_v53  ;;  %3984 = vst [vmem:[%s8420_s10 + $0xd8] sm:$0xff] %v8333_v53 }
 0x3eb   : > { %v3894_v11 = vpack.c.bf16 %v7324_v39, %v7323_v23  ;;  %v3669_v49 = vpop.f32.mrb[139].mxu1  ;;  %3985 = vst [vmem:[%s8420_s10 + $0xe0] sm:$0xff] %v8333_v53  ;;  %3986 = vst [vmem:[%s8420_s10 + $0xe8] sm:$0xff] %v8333_v53 }
 0x3ec   : > { %v3893_v29 = vpack.c.bf16 %v3669_v49, %v3666_v62  ;;  %3987 = vst [vmem:[%s8420_s10 + $0xf0] sm:$0xff] %v8333_v53  ;;  %3988 = vst [vmem:[%s8420_s10 + $0xf8] sm:$0xff] %v8333_v53 }
 0x3ed   : > { %3930 = vst [vmem:[%s10309_s18 + $0x28] sm:$0xff] %v3894_v11  ;;  %3989 = vst [vmem:[%s8420_s10 + $0x100] sm:$0xff] %v8333_v53 }
 0x3ee   : > { %3929 = vst [vmem:[%s10309_s18 + $0x20] sm:$0xff] %v3893_v29  ;;  %3990 = vst [vmem:[%s8420_s10 + $0x108] sm:$0xff] %v8333_v53 }
 0x3ef   : > { %3991 = vst [vmem:[%s8420_s10 + $0x110] sm:$0xff] %v8333_v53  ;;  %3992 = vst [vmem:[%s8420_s10 + $0x118] sm:$0xff] %v8333_v53 }
 0x3f0   : > { %3993 = vst [vmem:[%s8420_s10 + $0x120] sm:$0xff] %v8333_v53  ;;  %3994 = vst [vmem:[%s8420_s10 + $0x128] sm:$0xff] %v8333_v53 }
 0x3f1   : > { %3995 = vst [vmem:[%s8420_s10 + $0x130] sm:$0xff] %v8333_v53  ;;  %3996 = vst [vmem:[%s8420_s10 + $0x138] sm:$0xff] %v8333_v53 }
 0x3f2   : > { %3997 = vst [vmem:[%s8420_s10 + $0x140] sm:$0xff] %v8333_v53  ;;  %3998 = vst [vmem:[%s8420_s10 + $0x148] sm:$0xff] %v8333_v53 }
 0x3f3   : > { %3999 = vst [vmem:[%s8420_s10 + $0x150] sm:$0xff] %v8333_v53  ;;  %4000 = vst [vmem:[%s8420_s10 + $0x158] sm:$0xff] %v8333_v53 }
 0x3f4   : > { %4001 = vst [vmem:[%s8420_s10 + $0x160] sm:$0xff] %v8333_v53  ;;  %4002 = vst [vmem:[%s8420_s10 + $0x168] sm:$0xff] %v8333_v53 }
 0x3f5   : > { %4003 = vst [vmem:[%s8420_s10 + $0x170] sm:$0xff] %v8333_v53  ;;  %4004 = vst [vmem:[%s8420_s10 + $0x178] sm:$0xff] %v8333_v53 }
 0x3f6   : > { %4005 = vst [vmem:[%s8420_s10 + $0x180] sm:$0xff] %v8333_v53  ;;  %4006 = vst [vmem:[%s8420_s10 + $0x188] sm:$0xff] %v8333_v53 }
 0x3f7   : > { %4007 = vst [vmem:[%s8420_s10 + $0x190] sm:$0xff] %v8333_v53  ;;  %4008 = vst [vmem:[%s8420_s10 + $0x198] sm:$0xff] %v8333_v53 }
 0x3f8   : > { %v7327_v51 = vpop.f32.mrb[140].mxu1  ;;  %4009 = vst [vmem:[%s8420_s10 + $0x1a0] sm:$0xff] %v8333_v53  ;;  %4010 = vst [vmem:[%s8420_s10 + $0x1a8] sm:$0xff] %v8333_v53 }
 0x3f9   : > { %v3682_v22 = vpop.f32.mrb[141].mxu1  ;;  %4011 = vst [vmem:[%s8420_s10 + $0x1b0] sm:$0xff] %v8333_v53  ;;  %4012 = vst [vmem:[%s8420_s10 + $0x1b8] sm:$0xff] %v8333_v53 }
 0x3fa   : > { %v7328_v36 = vpop.f32.mrb[142].mxu1  ;;  %4013 = vst [vmem:[%s8420_s10 + $0x1c0] sm:$0xff] %v8333_v53  ;;  %4014 = vst [vmem:[%s8420_s10 + $0x1c8] sm:$0xff] %v8333_v53 }
 0x3fb   : > { %v3896_v40 = vpack.c.bf16 %v7328_v36, %v7327_v51  ;;  %v3685_v50 = vpop.f32.mrb[143].mxu1  ;;  %4015 = vst [vmem:[%s8420_s10 + $0x1d0] sm:$0xff] %v8333_v53  ;;  %4016 = vst [vmem:[%s8420_s10 + $0x1d8] sm:$0xff] %v8333_v53 }
 0x3fc   : > { %v3895_v47 = vpack.c.bf16 %v3685_v50, %v3682_v22  ;;  %4017 = vst [vmem:[%s8420_s10 + $0x1e0] sm:$0xff] %v8333_v53  ;;  %4018 = vst [vmem:[%s8420_s10 + $0x1e8] sm:$0xff] %v8333_v53 }
 0x3fd   : > { %3932 = vst [vmem:[%s10309_s18 + $0x38] sm:$0xff] %v3896_v40  ;;  %4019 = vst [vmem:[%s8420_s10 + $0x1f0] sm:$0xff] %v8333_v53 }
 0x3fe   : > { %3931 = vst [vmem:[%s10309_s18 + $0x30] sm:$0xff] %v3895_v47  ;;  %4020 = vst [vmem:[%s8420_s10 + $0x1f8] sm:$0xff] %v8333_v53 }
 0x408   : > { %v7331_v56 = vpop.f32.mrb[144].mxu1 }
 0x409   : > { %v3698_v57 = vpop.f32.mrb[145].mxu1 }
 0x40a   : > { %v7332_v37 = vpop.f32.mrb[146].mxu1 }
 0x40b   : > { %v3898_v61 = vpack.c.bf16 %v7332_v37, %v7331_v56  ;;  %v3701_v46 = vpop.f32.mrb[147].mxu1 }
 0x40c   : > { %v3897_v42 = vpack.c.bf16 %v3701_v46, %v3698_v57 }
 0x40d   : > { %3934 = vst [vmem:[%s10309_s18 + $0x48] sm:$0xff] %v3898_v61 }
 0x40e   : > { %3933 = vst [vmem:[%s10309_s18 + $0x40] sm:$0xff] %v3897_v42 }
 0x418   : > { %v7335_v9 = vpop.f32.mrb[148].mxu1 }
 0x419   : > { %v3714_v35 = vpop.f32.mrb[149].mxu1 }
 0x41a   : > { %v7336_v27 = vpop.f32.mrb[150].mxu1 }
 0x41b   : > { %v3900_v25 = vpack.c.bf16 %v7336_v27, %v7335_v9  ;;  %v3717_v60 = vpop.f32.mrb[151].mxu1 }
 0x41c   : > { %v3899_v55 = vpack.c.bf16 %v3717_v60, %v3714_v35 }
 0x41d   : > { %3936 = vst [vmem:[%s10309_s18 + $0x58] sm:$0xff] %v3900_v25 }
 0x41e   : > { %3935 = vst [vmem:[%s10309_s18 + $0x50] sm:$0xff] %v3899_v55 }
 0x428   : > { %v7339_v13 = vpop.f32.mrb[152].mxu1 }
 0x429   : > { %v3730_v32 = vpop.f32.mrb[153].mxu1 }
 0x42a   : > { %v7340_v26 = vpop.f32.mrb[154].mxu1 }
 0x42b   : > { %v3902_v18 = vpack.c.bf16 %v7340_v26, %v7339_v13  ;;  %v3733_v45 = vpop.f32.mrb[155].mxu1 }
 0x42c   : > { %v3901_v58 = vpack.c.bf16 %v3733_v45, %v3730_v32 }
 0x42d   : > { %3938 = vst [vmem:[%s10309_s18 + $0x68] sm:$0xff] %v3902_v18 }
 0x42e   : > { %3937 = vst [vmem:[%s10309_s18 + $0x60] sm:$0xff] %v3901_v58 }
 0x438   : > { %v7343_v59 = vpop.f32.mrb[156].mxu1 }
 0x439   : > { %v3746_v52 = vpop.f32.mrb[157].mxu1 }
 0x43a   : > { %v7344_v15 = vpop.f32.mrb[158].mxu1 }
 0x43b   : > { %v3904_v33 = vpack.c.bf16 %v7344_v15, %v7343_v59  ;;  %v3749_v54 = vpop.f32.mrb[159].mxu1 }
 0x43c   : > { %v3903_v5 = vpack.c.bf16 %v3749_v54, %v3746_v52 }
 0x43d   : > { %3940 = vst [vmem:[%s10309_s18 + $0x78] sm:$0xff] %v3904_v33 }
 0x43e   : > { %3939 = vst [vmem:[%s10309_s18 + $0x70] sm:$0xff] %v3903_v5 }
 0x448   : > { %v7347_v31 = vpop.f32.mrb[160].mxu1 }
 0x449   : > { %v3762_v63 = vpop.f32.mrb[161].mxu1 }
 0x44a   : > { %v7348_v30 = vpop.f32.mrb[162].mxu1 }
 0x44b   : > { %v3906_v48 = vpack.c.bf16 %v7348_v30, %v7347_v31  ;;  %v3765_v17 = vpop.f32.mrb[163].mxu1 }
 0x44c   : > { %v3905_v21 = vpack.c.bf16 %v3765_v17, %v3762_v63 }
 0x44d   : > { %3942 = vst [vmem:[%s10309_s18 + $0x88] sm:$0xff] %v3906_v48 }
 0x44e   : > { %3941 = vst [vmem:[%s10309_s18 + $0x80] sm:$0xff] %v3905_v21 }
 0x458   : > { %v7351_v34 = vpop.f32.mrb[164].mxu1 }
 0x459   : > { %v3778_v3 = vpop.f32.mrb[165].mxu1 }
 0x45a   : > { %v7352_v19 = vpop.f32.mrb[166].mxu1 }
 0x45b   : > { %v3908_v41 = vpack.c.bf16 %v7352_v19, %v7351_v34  ;;  %v3781_v44 = vpop.f32.mrb[167].mxu1 }
 0x45c   : > { %v3907_v7 = vpack.c.bf16 %v3781_v44, %v3778_v3 }
 0x45d   : > { %3944 = vst [vmem:[%s10309_s18 + $0x98] sm:$0xff] %v3908_v41 }
 0x45e   : > { %3943 = vst [vmem:[%s10309_s18 + $0x90] sm:$0xff] %v3907_v7 }
 0x468   : > { %v7355_v1 = vpop.f32.mrb[168].mxu1 }
 0x469   : > { %v3794_v38 = vpop.f32.mrb[169].mxu1 }
 0x46a   : > { %v7356_v43 = vpop.f32.mrb[170].mxu1 }
 0x46b   : > { %v3910_v23 = vpack.c.bf16 %v7356_v43, %v7355_v1  ;;  %v3797_v62 = vpop.f32.mrb[171].mxu1 }
 0x46c   : > { %v3909_v39 = vpack.c.bf16 %v3797_v62, %v3794_v38 }
 0x46d   : > { %3946 = vst [vmem:[%s10309_s18 + $0xa8] sm:$0xff] %v3910_v23 }
 0x46e   : > { %3945 = vst [vmem:[%s10309_s18 + $0xa0] sm:$0xff] %v3909_v39 }
 0x478   : > { %v7359_v11 = vpop.f32.mrb[172].mxu1 }
 0x479   : > { %v3810_v49 = vpop.f32.mrb[173].mxu1 }
 0x47a   : > { %v7360_v29 = vpop.f32.mrb[174].mxu1 }
 0x47b   : > { %v3912_v51 = vpack.c.bf16 %v7360_v29, %v7359_v11  ;;  %v3813_v22 = vpop.f32.mrb[175].mxu1 }
 0x47c   : > { %v3911_v36 = vpack.c.bf16 %v3813_v22, %v3810_v49 }
 0x47d   : > { %3948 = vst [vmem:[%s10309_s18 + $0xb8] sm:$0xff] %v3912_v51 }
 0x47e   : > { %3947 = vst [vmem:[%s10309_s18 + $0xb0] sm:$0xff] %v3911_v36 }
 0x488   : > { %v7363_v40 = vpop.f32.mrb[176].mxu1 }
 0x489   : > { %v3826_v50 = vpop.f32.mrb[177].mxu1 }
 0x48a   : > { %v7364_v47 = vpop.f32.mrb[178].mxu1 }
 0x48b   : > { %v3914_v56 = vpack.c.bf16 %v7364_v47, %v7363_v40  ;;  %v3829_v57 = vpop.f32.mrb[179].mxu1 }
 0x48c   : > { %v3913_v37 = vpack.c.bf16 %v3829_v57, %v3826_v50 }
 0x48d   : > { %3950 = vst [vmem:[%s10309_s18 + $0xc8] sm:$0xff] %v3914_v56 }
 0x48e   : > { %3949 = vst [vmem:[%s10309_s18 + $0xc0] sm:$0xff] %v3913_v37 }
 0x498   : > { %v7367_v61 = vpop.f32.mrb[180].mxu1 }
 0x499   : > { %v3842_v46 = vpop.f32.mrb[181].mxu1 }
 0x49a   : > { %v7368_v42 = vpop.f32.mrb[182].mxu1 }
 0x49b   : > { %v3916_v9 = vpack.c.bf16 %v7368_v42, %v7367_v61  ;;  %v3845_v35 = vpop.f32.mrb[183].mxu1 }
 0x49c   : > { %v3915_v27 = vpack.c.bf16 %v3845_v35, %v3842_v46 }
 0x49d   : > { %3952 = vst [vmem:[%s10309_s18 + $0xd8] sm:$0xff] %v3916_v9 }
 0x49e   : > { %3951 = vst [vmem:[%s10309_s18 + $0xd0] sm:$0xff] %v3915_v27 }
 0x4a8   : > { %v7371_v25 = vpop.f32.mrb[184].mxu1 }
 0x4a9   : > { %v3858_v60 = vpop.f32.mrb[185].mxu1 }
 0x4aa   : > { %v7372_v55 = vpop.f32.mrb[186].mxu1 }
 0x4ab   : > { %v3918_v13 = vpack.c.bf16 %v7372_v55, %v7371_v25  ;;  %v3861_v32 = vpop.f32.mrb[187].mxu1 }
 0x4ac   : > { %v3917_v26 = vpack.c.bf16 %v3861_v32, %v3858_v60 }
 0x4ad   : > { %3954 = vst [vmem:[%s10309_s18 + $0xe8] sm:$0xff] %v3918_v13 }
 0x4ae   : > { %3953 = vst [vmem:[%s10309_s18 + $0xe0] sm:$0xff] %v3917_v26 }
 0x4b8   : > { %v7375_v18 = vpop.f32.mrb[188].mxu1 }
 0x4b9   : > { %v3874_v45 = vpop.f32.mrb[189].mxu1 }
 0x4ba   : > { %v7376_v58 = vpop.f32.mrb[190].mxu1 }
 0x4bb   : > { %v3920_v59 = vpack.c.bf16 %v7376_v58, %v7375_v18  ;;  %v3877_v52 = vpop.f32.mrb[191].mxu1 }
 0x4bc   : > { %v3919_v15 = vpack.c.bf16 %v3877_v52, %v3874_v45 }
 0x4bd   : > { %3956 = vst [vmem:[%s10309_s18 + $0xf8] sm:$0xff] %v3920_v59 }
 0x4be   : > { %3955 = vst [vmem:[%s10309_s18 + $0xf0] sm:$0xff] %v3919_v15 }
 0x4bf PF: > { %p6996_p7 = scmp.ne.s32.totalorder %s8318_s19, 1 }
 0x4c0   : > { %v6999_v5 = vcombine.high (!%p6996_p7), %v8409_v0, %v8426_v4  ;;  %v7003_v53 = vcombine.high (!%p6996_p7), %v8415_v2, %v8432_v6  ;;  %v8334_v31 = vmov (!%p6996_p7), 0   ;;  %v6998_v46 = vcombine.low (!%p6996_p7), %v8409_v0, %v8426_v4  ;;  %v12157_v55 = vld [vmem:[#allocation15_spill] sm:$0xff] (!%p6996_p7)  ;;  %v12158_v13 = vld [vmem:[#allocation12_spill] sm:$0xff] (!%p6996_p7)  ;;  %v12159_v58 = vld [vmem:[#allocation21_spill] sm:$0xff] (!%p6996_p7) }
 0x4c1   : > { %4024 = sbr.rel (%p6996_p7) target bundleno = 2008 (0x7d8), region = 48  ;;  %5376 = vmatprep.subr.bf16.mxu1 (!%p6996_p7), %v8334_v31  ;;  %5954 = vmatprep.subr.bf16.mxu0 (!%p6996_p7), %v8334_v31  ;;  %v7002_v42 = vcombine.low (!%p6996_p7), %v8415_v2, %v8432_v6  ;;  %v7007_v27 = vcombine.high (!%p6996_p7), %v8438_v8, %v8450_v12  ;;  %v7011_v25 = vcombine.high (!%p6996_p7), %v8444_v10, %v8456_v14  ;;  %v12160_v59 = vld [vmem:[#allocation18_spill] sm:$0xff] (!%p6996_p7) }
 0x4c2   : > { %5408 = vmatprep.mubr.bf16.mxu1 (!%p6996_p7), %v6999_v5  ;;  %5986 = vmatprep.mubr.bf16.mxu0 (!%p6996_p7), %v7003_v53  ;;  %v7006_v4 = vcombine.low (!%p6996_p7), %v8438_v8, %v8450_v12  ;;  %v7010_v6 = vcombine.low (!%p6996_p7), %v8444_v10, %v8456_v14  ;;  %v7015_v60 = vcombine.high (!%p6996_p7), %v8462_v16, %v8474_v20  ;;  %v12161_v53 = vld [vmem:[#allocation27_spill] sm:$0xff] (!%p6996_p7) }
 0x4c3   : > { %v7019_v32 = vcombine.high (!%p6996_p7), %v12158_v13, %v12157_v55  ;;  %v7014_v12 = vcombine.low (!%p6996_p7), %v8462_v16, %v8474_v20  ;;  %v7018_v14 = vcombine.low (!%p6996_p7), %v12158_v13, %v12157_v55  ;;  %v7023_v45 = vcombine.high (!%p6996_p7), %v8486_v24, %v8498_v28  ;;  %v12177_v55 = vld [vmem:[#allocation59_spill] sm:$0xff] (!%p6996_p7) }
 0x4c4   : > { %v7027_v52 = vcombine.high (!%p6996_p7), %v12160_v59, %v12159_v58  ;;  %v7026_v5 = vcombine.low (!%p6996_p7), %v12160_v59, %v12159_v58  ;;  %v12178_v13 = vld [vmem:[#allocation55_spill] sm:$0xff] (!%p6996_p7)  ;;  %v12183_v59 = vld [vmem:[#allocation69_spill] sm:$0xff] (!%p6996_p7) }
 0x4c5   : > { %v4025_v33 = vld [vmem:[#allocation2] sm:$0xff] (!%p6996_p7)  ;;  %v4026_v63 = vld [vmem:[#allocation2 + $0x8] sm:$0xff] (!%p6996_p7)  ;;  %v4027_v48 = vld [vmem:[#allocation2 + $0x10] sm:$0xff] (!%p6996_p7) }
 0x4c6   : > { %v4057_v54 = vld [vmem:[#allocation2 + $0x100] sm:$0xff] (!%p6996_p7)  ;;  %5377 = vmatpush1.bf16.msra.mxu1 (!%p6996_p7), %v4025_v33  ;;  %v4058_v30 = vld [vmem:[#allocation2 + $0x108] sm:$0xff] (!%p6996_p7)  ;;  %v4059_v17 = vld [vmem:[#allocation2 + $0x110] sm:$0xff] (!%p6996_p7) }
 0x4c7   : > { %5955 = vmatpush1.bf16.msra.mxu0 (!%p6996_p7), %v4057_v54  ;;  %5378 = vmatprep.subr.bf16.mxu1 (!%p6996_p7), %v8334_v31  ;;  %v4028_v21 = vld [vmem:[#allocation2 + $0x18] sm:$0xff] (!%p6996_p7)  ;;  %v4029_v3 = vld [vmem:[#allocation2 + $0x20] sm:$0xff] (!%p6996_p7)  ;;  %v4030_v41 = vld [vmem:[#allocation2 + $0x28] sm:$0xff] (!%p6996_p7)  ;;  %v7022_v54 = vcombine.low (!%p6996_p7), %v8486_v24, %v8498_v28 }
 0x4c8   : > { %5956 = vmatprep.subr.bf16.mxu0 %v8334_v31  ;;  %v4060_v34 = vld [vmem:[#allocation2 + $0x118] sm:$0xff]  ;;  %v4061_v19 = vld [vmem:[#allocation2 + $0x120] sm:$0xff]  ;;  %v4062_v44 = vld [vmem:[#allocation2 + $0x128] sm:$0xff] }
 0x4c9   : > { %v4031_v7 = vld [vmem:[#allocation2 + $0x30] sm:$0xff]  ;;  %v4032_v38 = vld [vmem:[#allocation2 + $0x38] sm:$0xff]  ;;  %v4033_v23 = vld [vmem:[#allocation2 + $0x40] sm:$0xff] }
 0x4ca   : > { %5379 = vmatpush1.bf16.msra.mxu1 %v4026_v63  ;;  %v4063_v1 = vld [vmem:[#allocation2 + $0x130] sm:$0xff]  ;;  %v4064_v43 = vld [vmem:[#allocation2 + $0x138] sm:$0xff]  ;;  %v4065_v62 = vld [vmem:[#allocation2 + $0x140] sm:$0xff] }
 0x4cb   : > { %5957 = vmatpush1.bf16.msra.mxu0 %v4058_v30  ;;  %5380 = vmatprep.subr.bf16.mxu1 %v8334_v31  ;;  %v4034_v39 = vld [vmem:[#allocation2 + $0x48] sm:$0xff]  ;;  %v4035_v49 = vld [vmem:[#allocation2 + $0x50] sm:$0xff]  ;;  %v4036_v51 = vld [vmem:[#allocation2 + $0x58] sm:$0xff] }
 0x4cc   : > { %5958 = vmatprep.subr.bf16.mxu0 %v8334_v31  ;;  %v4066_v11 = vld [vmem:[#allocation2 + $0x148] sm:$0xff]  ;;  %v4067_v29 = vld [vmem:[#allocation2 + $0x150] sm:$0xff]  ;;  %v4068_v22 = vld [vmem:[#allocation2 + $0x158] sm:$0xff] }
 0x4cd   : > { %v4037_v36 = vld [vmem:[#allocation2 + $0x60] sm:$0xff]  ;;  %v4038_v50 = vld [vmem:[#allocation2 + $0x68] sm:$0xff]  ;;  %v4039_v56 = vld [vmem:[#allocation2 + $0x70] sm:$0xff] }
 0x4ce   : > { %5381 = vmatpush1.bf16.msra.mxu1 %v4027_v48  ;;  %v4069_v40 = vld [vmem:[#allocation2 + $0x160] sm:$0xff]  ;;  %v4070_v47 = vld [vmem:[#allocation2 + $0x168] sm:$0xff]  ;;  %v4071_v57 = vld [vmem:[#allocation2 + $0x170] sm:$0xff] }
 0x4cf   : > { %5959 = vmatpush1.bf16.msra.mxu0 %v4059_v17  ;;  %5382 = vmatprep.subr.bf16.mxu1 %v8334_v31  ;;  %v4040_v37 = vld [vmem:[#allocation2 + $0x78] sm:$0xff]  ;;  %v4041_v9 = vld [vmem:[#allocation2 + $0x80] sm:$0xff]  ;;  %v4042_v0 = vld [vmem:[#allocation2 + $0x88] sm:$0xff] }
 0x4d0   : > { %5960 = vmatprep.subr.bf16.mxu0 %v8334_v31  ;;  %v4072_v61 = vld [vmem:[#allocation2 + $0x178] sm:$0xff]  ;;  %v4073_v35 = vld [vmem:[#allocation2 + $0x180] sm:$0xff]  ;;  %v4074_v2 = vld [vmem:[#allocation2 + $0x188] sm:$0xff] }
 0x4d1   : > { %v4043_v26 = vld [vmem:[#allocation2 + $0x90] sm:$0xff]  ;;  %v4044_v8 = vld [vmem:[#allocation2 + $0x98] sm:$0xff]  ;;  %v4045_v15 = vld [vmem:[#allocation2 + $0xa0] sm:$0xff] }
 0x4d2   : > { %5383 = vmatpush1.bf16.msra.mxu1 %v4028_v21  ;;  %v4075_v18 = vld [vmem:[#allocation2 + $0x190] sm:$0xff]  ;;  %v4076_v10 = vld [vmem:[#allocation2 + $0x198] sm:$0xff]  ;;  %v4077_v33 = vld [vmem:[#allocation2 + $0x1a0] sm:$0xff] }
 0x4d3   : > { %5961 = vmatpush1.bf16.msra.mxu0 %v4060_v34  ;;  %5384 = vmatprep.subr.bf16.mxu1 %v8334_v31  ;;  %v4046_v16 = vld [vmem:[#allocation2 + $0xa8] sm:$0xff]  ;;  %v12162_v63 = vld [vmem:[#allocation23_spill] sm:$0xff]  ;;  %v12163_v48 = vld [vmem:[#allocation29_spill] sm:$0xff] }
 0x4d4   : > { %5962 = vmatprep.subr.bf16.mxu0 %v8334_v31  ;;  %v4078_v20 = vld [vmem:[#allocation2 + $0x1a8] sm:$0xff]  ;;  %v7031_v30 = vcombine.high %v12162_v63, %v12161_v53  ;;  %v12164_v17 = vld [vmem:[#allocation25_spill] sm:$0xff]  ;;  %v4048_v24 = vld [vmem:[#allocation2 + $0xb8] sm:$0xff] }
 0x4d5   : > { %v7035_v21 = vcombine.high %v12164_v17, %v12163_v48  ;;  %v4047_v34 = vld [vmem:[#allocation2 + $0xb0] sm:$0xff]  ;;  %v4080_v28 = vld [vmem:[#allocation2 + $0x1b8] sm:$0xff] }
 0x4d6   : > { %5385 = vmatpush1.bf16.msra.mxu1 %v4029_v3  ;;  %v4079_v3 = vld [vmem:[#allocation2 + $0x1b0] sm:$0xff] }
 0x4d7   : > { %5963 = vmatpush1.bf16.msra.mxu0 %v4061_v19  ;;  %5386 = vmatprep.subr.bf16.mxu1 %v8334_v31  ;;  %v7030_v19 = vcombine.low %v12162_v63, %v12161_v53  ;;  %v12186_v53 = vld [vmem:[#allocation71_spill] sm:$0xff] }
 0x4d8   : > { %5964 = vmatprep.subr.bf16.mxu0 %v8334_v31 }
 0x4da   : > { %5387 = vmatpush1.bf16.msra.mxu1 %v4030_v41  ;;  %v7034_v41 = vcombine.low %v12164_v17, %v12163_v48  ;;  %v12188_v48 = vld [vmem:[#allocation73_spill] sm:$0xff] }
 0x4db   : > { %5965 = vmatpush1.bf16.msra.mxu0 %v4062_v44  ;;  %5388 = vmatprep.subr.bf16.mxu1 %v8334_v31  ;;  %v12165_v44 = vld [vmem:[#allocation35_spill] sm:$0xff] }
 0x4dc   : > { %5966 = vmatprep.subr.bf16.mxu0 %v8334_v31 }
 0x4de   : > { %5389 = vmatpush1.bf16.msra.mxu1 %v4031_v7  ;;  %v12166_v7 = vld [vmem:[#allocation31_spill] sm:$0xff] }
 0x4df   : > { %5967 = vmatpush1.bf16.msra.mxu0 %v4063_v1  ;;  %5390 = vmatprep.subr.bf16.mxu1 %v8334_v31  ;;  %v7039_v1 = vcombine.high %v12166_v7, %v12165_v44 }
 0x4e0   : > { %5968 = vmatprep.subr.bf16.mxu0 %v8334_v31 }
 0x4e2   : > { %5391 = vmatpush1.bf16.msra.mxu1 %v4032_v38  ;;  %v12167_v38 = vld [vmem:[#allocation37_spill] sm:$0xff] }
 0x4e3   : > { %5969 = vmatpush1.bf16.msra.mxu0 %v4064_v43  ;;  %5392 = vmatprep.subr.bf16.mxu1 %v8334_v31  ;;  %v12168_v43 = vld [vmem:[#allocation33_spill] sm:$0xff] }
 0x4e4   : > { %5970 = vmatprep.subr.bf16.mxu0 %v8334_v31 }
 0x4e6   : > { %5393 = vmatpush1.bf16.msra.mxu1 %v4033_v23  ;;  %v7043_v23 = vcombine.high %v12168_v43, %v12167_v38 }
 0x4e7   : > { %5971 = vmatpush1.bf16.msra.mxu0 %v4065_v62  ;;  %5394 = vmatprep.subr.bf16.mxu1 %v8334_v31  ;;  %v4049_v62 = vld [vmem:[#allocation2 + $0xc0] sm:$0xff] }
 0x4e8   : > { %5972 = vmatprep.subr.bf16.mxu0 %v8334_v31 }
 0x4ea   : > { %5395 = vmatpush1.bf16.msra.mxu1 %v4034_v39  ;;  %v4081_v39 = vld [vmem:[#allocation2 + $0x1c0] sm:$0xff] }
 0x4eb   : > { %5973 = vmatpush1.bf16.msra.mxu0 %v4066_v11  ;;  %5396 = vmatprep.subr.bf16.mxu1 %v8334_v31  ;;  %v4050_v11 = vld [vmem:[#allocation2 + $0xc8] sm:$0xff] }
 0x4ec   : > { %5974 = vmatprep.subr.bf16.mxu0 %v8334_v31 }
 0x4ee   : > { %5397 = vmatpush1.bf16.msra.mxu1 %v4035_v49  ;;  %v4082_v49 = vld [vmem:[#allocation2 + $0x1c8] sm:$0xff] }
 0x4ef   : > { %5975 = vmatpush1.bf16.msra.mxu0 %v4067_v29  ;;  %5398 = vmatprep.subr.bf16.mxu1 %v8334_v31  ;;  %v7038_v29 = vcombine.low %v12166_v7, %v12165_v44  ;;  %v4054_v7 = vld [vmem:[#allocation2 + $0xe8] sm:$0xff] }
 0x4f0   : > { %5976 = vmatprep.subr.bf16.mxu0 %v8334_v31 }
 0x4f2   : > { %5399 = vmatpush1.bf16.msra.mxu1 %v4036_v51  ;;  %v7042_v51 = vcombine.low %v12168_v43, %v12167_v38 }
 0x4f3   : > { %5977 = vmatpush1.bf16.msra.mxu0 %v4068_v22  ;;  %5400 = vmatprep.subr.bf16.mxu1 %v8334_v31  ;;  %v12169_v22 = vld [vmem:[#allocation43_spill] sm:$0xff] }
 0x4f4   : > { %5978 = vmatprep.subr.bf16.mxu0 %v8334_v31 }
 0x4f6   : > { %5401 = vmatpush1.bf16.msra.mxu1 %v4037_v36  ;;  %v12170_v36 = vld [vmem:[#allocation39_spill] sm:$0xff] }
 0x4f7   : > { %5979 = vmatpush1.bf16.msra.mxu0 %v4069_v40  ;;  %5402 = vmatprep.subr.bf16.mxu1 %v8334_v31  ;;  %v7047_v40 = vcombine.high %v12170_v36, %v12169_v22 }
 0x4f8   : > { %5980 = vmatprep.subr.bf16.mxu0 %v8334_v31 }
 0x4fa   : > { %5403 = vmatpush1.bf16.msra.mxu1 %v4038_v50  ;;  %v12171_v50 = vld [vmem:[#allocation45_spill] sm:$0xff] }
 0x4fb   : > { %5981 = vmatpush1.bf16.msra.mxu0 %v4070_v47  ;;  %5404 = vmatprep.subr.bf16.mxu1 %v8334_v31  ;;  %v12172_v47 = vld [vmem:[#allocation41_spill] sm:$0xff] }
 0x4fc   : > { %5982 = vmatprep.subr.bf16.mxu0 %v8334_v31 }
 0x4fe   : > { %5405 = vmatpush1.bf16.msra.mxu1 %v4039_v56  ;;  %v7051_v56 = vcombine.high %v12172_v47, %v12171_v50 }
 0x4ff   : > { %5983 = vmatpush1.bf16.msra.mxu0 %v4071_v57  ;;  %5406 = vmatprep.subr.bf16.mxu1 %v8334_v31  ;;  %v4051_v57 = vld [vmem:[#allocation2 + $0xd0] sm:$0xff] }
 0x500   : > { %5984 = vmatprep.subr.bf16.mxu0 %v8334_v31 }
 0x502   : > { %5407 = vmatpush1.bf16.msra.mxu1 %v4040_v37  ;;  %v4083_v37 = vld [vmem:[#allocation2 + $0x1d0] sm:$0xff] }
 0x503   : > { %5985 = vmatpush1.bf16.msra.mxu0 %v4072_v61  ;;  %5665 = vmatprep.subr.bf16.mxu1 %v8334_v31  ;;  %v7046_v61 = vcombine.low %v12170_v36, %v12169_v22  ;;  %v12197_v36 = vld [vmem:[#allocation99_spill] sm:$0xff] }
 0x504   : > { %6243 = vmatprep.subr.bf16.mxu0 %v8334_v31 }
 0x505   : > { %5409 = vmatmul.mubr.bf16.vlgmr.msra.gmra.mrb[0].mxu1 %v6998_v46  ;;  %v7050_v46 = vcombine.low %v12172_v47, %v12171_v50  ;;  %v12199_v47 = vld [vmem:[#allocation101_spill] sm:$0xff] }
 0x506   : > { %5987 = vmatmul.mubr.bf16.vlgmr.msra.gmra.mrb[0].mxu0 %v7002_v42  ;;  %5666 = vmatpush1.bf16.msra.mxu1 %v4041_v9  ;;  %v12173_v42 = vld [vmem:[#allocation51_spill] sm:$0xff] }
 0x507   : > { %6244 = vmatpush1.bf16.msra.mxu0 %v4073_v35  ;;  %5416 = vmatprep.mubr.bf16.mxu1 %v7007_v27  ;;  %v12174_v9 = vld [vmem:[#allocation47_spill] sm:$0xff]  ;;  %v12175_v27 = vld [vmem:[#allocation53_spill] sm:$0xff] }
 0x508   : > { %5994 = vmatprep.mubr.bf16.mxu0 %v7011_v25  ;;  %5667 = vmatprep.subr.bf16.mxu1 %v8334_v31  ;;  %v7055_v35 = vcombine.high %v12174_v9, %v12173_v42  ;;  %v12176_v25 = vld [vmem:[#allocation49_spill] sm:$0xff] }
 0x509   : > { %6245 = vmatprep.subr.bf16.mxu0 %v8334_v31 }
 0x50a   : > { %5668 = vmatpush1.bf16.msra.mxu1 %v4042_v0  ;;  %v7059_v0 = vcombine.high %v12176_v25, %v12175_v27 }
 0x50b   : > { %6246 = vmatpush1.bf16.msra.mxu0 %v4074_v2  ;;  %5669 = vmatprep.subr.bf16.mxu1 %v8334_v31  ;;  %v4052_v2 = vld [vmem:[#allocation2 + $0xd8] sm:$0xff] }
 0x50c   : > { %6247 = vmatprep.subr.bf16.mxu0 %v8334_v31 }
 0x50d   : > { %5417 = vmatmul.mubr.bf16.gmra.mrb[4].mxu1 %v7006_v4  ;;  %v4084_v4 = vld [vmem:[#allocation2 + $0x1d8] sm:$0xff] }
 0x50e   : > { %5995 = vmatmul.mubr.bf16.gmra.mrb[4].mxu0 %v7010_v6  ;;  %5424 = vmatprep.mubr.bf16.mxu1 %v7015_v60  ;;  %v7054_v6 = vcombine.low %v12174_v9, %v12173_v42  ;;  %v7058_v60 = vcombine.low %v12176_v25, %v12175_v27  ;;  %v12201_v9 = vld [vmem:[#allocation107_spill] sm:$0xff]  ;;  %v12203_v25 = vld [vmem:[#allocation109_spill] sm:$0xff] }
 0x50f   : > { %6002 = vmatprep.mubr.bf16.mxu0 %v7019_v32  ;;  %5670 = vmatpush1.bf16.msra.mxu1 %v4043_v26  ;;  %v7063_v32 = vcombine.high %v12178_v13, %v12177_v55  ;;  %v12179_v26 = vld [vmem:[#allocation61_spill] sm:$0xff] }
 0x510   : > { %6248 = vmatpush1.bf16.msra.mxu0 %v4075_v18  ;;  %5671 = vmatprep.subr.bf16.mxu1 %v8334_v31  ;;  %v12180_v18 = vld [vmem:[#allocation57_spill] sm:$0xff] }
 0x511   : > { %6249 = vmatprep.subr.bf16.mxu0 %v8334_v31 }
 0x513   : > { %5672 = vmatpush1.bf16.msra.mxu1 %v4044_v8  ;;  %v7067_v8 = vcombine.high %v12180_v18, %v12179_v26 }
 0x514   : > { %6250 = vmatpush1.bf16.msra.mxu0 %v4076_v10  ;;  %5673 = vmatprep.subr.bf16.mxu1 %v8334_v31  ;;  %v7062_v10 = vcombine.low %v12178_v13, %v12177_v55  ;;  %v12207_v13 = vld [vmem:[#allocation117_spill] sm:$0xff] }
 0x515   : > { %6251 = vmatprep.subr.bf16.mxu0 %v8334_v31  ;;  %5425 = vmatmul.mubr.bf16.gmra.mrb[8].mxu1 %v7014_v12  ;;  %v7066_v12 = vcombine.low %v12180_v18, %v12179_v26  ;;  %v4056_v18 = vld [vmem:[#allocation2 + $0xf8] sm:$0xff] }
 0x516   : > { %6003 = vmatmul.mubr.bf16.gmra.mrb[8].mxu0 %v7018_v14  ;;  %5432 = vmatprep.mubr.bf16.mxu1 %v7023_v45  ;;  %v12181_v14 = vld [vmem:[#allocation67_spill] sm:$0xff] }
 0x517   : > { %6010 = vmatprep.mubr.bf16.mxu0 %v7027_v52  ;;  %5674 = vmatpush1.bf16.msra.mxu1 %v4045_v15  ;;  %v12182_v45 = vld [vmem:[#allocation63_spill] sm:$0xff]  ;;  %v12184_v52 = vld [vmem:[#allocation65_spill] sm:$0xff] }
 0x518   : > { %6252 = vmatpush1.bf16.msra.mxu0 %v4077_v33  ;;  %5675 = vmatprep.subr.bf16.mxu1 %v8334_v31  ;;  %v7071_v58 = vcombine.high %v12182_v45, %v12181_v14  ;;  %v7075_v15 = vcombine.high %v12184_v52, %v12183_v59  ;;  %v4053_v33 = vld [vmem:[#allocation2 + $0xe0] sm:$0xff] }
 0x519   : > { %6253 = vmatprep.subr.bf16.mxu0 %v8334_v31 }
 0x51b   : > { %5676 = vmatpush1.bf16.msra.mxu1 %v4046_v16  ;;  %v4085_v16 = vld [vmem:[#allocation2 + $0x1e0] sm:$0xff] }
 0x51c   : > { %6254 = vmatpush1.bf16.msra.mxu0 %v4078_v20  ;;  %5677 = vmatprep.subr.bf16.mxu1 %v8334_v31  ;;  %v7070_v20 = vcombine.low %v12182_v45, %v12181_v14  ;;  %v12209_v14 = vld [vmem:[#allocation123_spill] sm:$0xff] }
 0x51d   : > { %6255 = vmatprep.subr.bf16.mxu0 %v8334_v31  ;;  %5433 = vmatmul.mubr.bf16.gmra.mrb[12].mxu1 %v7022_v54  ;;  %v7074_v54 = vcombine.low %v12184_v52, %v12183_v59  ;;  %v12210_v45 = vld [vmem:[#allocation119_spill] sm:$0xff]  ;;  %v12211_v59 = vld [vmem:[#allocation125_spill] sm:$0xff] }
 0x51e   : > { %6011 = vmatmul.mubr.bf16.gmra.mrb[12].mxu0 %v7026_v5  ;;  %5440 = vmatprep.mubr.bf16.mxu1 %v7031_v30  ;;  %v12185_v5 = vld [vmem:[#allocation75_spill] sm:$0xff]  ;;  %v12187_v30 = vld [vmem:[#allocation77_spill] sm:$0xff] }
 0x51f   : > { %6018 = vmatprep.mubr.bf16.mxu0 %v7035_v21  ;;  %5678 = vmatpush1.bf16.msra.mxu1 %v4047_v34  ;;  %v7079_v63 = vcombine.high %v12186_v53, %v12185_v5  ;;  %v7083_v17 = vcombine.high %v12188_v48, %v12187_v30  ;;  %v7078_v21 = vcombine.low %v12186_v53, %v12185_v5  ;;  %v12212_v52 = vld [vmem:[#allocation121_spill] sm:$0xff] }
 0x520   : > { %6256 = vmatpush1.bf16.msra.mxu0 %v4079_v3  ;;  %5679 = vmatprep.subr.bf16.mxu1 %v8334_v31  ;;  %v7082_v34 = vcombine.low %v12188_v48, %v12187_v30  ;;  %v12189_v3 = vld [vmem:[#allocation83_spill] sm:$0xff]  ;;  %v12215_v53 = vld [vmem:[#allocation133_spill] sm:$0xff] }
 0x521   : > { %6257 = vmatprep.subr.bf16.mxu0 %v8334_v31 }
 0x523   : > { %5680 = vmatpush1.bf16.msra.mxu1 %v4048_v24  ;;  %v12190_v24 = vld [vmem:[#allocation79_spill] sm:$0xff] }
 0x524   : > { %6258 = vmatpush1.bf16.msra.mxu0 %v4080_v28  ;;  %5681 = vmatprep.subr.bf16.mxu1 %v8334_v31  ;;  %v7087_v28 = vcombine.high %v12190_v24, %v12189_v3  ;;  %v7086_v38 = vcombine.low %v12190_v24, %v12189_v3  ;;  %v12219_v24 = vld [vmem:[#allocation141_spill] sm:$0xff] }
 0x525   : > { %6259 = vmatprep.subr.bf16.mxu0 %v8334_v31  ;;  %5441 = vmatmul.mubr.bf16.gmra.mrb[16].mxu1 %v7030_v19  ;;  %v12191_v19 = vld [vmem:[#allocation85_spill] sm:$0xff] }
 0x526   : > { %6019 = vmatmul.mubr.bf16.gmra.mrb[16].mxu0 %v7034_v41  ;;  %5448 = vmatprep.mubr.bf16.mxu1 %v7039_v1  ;;  %v12192_v41 = vld [vmem:[#allocation81_spill] sm:$0xff]  ;;  %v4086_v1 = vld [vmem:[#allocation2 + $0x1e8] sm:$0xff] }
 0x527   : > { %6026 = vmatprep.mubr.bf16.mxu0 %v7043_v23  ;;  %5682 = vmatpush1.bf16.msra.mxu1 %v4049_v62  ;;  %v7091_v44 = vcombine.high %v12192_v41, %v12191_v19  ;;  %v7090_v43 = vcombine.low %v12192_v41, %v12191_v19  ;;  %v12193_v23 = vld [vmem:[#allocation91_spill] sm:$0xff] }
 0x528   : > { %6260 = vmatpush1.bf16.msra.mxu0 %v4081_v39  ;;  %5683 = vmatprep.subr.bf16.mxu1 %v8334_v31  ;;  %v12194_v62 = vld [vmem:[#allocation87_spill] sm:$0xff] }
 0x529   : > { %6261 = vmatprep.subr.bf16.mxu0 %v8334_v31  ;;  %v7095_v39 = vcombine.high %v12194_v62, %v12193_v23 }
 0x52b   : > { %5684 = vmatpush1.bf16.msra.mxu1 %v4050_v11  ;;  %v12195_v11 = vld [vmem:[#allocation93_spill] sm:$0xff] }
 0x52c   : > { %6262 = vmatpush1.bf16.msra.mxu0 %v4082_v49  ;;  %5685 = vmatprep.subr.bf16.mxu1 %v8334_v31  ;;  %v12196_v49 = vld [vmem:[#allocation89_spill] sm:$0xff] }
 0x52d   : > { %6263 = vmatprep.subr.bf16.mxu0 %v8334_v31  ;;  %5449 = vmatmul.mubr.bf16.gmra.mrb[20].mxu1 %v7038_v29  ;;  %v7099_v29 = vcombine.high %v12196_v49, %v12195_v11  ;;  %v7098_v22 = vcombine.low %v12196_v49, %v12195_v11  ;;  %v12225_v49 = vld [vmem:[#allocation155_spill] sm:$0xff] }
 0x52e   : > { %6027 = vmatmul.mubr.bf16.gmra.mrb[20].mxu0 %v7042_v51  ;;  %5456 = vmatprep.mubr.bf16.mxu1 %v7047_v40  ;;  %v7094_v51 = vcombine.low %v12194_v62, %v12193_v23  ;;  %v12198_v40 = vld [vmem:[#allocation95_spill] sm:$0xff]  ;;  %v12224_v23 = vld [vmem:[#allocation145_spill] sm:$0xff] }
 0x52f   : > { %6034 = vmatprep.mubr.bf16.mxu0 %v7051_v56  ;;  %5686 = vmatpush1.bf16.msra.mxu1 %v4051_v57  ;;  %v7103_v50 = vcombine.high %v12198_v40, %v12197_v36  ;;  %v12200_v56 = vld [vmem:[#allocation97_spill] sm:$0xff] }
 0x530   : > { %6264 = vmatpush1.bf16.msra.mxu0 %v4083_v37  ;;  %5687 = vmatprep.subr.bf16.mxu1 %v8334_v31  ;;  %v7107_v57 = vcombine.high %v12200_v56, %v12199_v47  ;;  %v4055_v37 = vld [vmem:[#allocation2 + $0xf0] sm:$0xff]  ;;  %v7106_v42 = vcombine.low %v12200_v56, %v12199_v47  ;;  %v12229_v56 = vld [vmem:[#allocation163_spill] sm:$0xff] }
 0x531   : > { %6265 = vmatprep.subr.bf16.mxu0 %v8334_v31 }
 0x533   : > { %5688 = vmatpush1.bf16.msra.mxu1 %v4052_v2 }
 0x534   : > { %6266 = vmatpush1.bf16.msra.mxu0 %v4084_v4  ;;  %5689 = vmatprep.subr.bf16.mxu1 %v8334_v31 }
 0x535   : > { %5457 = vmatmul.mubr.bf16.gmra.mrb[24].mxu1 %v7046_v61  ;;  %6267 = vmatprep.subr.bf16.mxu0 %v8334_v31  ;;  %v4087_v61 = vld [vmem:[#allocation2 + $0x1f0] sm:$0xff] }
 0x536   : > { %6035 = vmatmul.mubr.bf16.gmra.mrb[24].mxu0 %v7050_v46  ;;  %5464 = vmatprep.mubr.bf16.mxu1 %v7055_v35  ;;  %v7102_v46 = vcombine.low %v12198_v40, %v12197_v36  ;;  %v12202_v35 = vld [vmem:[#allocation103_spill] sm:$0xff]  ;;  %v12228_v36 = vld [vmem:[#allocation153_spill] sm:$0xff] }
 0x537   : > { %6042 = vmatprep.mubr.bf16.mxu0 %v7059_v0  ;;  %5690 = vmatpush1.bf16.msra.mxu1 %v4053_v33  ;;  %v7111_v27 = vcombine.high %v12202_v35, %v12201_v9  ;;  %v12204_v0 = vld [vmem:[#allocation105_spill] sm:$0xff]  ;;  %v7110_v4 = vcombine.low %v12202_v35, %v12201_v9  ;;  %v7126_v33 = vcombine.low %v12210_v45, %v12209_v14 }
 0x538   : > { %6268 = vmatpush1.bf16.msra.mxu0 %v4085_v16  ;;  %5691 = vmatprep.subr.bf16.mxu1 %v8334_v31  ;;  %v7115_v2 = vcombine.high %v12204_v0, %v12203_v25  ;;  %v7130_v16 = vcombine.low %v12212_v52, %v12211_v59 }
 0x539   : > { %6269 = vmatprep.subr.bf16.mxu0 %v8334_v31 }
 0x53b   : > { %5692 = vmatpush1.bf16.msra.mxu1 %v4054_v7  ;;  %v12221_v7 = vld [vmem:[#allocation147_spill] sm:$0xff] }
 0x53c   : > { %6270 = vmatpush1.bf16.msra.mxu0 %v4086_v1  ;;  %5693 = vmatprep.subr.bf16.mxu1 %v8334_v31  ;;  %v12222_v1 = vld [vmem:[#allocation143_spill] sm:$0xff] }
 0x53d   : > { %5465 = vmatmul.mubr.bf16.gmra.mrb[28].mxu1 %v7054_v6  ;;  %6271 = vmatprep.subr.bf16.mxu0 %v8334_v31  ;;  %v12205_v6 = vld [vmem:[#allocation115_spill] sm:$0xff] }
 0x53e   : > { %6043 = vmatmul.mubr.bf16.gmra.mrb[28].mxu0 %v7058_v60  ;;  %5472 = vmatprep.mubr.bf16.mxu1 %v7063_v32  ;;  %v12206_v60 = vld [vmem:[#allocation111_spill] sm:$0xff]  ;;  %v12208_v32 = vld [vmem:[#allocation113_spill] sm:$0xff] }
 0x53f   : > { %6050 = vmatprep.mubr.bf16.mxu0 %v7067_v8  ;;  %5694 = vmatpush1.bf16.msra.mxu1 %v4055_v37  ;;  %v7119_v55 = vcombine.high %v12206_v60, %v12205_v6  ;;  %v7123_v26 = vcombine.high %v12208_v32, %v12207_v13  ;;  %v4088_v8 = vld [vmem:[#allocation2 + $0x1f8] sm:$0xff] }
 0x540   : > { %6272 = vmatpush1.bf16.msra.mxu0 %v4087_v61  ;;  %5695 = vmatprep.subr.bf16.mxu1 %v8334_v31  ;;  %v12231_v61 = vld [vmem:[#allocation165_spill] sm:$0xff] }
 0x541   : > { %6273 = vmatprep.subr.bf16.mxu0 %v8334_v31  ;;  %v7114_v31 = vcombine.low %v12204_v0, %v12203_v25  ;;  %v12234_v25 = vld [vmem:[#allocation167_spill] sm:$0xff] }
 0x543   : > { %5696 = vmatpush1.bf16.msra.mxu1 %v4056_v18  ;;  %v12240_v18 = vld [vmem:[#allocation177_spill] sm:$0xff] }
 0x544   : > { %6274 = vmatpush1.bf16.msra.mxu0 %v4088_v8 }
 0x545   : > { %5473 = vmatmul.mubr.bf16.gmra.mrb[32].mxu1 %v7062_v10  ;;  %v7118_v10 = vcombine.low %v12206_v60, %v12205_v6 }
 0x546   : > { %6051 = vmatmul.mubr.bf16.gmra.mrb[32].mxu0 %v7066_v12  ;;  %5480 = vmatprep.mubr.bf16.mxu1 %v7071_v58  ;;  %v7122_v12 = vcombine.low %v12208_v32, %v12207_v13  ;;  %v7127_v58 = vcombine.high %v12210_v45, %v12209_v14  ;;  %v12238_v13 = vld [vmem:[#allocation175_spill] sm:$0xff] }
 0x547   : > { %6058 = vmatprep.mubr.bf16.mxu0 %v7075_v15  ;;  %v7131_v15 = vcombine.high %v12212_v52, %v12211_v59  ;;  %v12241_v14 = vld [vmem:[#allocation187_spill] sm:$0xff]  ;;  %v12243_v59 = vld [vmem:[#allocation189_spill] sm:$0xff] }
 0x548   : > { %v12242_v45 = vld [vmem:[#allocation183_spill] sm:$0xff]  ;;  %v12244_v52 = vld [vmem:[#allocation185_spill] sm:$0xff] }
 0x54d   : > { %5481 = vmatmul.mubr.bf16.gmra.mrb[36].mxu1 %v7070_v20  ;;  %v12213_v20 = vld [vmem:[#allocation131_spill] sm:$0xff] }
 0x54e   : > { %6059 = vmatmul.mubr.bf16.gmra.mrb[36].mxu0 %v7074_v54  ;;  %5488 = vmatprep.mubr.bf16.mxu1 %v7079_v63  ;;  %v12214_v54 = vld [vmem:[#allocation127_spill] sm:$0xff]  ;;  %v12216_v63 = vld [vmem:[#allocation129_spill] sm:$0xff] }
 0x54f   : > { %6066 = vmatprep.mubr.bf16.mxu0 %v7083_v17  ;;  %v7135_v5 = vcombine.high %v12214_v54, %v12213_v20  ;;  %v7139_v30 = vcombine.high %v12216_v63, %v12215_v53  ;;  %v7134_v48 = vcombine.low %v12214_v54, %v12213_v20  ;;  %v7138_v17 = vcombine.low %v12216_v63, %v12215_v53  ;;  %v12245_v20 = vld [vmem:[#allocation195_spill] sm:$0xff]  ;;  %v12247_v53 = vld [vmem:[#allocation197_spill] sm:$0xff] }
 0x550   : > { %v12246_v54 = vld [vmem:[#allocation191_spill] sm:$0xff]  ;;  %v12248_v63 = vld [vmem:[#allocation193_spill] sm:$0xff] }
 0x555   : > { %5489 = vmatmul.mubr.bf16.gmra.mrb[40].mxu1 %v7078_v21  ;;  %v12217_v21 = vld [vmem:[#allocation139_spill] sm:$0xff] }
 0x556   : > { %6067 = vmatmul.mubr.bf16.gmra.mrb[40].mxu0 %v7082_v34  ;;  %5496 = vmatprep.mubr.bf16.mxu1 %v7087_v28  ;;  %v12218_v34 = vld [vmem:[#allocation135_spill] sm:$0xff]  ;;  %v12220_v28 = vld [vmem:[#allocation137_spill] sm:$0xff] }
 0x557   : > { %6074 = vmatprep.mubr.bf16.mxu0 %v7091_v44  ;;  %v7143_v3 = vcombine.high %v12218_v34, %v12217_v21  ;;  %v7147_v19 = vcombine.high %v12220_v28, %v12219_v24  ;;  %v7142_v41 = vcombine.low %v12218_v34, %v12217_v21  ;;  %v7146_v44 = vcombine.low %v12220_v28, %v12219_v24  ;;  %v12249_v21 = vld [vmem:[#allocation203_spill] sm:$0xff]  ;;  %v12251_v24 = vld [vmem:[#allocation205_spill] sm:$0xff] }
 0x558   : > { %v12250_v34 = vld [vmem:[#allocation199_spill] sm:$0xff]  ;;  %v12252_v28 = vld [vmem:[#allocation201_spill] sm:$0xff] }
 0x55d   : > { %5497 = vmatmul.mubr.bf16.gmra.mrb[44].mxu1 %v7086_v38  ;;  %v7151_v38 = vcombine.high %v12222_v1, %v12221_v7 }
 0x55e   : > { %6075 = vmatmul.mubr.bf16.gmra.mrb[44].mxu0 %v7090_v43  ;;  %5504 = vmatprep.mubr.bf16.mxu1 %v7095_v39  ;;  %v12223_v43 = vld [vmem:[#allocation149_spill] sm:$0xff]  ;;  %v7150_v39 = vcombine.low %v12222_v1, %v12221_v7  ;;  %v12253_v7 = vld [vmem:[#allocation211_spill] sm:$0xff] }
 0x55f   : > { %6082 = vmatprep.mubr.bf16.mxu0 %v7099_v29  ;;  %v7155_v62 = vcombine.high %v12224_v23, %v12223_v43  ;;  %v7154_v11 = vcombine.low %v12224_v23, %v12223_v43  ;;  %v12226_v29 = vld [vmem:[#allocation151_spill] sm:$0xff]  ;;  %v12255_v43 = vld [vmem:[#allocation213_spill] sm:$0xff] }
 0x560   : > { %v12254_v1 = vld [vmem:[#allocation207_spill] sm:$0xff]  ;;  %v12256_v23 = vld [vmem:[#allocation209_spill] sm:$0xff] }
 0x565   : > { %5505 = vmatmul.mubr.bf16.gmra.mrb[48].mxu1 %v7094_v51  ;;  %v7159_v51 = vcombine.high %v12226_v29, %v12225_v49 }
 0x566   : > { %6083 = vmatmul.mubr.bf16.gmra.mrb[48].mxu0 %v7098_v22  ;;  %5512 = vmatprep.mubr.bf16.mxu1 %v7103_v50  ;;  %v12227_v22 = vld [vmem:[#allocation157_spill] sm:$0xff]  ;;  %v7158_v50 = vcombine.low %v12226_v29, %v12225_v49  ;;  %v12257_v49 = vld [vmem:[#allocation219_spill] sm:$0xff] }
 0x567   : > { %6090 = vmatprep.mubr.bf16.mxu0 %v7107_v57  ;;  %v7163_v40 = vcombine.high %v12228_v36, %v12227_v22  ;;  %v7162_v47 = vcombine.low %v12228_v36, %v12227_v22  ;;  %v12230_v57 = vld [vmem:[#allocation159_spill] sm:$0xff]  ;;  %v12259_v22 = vld [vmem:[#allocation221_spill] sm:$0xff] }
 0x568   : > { %v7167_v37 = vcombine.high %v12230_v57, %v12229_v56  ;;  %v7166_v9 = vcombine.low %v12230_v57, %v12229_v56  ;;  %v12258_v29 = vld [vmem:[#allocation215_spill] sm:$0xff]  ;;  %v12260_v36 = vld [vmem:[#allocation217_spill] sm:$0xff] }
 0x569   : > { %v12261_v56 = vld [vmem:[#allocation227_spill] sm:$0xff] }
 0x56a   : > { %v12262_v57 = vld [vmem:[#allocation223_spill] sm:$0xff] }
 0x56d   : > { %5513 = vmatmul.mubr.bf16.gmra.mrb[52].mxu1 %v7102_v46  ;;  %v12232_v46 = vld [vmem:[#allocation161_spill] sm:$0xff] }
 0x56e   : > { %6091 = vmatmul.mubr.bf16.gmra.mrb[52].mxu0 %v7106_v42  ;;  %5520 = vmatprep.mubr.bf16.mxu1 %v7111_v27  ;;  %v7171_v42 = vcombine.high %v12232_v46, %v12231_v61  ;;  %v7170_v35 = vcombine.low %v12232_v46, %v12231_v61  ;;  %v12233_v27 = vld [vmem:[#allocation171_spill] sm:$0xff]  ;;  %v12263_v61 = vld [vmem:[#allocation229_spill] sm:$0xff] }
 0x56f   : > { %6098 = vmatprep.mubr.bf16.mxu0 %v7115_v2  ;;  %v7175_v0 = vcombine.high %v12234_v25, %v12233_v27  ;;  %v12235_v2 = vld [vmem:[#allocation173_spill] sm:$0xff]  ;;  %v7174_v6 = vcombine.low %v12234_v25, %v12233_v27  ;;  %v12265_v27 = vld [vmem:[#allocation235_spill] sm:$0xff] }
 0x570   : > { %v12264_v46 = vld [vmem:[#allocation225_spill] sm:$0xff]  ;;  %v12266_v25 = vld [vmem:[#allocation231_spill] sm:$0xff] }
 0x575   : > { %5521 = vmatmul.mubr.bf16.gmra.mrb[56].mxu1 %v7110_v4  ;;  %v12236_v4 = vld [vmem:[#allocation169_spill] sm:$0xff] }
 0x576   : > { %6099 = vmatmul.mubr.bf16.gmra.mrb[56].mxu0 %v7114_v31  ;;  %5528 = vmatprep.mubr.bf16.mxu1 %v7119_v55  ;;  %v7179_v31 = vcombine.high %v12236_v4, %v12235_v2  ;;  %v7178_v60 = vcombine.low %v12236_v4, %v12235_v2  ;;  %v12237_v55 = vld [vmem:[#allocation179_spill] sm:$0xff]  ;;  %v12267_v2 = vld [vmem:[#allocation237_spill] sm:$0xff] }
 0x577   : > { %6106 = vmatprep.mubr.bf16.mxu0 %v7123_v26  ;;  %v7183_v32 = vcombine.high %v12238_v13, %v12237_v55  ;;  %v12239_v26 = vld [vmem:[#allocation181_spill] sm:$0xff] }
 0x578   : > { %v7187_v8 = vcombine.high %v12240_v18, %v12239_v26  ;;  %v12268_v4 = vld [vmem:[#allocation233_spill] sm:$0xff] }
 0x57d   : > { %5529 = vmatmul.mubr.bf16.gmra.mrb[60].mxu1 %v7118_v10  ;;  %v7182_v10 = vcombine.low %v12238_v13, %v12237_v55  ;;  %v12269_v55 = vld [vmem:[#allocation243_spill] sm:$0xff] }
 0x57e   : > { %6107 = vmatmul.mubr.bf16.gmra.mrb[60].mxu0 %v7122_v12  ;;  %5536 = vmatprep.mubr.bf16.mxu1 %v7127_v58  ;;  %v7186_v12 = vcombine.low %v12240_v18, %v12239_v26  ;;  %v7191_v58 = vcombine.high %v12242_v45, %v12241_v14  ;;  %v12270_v13 = vld [vmem:[#allocation239_spill] sm:$0xff]  ;;  %v12271_v26 = vld [vmem:[#allocation245_spill] sm:$0xff] }
 0x57f   : > { %6114 = vmatprep.mubr.bf16.mxu0 %v7131_v15  ;;  %v7195_v15 = vcombine.high %v12244_v52, %v12243_v59  ;;  %v12272_v18 = vld [vmem:[#allocation241_spill] sm:$0xff] }
 0x585   : > { %5537 = vmatmul.mubr.bf16.gmra.mrb[64].mxu1 %v7126_v33  ;;  %v7190_v33 = vcombine.low %v12242_v45, %v12241_v14  ;;  %v12273_v14 = vld [vmem:[#allocation5_spill] sm:$0xff]  ;;  %v12274_v45 = vld [vmem:[#allocation3_spill] sm:$0xff] }
 0x586   : > { %6115 = vmatmul.mubr.bf16.gmra.mrb[64].mxu0 %v7130_v16  ;;  %5544 = vmatprep.mubr.bf16.mxu1 %v7135_v5  ;;  %v7194_v16 = vcombine.low %v12244_v52, %v12243_v59  ;;  %v7199_v5 = vcombine.high %v12246_v54, %v12245_v20  ;;  %v12275_v59 = vld [vmem:[#allocation6_spill] sm:$0xff]  ;;  %v12276_v52 = vld [vmem:[#allocation4_spill] sm:$0xff] }
 0x587   : > { %6122 = vmatprep.mubr.bf16.mxu0 %v7139_v30  ;;  %v7203_v30 = vcombine.high %v12248_v63, %v12247_v53 }
 0x58d   : > { %5545 = vmatmul.mubr.bf16.gmra.mrb[68].mxu1 %v7134_v48  ;;  %v7198_v48 = vcombine.low %v12246_v54, %v12245_v20  ;;  %v12277_v20 = vld [vmem:[#allocation9_spill] sm:$0xff]  ;;  %v12278_v54 = vld [vmem:[#allocation7_spill] sm:$0xff] }
 0x58e   : > { %6123 = vmatmul.mubr.bf16.gmra.mrb[68].mxu0 %v7138_v17  ;;  %5552 = vmatprep.mubr.bf16.mxu1 %v7143_v3  ;;  %v7202_v17 = vcombine.low %v12248_v63, %v12247_v53  ;;  %v7207_v3 = vcombine.high %v12250_v34, %v12249_v21  ;;  %v12279_v53 = vld [vmem:[#allocation10_spill] sm:$0xff]  ;;  %v12280_v63 = vld [vmem:[#allocation8_spill] sm:$0xff] }
 0x58f   : > { %6130 = vmatprep.mubr.bf16.mxu0 %v7147_v19  ;;  %v7211_v19 = vcombine.high %v12252_v28, %v12251_v24 }
 0x595   : > { %5553 = vmatmul.mubr.bf16.gmra.mrb[72].mxu1 %v7142_v41  ;;  %v7206_v41 = vcombine.low %v12250_v34, %v12249_v21  ;;  %v12281_v21 = vld [vmem:[#allocation14_spill] sm:$0xff]  ;;  %v12282_v34 = vld [vmem:[#allocation11_spill] sm:$0xff] }
 0x596   : > { %6131 = vmatmul.mubr.bf16.gmra.mrb[72].mxu0 %v7146_v44  ;;  %5560 = vmatprep.mubr.bf16.mxu1 %v7151_v38  ;;  %v7210_v44 = vcombine.low %v12252_v28, %v12251_v24  ;;  %v7215_v38 = vcombine.high %v12254_v1, %v12253_v7  ;;  %v12283_v24 = vld [vmem:[#allocation16_spill] sm:$0xff]  ;;  %v12284_v28 = vld [vmem:[#allocation13_spill] sm:$0xff] }
 0x597   : > { %6138 = vmatprep.mubr.bf16.mxu0 %v7155_v62  ;;  %v7219_v62 = vcombine.high %v12256_v23, %v12255_v43 }
 0x59d   : > { %5561 = vmatmul.mubr.bf16.gmra.mrb[76].mxu1 %v7150_v39  ;;  %v7214_v39 = vcombine.low %v12254_v1, %v12253_v7  ;;  %v12285_v7 = vld [vmem:[#allocation20_spill] sm:$0xff]  ;;  %v12286_v1 = vld [vmem:[#allocation17_spill] sm:$0xff] }
 0x59e   : > { %6139 = vmatmul.mubr.bf16.gmra.mrb[76].mxu0 %v7154_v11  ;;  %5568 = vmatprep.mubr.bf16.mxu1 %v7159_v51  ;;  %v7218_v11 = vcombine.low %v12256_v23, %v12255_v43  ;;  %v7223_v51 = vcombine.high %v12258_v29, %v12257_v49  ;;  %v12287_v43 = vld [vmem:[#allocation22_spill] sm:$0xff]  ;;  %v12288_v23 = vld [vmem:[#allocation19_spill] sm:$0xff] }
 0x59f   : > { %6146 = vmatprep.mubr.bf16.mxu0 %v7163_v40  ;;  %v7227_v40 = vcombine.high %v12260_v36, %v12259_v22 }
 0x5a5   : > { %5569 = vmatmul.mubr.bf16.gmra.mrb[80].mxu1 %v7158_v50  ;;  %v7222_v50 = vcombine.low %v12258_v29, %v12257_v49  ;;  %v12289_v49 = vld [vmem:[#allocation28_spill] sm:$0xff] }
 0x5a6   : > { %6147 = vmatmul.mubr.bf16.gmra.mrb[80].mxu0 %v7162_v47  ;;  %5576 = vmatprep.mubr.bf16.mxu1 %v7167_v37  ;;  %v7226_v47 = vcombine.low %v12260_v36, %v12259_v22  ;;  %v7231_v37 = vcombine.high %v12262_v57, %v12261_v56  ;;  %v12290_v29 = vld [vmem:[#allocation24_spill] sm:$0xff]  ;;  %v12291_v22 = vld [vmem:[#allocation30_spill] sm:$0xff] }
 0x5a7   : > { %6154 = vmatprep.mubr.bf16.mxu0 %v7171_v42  ;;  %v7235_v42 = vcombine.high %v12264_v46, %v12263_v61  ;;  %v12292_v36 = vld [vmem:[#allocation26_spill] sm:$0xff] }
 0x5ad   : > { %5577 = vmatmul.mubr.bf16.gmra.mrb[84].mxu1 %v7166_v9  ;;  %v7230_v9 = vcombine.low %v12262_v57, %v12261_v56  ;;  %v12293_v56 = vld [vmem:[#allocation36_spill] sm:$0xff] }
 0x5ae   : > { %6155 = vmatmul.mubr.bf16.gmra.mrb[84].mxu0 %v7170_v35  ;;  %5584 = vmatprep.mubr.bf16.mxu1 %v7175_v0  ;;  %v7234_v35 = vcombine.low %v12264_v46, %v12263_v61  ;;  %v7239_v0 = vcombine.high %v12266_v25, %v12265_v27  ;;  %v12294_v57 = vld [vmem:[#allocation32_spill] sm:$0xff]  ;;  %v12295_v61 = vld [vmem:[#allocation38_spill] sm:$0xff] }
 0x5af   : > { %6162 = vmatprep.mubr.bf16.mxu0 %v7179_v31  ;;  %v7243_v31 = vcombine.high %v12268_v4, %v12267_v2  ;;  %v12296_v46 = vld [vmem:[#allocation34_spill] sm:$0xff] }
 0x5b5   : > { %5585 = vmatmul.mubr.bf16.gmra.mrb[88].mxu1 %v7174_v6  ;;  %v7238_v6 = vcombine.low %v12266_v25, %v12265_v27  ;;  %v12297_v27 = vld [vmem:[#allocation44_spill] sm:$0xff] }
 0x5b6   : > { %6163 = vmatmul.mubr.bf16.gmra.mrb[88].mxu0 %v7178_v60  ;;  %5592 = vmatprep.mubr.bf16.mxu1 %v7183_v32  ;;  %v7242_v60 = vcombine.low %v12268_v4, %v12267_v2  ;;  %v7247_v32 = vcombine.high %v12270_v13, %v12269_v55  ;;  %v12298_v25 = vld [vmem:[#allocation40_spill] sm:$0xff]  ;;  %v12299_v2 = vld [vmem:[#allocation46_spill] sm:$0xff] }
 0x5b7   : > { %6170 = vmatprep.mubr.bf16.mxu0 %v7187_v8  ;;  %v7251_v8 = vcombine.high %v12272_v18, %v12271_v26  ;;  %v12300_v4 = vld [vmem:[#allocation42_spill] sm:$0xff] }
 0x5bd   : > { %5593 = vmatmul.mubr.bf16.gmra.mrb[92].mxu1 %v7182_v10  ;;  %v7246_v10 = vcombine.low %v12270_v13, %v12269_v55  ;;  %v12301_v55 = vld [vmem:[#allocation52_spill] sm:$0xff] }
 0x5be   : > { %6171 = vmatmul.mubr.bf16.gmra.mrb[92].mxu0 %v7186_v12  ;;  %5600 = vmatprep.mubr.bf16.mxu1 %v7191_v58  ;;  %v7250_v12 = vcombine.low %v12272_v18, %v12271_v26  ;;  %v7001_v58 = vcombine.high %v12274_v45, %v12273_v14  ;;  %v12302_v13 = vld [vmem:[#allocation48_spill] sm:$0xff]  ;;  %v12303_v26 = vld [vmem:[#allocation54_spill] sm:$0xff] }
 0x5bf   : > { %6178 = vmatprep.mubr.bf16.mxu0 %v7195_v15  ;;  %v7005_v15 = vcombine.high %v12276_v52, %v12275_v59  ;;  %v12304_v18 = vld [vmem:[#allocation50_spill] sm:$0xff] }
 0x5c5   : > { %5601 = vmatmul.mubr.bf16.gmra.mrb[96].mxu1 %v7190_v33  ;;  %v7000_v33 = vcombine.low %v12274_v45, %v12273_v14  ;;  %v12305_v14 = vld [vmem:[#allocation60_spill] sm:$0xff] }
 0x5c6   : > { %6179 = vmatmul.mubr.bf16.gmra.mrb[96].mxu0 %v7194_v16  ;;  %5608 = vmatprep.mubr.bf16.mxu1 %v7199_v5  ;;  %v7004_v16 = vcombine.low %v12276_v52, %v12275_v59  ;;  %v7009_v5 = vcombine.high %v12278_v54, %v12277_v20  ;;  %v12306_v45 = vld [vmem:[#allocation56_spill] sm:$0xff]  ;;  %v12307_v59 = vld [vmem:[#allocation62_spill] sm:$0xff] }
 0x5c7   : > { %6186 = vmatprep.mubr.bf16.mxu0 %v7203_v30  ;;  %v7013_v30 = vcombine.high %v12280_v63, %v12279_v53  ;;  %v12308_v52 = vld [vmem:[#allocation58_spill] sm:$0xff] }
 0x5cd   : > { %5609 = vmatmul.mubr.bf16.gmra.mrb[100].mxu1 %v7198_v48  ;;  %v7008_v48 = vcombine.low %v12278_v54, %v12277_v20  ;;  %v12309_v20 = vld [vmem:[#allocation68_spill] sm:$0xff] }
 0x5ce   : > { %6187 = vmatmul.mubr.bf16.gmra.mrb[100].mxu0 %v7202_v17  ;;  %5616 = vmatprep.mubr.bf16.mxu1 %v7207_v3  ;;  %v7012_v17 = vcombine.low %v12280_v63, %v12279_v53  ;;  %v7017_v3 = vcombine.high %v12282_v34, %v12281_v21  ;;  %v12310_v54 = vld [vmem:[#allocation64_spill] sm:$0xff]  ;;  %v12311_v53 = vld [vmem:[#allocation70_spill] sm:$0xff] }
 0x5cf   : > { %6194 = vmatprep.mubr.bf16.mxu0 %v7211_v19  ;;  %v7021_v19 = vcombine.high %v12284_v28, %v12283_v24  ;;  %v12312_v63 = vld [vmem:[#allocation66_spill] sm:$0xff] }
 0x5d5   : > { %5617 = vmatmul.mubr.bf16.gmra.mrb[104].mxu1 %v7206_v41  ;;  %v7016_v41 = vcombine.low %v12282_v34, %v12281_v21  ;;  %v12313_v21 = vld [vmem:[#allocation76_spill] sm:$0xff] }
 0x5d6   : > { %6195 = vmatmul.mubr.bf16.gmra.mrb[104].mxu0 %v7210_v44  ;;  %5624 = vmatprep.mubr.bf16.mxu1 %v7215_v38  ;;  %v7020_v44 = vcombine.low %v12284_v28, %v12283_v24  ;;  %v7025_v38 = vcombine.high %v12286_v1, %v12285_v7  ;;  %v12314_v34 = vld [vmem:[#allocation72_spill] sm:$0xff]  ;;  %v12315_v24 = vld [vmem:[#allocation78_spill] sm:$0xff] }
 0x5d7   : > { %6202 = vmatprep.mubr.bf16.mxu0 %v7219_v62  ;;  %v7029_v62 = vcombine.high %v12288_v23, %v12287_v43  ;;  %v12316_v28 = vld [vmem:[#allocation74_spill] sm:$0xff] }
 0x5dd   : > { %5625 = vmatmul.mubr.bf16.gmra.mrb[108].mxu1 %v7214_v39  ;;  %v7024_v39 = vcombine.low %v12286_v1, %v12285_v7  ;;  %v12317_v7 = vld [vmem:[#allocation84_spill] sm:$0xff] }
 0x5de   : > { %6203 = vmatmul.mubr.bf16.gmra.mrb[108].mxu0 %v7218_v11  ;;  %5632 = vmatprep.mubr.bf16.mxu1 %v7223_v51  ;;  %v7028_v11 = vcombine.low %v12288_v23, %v12287_v43  ;;  %v7033_v51 = vcombine.high %v12290_v29, %v12289_v49  ;;  %v12318_v1 = vld [vmem:[#allocation80_spill] sm:$0xff]  ;;  %v12319_v43 = vld [vmem:[#allocation86_spill] sm:$0xff] }
 0x5df   : > { %6210 = vmatprep.mubr.bf16.mxu0 %v7227_v40  ;;  %v7037_v40 = vcombine.high %v12292_v36, %v12291_v22  ;;  %v12320_v23 = vld [vmem:[#allocation82_spill] sm:$0xff] }
 0x5e5   : > { %5633 = vmatmul.mubr.bf16.gmra.mrb[112].mxu1 %v7222_v50  ;;  %v7032_v50 = vcombine.low %v12290_v29, %v12289_v49  ;;  %v12321_v49 = vld [vmem:[#allocation92_spill] sm:$0xff] }
 0x5e6   : > { %6211 = vmatmul.mubr.bf16.gmra.mrb[112].mxu0 %v7226_v47  ;;  %5640 = vmatprep.mubr.bf16.mxu1 %v7231_v37  ;;  %v7036_v47 = vcombine.low %v12292_v36, %v12291_v22  ;;  %v7041_v37 = vcombine.high %v12294_v57, %v12293_v56  ;;  %v12322_v29 = vld [vmem:[#allocation88_spill] sm:$0xff]  ;;  %v12323_v22 = vld [vmem:[#allocation94_spill] sm:$0xff] }
 0x5e7   : > { %6218 = vmatprep.mubr.bf16.mxu0 %v7235_v42  ;;  %v7045_v42 = vcombine.high %v12296_v46, %v12295_v61  ;;  %v12324_v36 = vld [vmem:[#allocation90_spill] sm:$0xff] }
 0x5ed   : > { %5641 = vmatmul.mubr.bf16.gmra.mrb[116].mxu1 %v7230_v9  ;;  %v7040_v9 = vcombine.low %v12294_v57, %v12293_v56  ;;  %v12325_v56 = vld [vmem:[#allocation100_spill] sm:$0xff] }
 0x5ee   : > { %6219 = vmatmul.mubr.bf16.gmra.mrb[116].mxu0 %v7234_v35  ;;  %5648 = vmatprep.mubr.bf16.mxu1 %v7239_v0  ;;  %v7044_v35 = vcombine.low %v12296_v46, %v12295_v61  ;;  %v7049_v0 = vcombine.high %v12298_v25, %v12297_v27  ;;  %v12326_v57 = vld [vmem:[#allocation96_spill] sm:$0xff]  ;;  %v12327_v61 = vld [vmem:[#allocation102_spill] sm:$0xff] }
 0x5ef   : > { %6226 = vmatprep.mubr.bf16.mxu0 %v7243_v31  ;;  %v7053_v31 = vcombine.high %v12300_v4, %v12299_v2  ;;  %v12328_v46 = vld [vmem:[#allocation98_spill] sm:$0xff] }
 0x5f5   : > { %5649 = vmatmul.mubr.bf16.gmra.mrb[120].mxu1 %v7238_v6  ;;  %v7048_v6 = vcombine.low %v12298_v25, %v12297_v27  ;;  %v12329_v27 = vld [vmem:[#allocation108_spill] sm:$0xff] }
 0x5f6   : > { %6227 = vmatmul.mubr.bf16.gmra.mrb[120].mxu0 %v7242_v60  ;;  %5656 = vmatprep.mubr.bf16.mxu1 %v7247_v32  ;;  %v7052_v60 = vcombine.low %v12300_v4, %v12299_v2  ;;  %v7057_v32 = vcombine.high %v12302_v13, %v12301_v55  ;;  %v12330_v25 = vld [vmem:[#allocation104_spill] sm:$0xff]  ;;  %v12331_v2 = vld [vmem:[#allocation110_spill] sm:$0xff] }
 0x5f7   : > { %6234 = vmatprep.mubr.bf16.mxu0 %v7251_v8  ;;  %v7061_v8 = vcombine.high %v12304_v18, %v12303_v26  ;;  %v12332_v4 = vld [vmem:[#allocation106_spill] sm:$0xff] }
 0x5fd   : > { %5657 = vmatmul.mubr.bf16.gmra.mrb[124].mxu1 %v7246_v10  ;;  %v7056_v10 = vcombine.low %v12302_v13, %v12301_v55  ;;  %v12333_v55 = vld [vmem:[#allocation116_spill] sm:$0xff] }
 0x5fe   : > { %6235 = vmatmul.mubr.bf16.gmra.mrb[124].mxu0 %v7250_v12  ;;  %5697 = vmatprep.mubr.bf16.mxu1 %v7001_v58  ;;  %v7060_v12 = vcombine.low %v12304_v18, %v12303_v26  ;;  %v7065_v58 = vcombine.high %v12306_v45, %v12305_v14  ;;  %v12334_v13 = vld [vmem:[#allocation112_spill] sm:$0xff]  ;;  %v12335_v26 = vld [vmem:[#allocation118_spill] sm:$0xff] }
 0x5ff   : > { %6275 = vmatprep.mubr.bf16.mxu0 %v7005_v15  ;;  %v7069_v15 = vcombine.high %v12308_v52, %v12307_v59  ;;  %v12336_v18 = vld [vmem:[#allocation114_spill] sm:$0xff] }
 0x605   : > { %5698 = vmatmul.mubr.bf16.vlgmr.msra.gmra.mrb[0].mxu1 %v7000_v33  ;;  %v7064_v33 = vcombine.low %v12306_v45, %v12305_v14  ;;  %v12337_v14 = vld [vmem:[#allocation124_spill] sm:$0xff] }
 0x606   : > { %6276 = vmatmul.mubr.bf16.vlgmr.msra.gmra.mrb[0].mxu0 %v7004_v16  ;;  %5705 = vmatprep.mubr.bf16.mxu1 %v7009_v5  ;;  %v7068_v16 = vcombine.low %v12308_v52, %v12307_v59  ;;  %v7073_v5 = vcombine.high %v12310_v54, %v12309_v20  ;;  %v12338_v45 = vld [vmem:[#allocation120_spill] sm:$0xff]  ;;  %v12339_v59 = vld [vmem:[#allocation126_spill] sm:$0xff] }
 0x607   : > { %6283 = vmatprep.mubr.bf16.mxu0 %v7013_v30  ;;  %v7077_v30 = vcombine.high %v12312_v63, %v12311_v53  ;;  %v12340_v52 = vld [vmem:[#allocation122_spill] sm:$0xff] }
 0x60d   : > { %5706 = vmatmul.mubr.bf16.gmra.mrb[4].mxu1 %v7008_v48  ;;  %v7072_v48 = vcombine.low %v12310_v54, %v12309_v20  ;;  %v12341_v20 = vld [vmem:[#allocation132_spill] sm:$0xff] }
 0x60e   : > { %6284 = vmatmul.mubr.bf16.gmra.mrb[4].mxu0 %v7012_v17  ;;  %5713 = vmatprep.mubr.bf16.mxu1 %v7017_v3  ;;  %v7076_v17 = vcombine.low %v12312_v63, %v12311_v53  ;;  %v7081_v3 = vcombine.high %v12314_v34, %v12313_v21  ;;  %v12342_v54 = vld [vmem:[#allocation128_spill] sm:$0xff]  ;;  %v12343_v53 = vld [vmem:[#allocation134_spill] sm:$0xff] }
 0x60f   : > { %6291 = vmatprep.mubr.bf16.mxu0 %v7021_v19  ;;  %v7085_v19 = vcombine.high %v12316_v28, %v12315_v24  ;;  %v12344_v63 = vld [vmem:[#allocation130_spill] sm:$0xff] }
 0x615   : > { %5714 = vmatmul.mubr.bf16.gmra.mrb[8].mxu1 %v7016_v41  ;;  %v7080_v41 = vcombine.low %v12314_v34, %v12313_v21  ;;  %v12345_v21 = vld [vmem:[#allocation140_spill] sm:$0xff] }
 0x616   : > { %6292 = vmatmul.mubr.bf16.gmra.mrb[8].mxu0 %v7020_v44  ;;  %5721 = vmatprep.mubr.bf16.mxu1 %v7025_v38  ;;  %v7084_v44 = vcombine.low %v12316_v28, %v12315_v24  ;;  %v7089_v38 = vcombine.high %v12318_v1, %v12317_v7  ;;  %v12346_v34 = vld [vmem:[#allocation136_spill] sm:$0xff]  ;;  %v12347_v24 = vld [vmem:[#allocation142_spill] sm:$0xff] }
 0x617   : > { %6299 = vmatprep.mubr.bf16.mxu0 %v7029_v62  ;;  %v7093_v62 = vcombine.high %v12320_v23, %v12319_v43  ;;  %v12348_v28 = vld [vmem:[#allocation138_spill] sm:$0xff] }
 0x61d   : > { %5722 = vmatmul.mubr.bf16.gmra.mrb[12].mxu1 %v7024_v39  ;;  %v7088_v39 = vcombine.low %v12318_v1, %v12317_v7  ;;  %v12349_v7 = vld [vmem:[#allocation148_spill] sm:$0xff] }
 0x61e   : > { %6300 = vmatmul.mubr.bf16.gmra.mrb[12].mxu0 %v7028_v11  ;;  %5729 = vmatprep.mubr.bf16.mxu1 %v7033_v51  ;;  %v7092_v11 = vcombine.low %v12320_v23, %v12319_v43  ;;  %v7097_v51 = vcombine.high %v12322_v29, %v12321_v49  ;;  %v12350_v1 = vld [vmem:[#allocation144_spill] sm:$0xff]  ;;  %v12351_v43 = vld [vmem:[#allocation150_spill] sm:$0xff] }
 0x61f   : > { %6307 = vmatprep.mubr.bf16.mxu0 %v7037_v40  ;;  %v7101_v40 = vcombine.high %v12324_v36, %v12323_v22  ;;  %v12352_v23 = vld [vmem:[#allocation146_spill] sm:$0xff] }
 0x625   : > { %5730 = vmatmul.mubr.bf16.gmra.mrb[16].mxu1 %v7032_v50  ;;  %v7096_v50 = vcombine.low %v12322_v29, %v12321_v49  ;;  %v12353_v49 = vld [vmem:[#allocation156_spill] sm:$0xff] }
 0x626   : > { %6308 = vmatmul.mubr.bf16.gmra.mrb[16].mxu0 %v7036_v47  ;;  %5737 = vmatprep.mubr.bf16.mxu1 %v7041_v37  ;;  %v7100_v47 = vcombine.low %v12324_v36, %v12323_v22  ;;  %v7105_v37 = vcombine.high %v12326_v57, %v12325_v56  ;;  %v12354_v29 = vld [vmem:[#allocation152_spill] sm:$0xff]  ;;  %v12355_v22 = vld [vmem:[#allocation158_spill] sm:$0xff] }
 0x627   : > { %6315 = vmatprep.mubr.bf16.mxu0 %v7045_v42  ;;  %v7109_v42 = vcombine.high %v12328_v46, %v12327_v61  ;;  %v12356_v36 = vld [vmem:[#allocation154_spill] sm:$0xff] }
 0x62d   : > { %5738 = vmatmul.mubr.bf16.gmra.mrb[20].mxu1 %v7040_v9  ;;  %v7104_v9 = vcombine.low %v12326_v57, %v12325_v56  ;;  %v12357_v56 = vld [vmem:[#allocation164_spill] sm:$0xff] }
 0x62e   : > { %6316 = vmatmul.mubr.bf16.gmra.mrb[20].mxu0 %v7044_v35  ;;  %5745 = vmatprep.mubr.bf16.mxu1 %v7049_v0  ;;  %v7108_v35 = vcombine.low %v12328_v46, %v12327_v61  ;;  %v7113_v0 = vcombine.high %v12330_v25, %v12329_v27  ;;  %v12358_v57 = vld [vmem:[#allocation160_spill] sm:$0xff]  ;;  %v12359_v61 = vld [vmem:[#allocation166_spill] sm:$0xff] }
 0x62f   : > { %6323 = vmatprep.mubr.bf16.mxu0 %v7053_v31  ;;  %v7117_v31 = vcombine.high %v12332_v4, %v12331_v2  ;;  %v12360_v46 = vld [vmem:[#allocation162_spill] sm:$0xff] }
 0x635   : > { %5746 = vmatmul.mubr.bf16.gmra.mrb[24].mxu1 %v7048_v6  ;;  %v7112_v6 = vcombine.low %v12330_v25, %v12329_v27  ;;  %v12361_v27 = vld [vmem:[#allocation172_spill] sm:$0xff] }
 0x636   : > { %6324 = vmatmul.mubr.bf16.gmra.mrb[24].mxu0 %v7052_v60  ;;  %5753 = vmatprep.mubr.bf16.mxu1 %v7057_v32  ;;  %v7116_v60 = vcombine.low %v12332_v4, %v12331_v2  ;;  %v7121_v32 = vcombine.high %v12334_v13, %v12333_v55  ;;  %v12362_v25 = vld [vmem:[#allocation168_spill] sm:$0xff]  ;;  %v12363_v2 = vld [vmem:[#allocation174_spill] sm:$0xff] }
 0x637   : > { %6331 = vmatprep.mubr.bf16.mxu0 %v7061_v8  ;;  %v7125_v8 = vcombine.high %v12336_v18, %v12335_v26  ;;  %v12364_v4 = vld [vmem:[#allocation170_spill] sm:$0xff] }
 0x63d   : > { %5754 = vmatmul.mubr.bf16.gmra.mrb[28].mxu1 %v7056_v10  ;;  %v7120_v10 = vcombine.low %v12334_v13, %v12333_v55  ;;  %v12365_v55 = vld [vmem:[#allocation180_spill] sm:$0xff] }
 0x63e   : > { %6332 = vmatmul.mubr.bf16.gmra.mrb[28].mxu0 %v7060_v12  ;;  %5761 = vmatprep.mubr.bf16.mxu1 %v7065_v58  ;;  %v7124_v12 = vcombine.low %v12336_v18, %v12335_v26  ;;  %v7129_v58 = vcombine.high %v12338_v45, %v12337_v14  ;;  %v12366_v13 = vld [vmem:[#allocation176_spill] sm:$0xff]  ;;  %v12367_v26 = vld [vmem:[#allocation182_spill] sm:$0xff] }
 0x63f   : > { %6339 = vmatprep.mubr.bf16.mxu0 %v7069_v15  ;;  %v7133_v15 = vcombine.high %v12340_v52, %v12339_v59  ;;  %v12368_v18 = vld [vmem:[#allocation178_spill] sm:$0xff] }
 0x645   : > { %5762 = vmatmul.mubr.bf16.gmra.mrb[32].mxu1 %v7064_v33  ;;  %v7128_v33 = vcombine.low %v12338_v45, %v12337_v14  ;;  %v12369_v14 = vld [vmem:[#allocation188_spill] sm:$0xff] }
 0x646   : > { %6340 = vmatmul.mubr.bf16.gmra.mrb[32].mxu0 %v7068_v16  ;;  %5769 = vmatprep.mubr.bf16.mxu1 %v7073_v5  ;;  %v7132_v16 = vcombine.low %v12340_v52, %v12339_v59  ;;  %v7137_v5 = vcombine.high %v12342_v54, %v12341_v20  ;;  %v12370_v45 = vld [vmem:[#allocation184_spill] sm:$0xff]  ;;  %v12371_v59 = vld [vmem:[#allocation190_spill] sm:$0xff] }
 0x647   : > { %6347 = vmatprep.mubr.bf16.mxu0 %v7077_v30  ;;  %v7141_v30 = vcombine.high %v12344_v63, %v12343_v53  ;;  %v12372_v52 = vld [vmem:[#allocation186_spill] sm:$0xff] }
 0x64d   : > { %5770 = vmatmul.mubr.bf16.gmra.mrb[36].mxu1 %v7072_v48  ;;  %v7136_v48 = vcombine.low %v12342_v54, %v12341_v20  ;;  %v12373_v20 = vld [vmem:[#allocation196_spill] sm:$0xff] }
 0x64e   : > { %6348 = vmatmul.mubr.bf16.gmra.mrb[36].mxu0 %v7076_v17  ;;  %5777 = vmatprep.mubr.bf16.mxu1 %v7081_v3  ;;  %v7140_v17 = vcombine.low %v12344_v63, %v12343_v53  ;;  %v7145_v3 = vcombine.high %v12346_v34, %v12345_v21  ;;  %v12374_v54 = vld [vmem:[#allocation192_spill] sm:$0xff]  ;;  %v12375_v53 = vld [vmem:[#allocation198_spill] sm:$0xff] }
 0x64f   : > { %6355 = vmatprep.mubr.bf16.mxu0 %v7085_v19  ;;  %v7149_v19 = vcombine.high %v12348_v28, %v12347_v24  ;;  %v12376_v63 = vld [vmem:[#allocation194_spill] sm:$0xff] }
 0x655   : > { %5778 = vmatmul.mubr.bf16.gmra.mrb[40].mxu1 %v7080_v41  ;;  %v7144_v41 = vcombine.low %v12346_v34, %v12345_v21  ;;  %v12377_v21 = vld [vmem:[#allocation204_spill] sm:$0xff] }
 0x656   : > { %6356 = vmatmul.mubr.bf16.gmra.mrb[40].mxu0 %v7084_v44  ;;  %5785 = vmatprep.mubr.bf16.mxu1 %v7089_v38  ;;  %v7148_v44 = vcombine.low %v12348_v28, %v12347_v24  ;;  %v7153_v38 = vcombine.high %v12350_v1, %v12349_v7  ;;  %v12378_v34 = vld [vmem:[#allocation200_spill] sm:$0xff]  ;;  %v12379_v24 = vld [vmem:[#allocation206_spill] sm:$0xff] }
 0x657   : > { %6363 = vmatprep.mubr.bf16.mxu0 %v7093_v62  ;;  %v7157_v62 = vcombine.high %v12352_v23, %v12351_v43  ;;  %v12380_v28 = vld [vmem:[#allocation202_spill] sm:$0xff] }
 0x65d   : > { %5786 = vmatmul.mubr.bf16.gmra.mrb[44].mxu1 %v7088_v39  ;;  %v7152_v39 = vcombine.low %v12350_v1, %v12349_v7  ;;  %v12381_v7 = vld [vmem:[#allocation212_spill] sm:$0xff] }
 0x65e   : > { %6364 = vmatmul.mubr.bf16.gmra.mrb[44].mxu0 %v7092_v11  ;;  %5793 = vmatprep.mubr.bf16.mxu1 %v7097_v51  ;;  %v7156_v11 = vcombine.low %v12352_v23, %v12351_v43  ;;  %v7161_v51 = vcombine.high %v12354_v29, %v12353_v49  ;;  %v12382_v1 = vld [vmem:[#allocation208_spill] sm:$0xff]  ;;  %v12383_v43 = vld [vmem:[#allocation214_spill] sm:$0xff] }
 0x65f   : > { %6371 = vmatprep.mubr.bf16.mxu0 %v7101_v40  ;;  %v7165_v40 = vcombine.high %v12356_v36, %v12355_v22  ;;  %v12384_v23 = vld [vmem:[#allocation210_spill] sm:$0xff] }
 0x665   : > { %5794 = vmatmul.mubr.bf16.gmra.mrb[48].mxu1 %v7096_v50  ;;  %v7160_v50 = vcombine.low %v12354_v29, %v12353_v49 }
 0x666   : > { %6372 = vmatmul.mubr.bf16.gmra.mrb[48].mxu0 %v7100_v47  ;;  %5801 = vmatprep.mubr.bf16.mxu1 %v7105_v37  ;;  %v7164_v47 = vcombine.low %v12356_v36, %v12355_v22  ;;  %v7169_v37 = vcombine.high %v12358_v57, %v12357_v56  ;;  %v7216_v36 = vcombine.low %v12382_v1, %v12381_v7 }
 0x667   : > { %6379 = vmatprep.mubr.bf16.mxu0 %v7109_v42  ;;  %v7173_v42 = vcombine.high %v12360_v46, %v12359_v61 }
 0x66d   : > { %5802 = vmatmul.mubr.bf16.gmra.mrb[52].mxu1 %v7104_v9  ;;  %v7168_v9 = vcombine.low %v12358_v57, %v12357_v56  ;;  %v12385_v56 = vld [vmem:[#allocation220_spill] sm:$0xff] }
 0x66e   : > { %6380 = vmatmul.mubr.bf16.gmra.mrb[52].mxu0 %v7108_v35  ;;  %5809 = vmatprep.mubr.bf16.mxu1 %v7113_v0  ;;  %v7172_v35 = vcombine.low %v12360_v46, %v12359_v61  ;;  %v7177_v0 = vcombine.high %v12362_v25, %v12361_v27  ;;  %v12386_v57 = vld [vmem:[#allocation216_spill] sm:$0xff]  ;;  %v12387_v61 = vld [vmem:[#allocation222_spill] sm:$0xff] }
 0x66f   : > { %6387 = vmatprep.mubr.bf16.mxu0 %v7117_v31  ;;  %v7181_v31 = vcombine.high %v12364_v4, %v12363_v2  ;;  %v12388_v46 = vld [vmem:[#allocation218_spill] sm:$0xff] }
 0x675   : > { %5810 = vmatmul.mubr.bf16.gmra.mrb[56].mxu1 %v7112_v6  ;;  %v7176_v6 = vcombine.low %v12362_v25, %v12361_v27 }
 0x676   : > { %6388 = vmatmul.mubr.bf16.gmra.mrb[56].mxu0 %v7116_v60  ;;  %5817 = vmatprep.mubr.bf16.mxu1 %v7121_v32  ;;  %v7180_v60 = vcombine.low %v12364_v4, %v12363_v2  ;;  %v7185_v32 = vcombine.high %v12366_v13, %v12365_v55 }
 0x677   : > { %6395 = vmatprep.mubr.bf16.mxu0 %v7125_v8  ;;  %v7189_v8 = vcombine.high %v12368_v18, %v12367_v26 }
 0x67d   : > { %5818 = vmatmul.mubr.bf16.gmra.mrb[60].mxu1 %v7120_v10  ;;  %v7184_v10 = vcombine.low %v12366_v13, %v12365_v55  ;;  %v7224_v55 = vcombine.low %v12386_v57, %v12385_v56  ;;  %v7228_v13 = vcombine.low %v12388_v46, %v12387_v61 }
 0x67e   : > { %6396 = vmatmul.mubr.bf16.gmra.mrb[60].mxu0 %v7124_v12  ;;  %5825 = vmatprep.mubr.bf16.mxu1 %v7129_v58  ;;  %v7188_v12 = vcombine.low %v12368_v18, %v12367_v26  ;;  %v7193_v58 = vcombine.high %v12370_v45, %v12369_v14  ;;  %v12389_v18 = vld [vmem:[#allocation228_spill] sm:$0xff] }
 0x67f   : > { %6403 = vmatprep.mubr.bf16.mxu0 %v7133_v15  ;;  %v7197_v15 = vcombine.high %v12372_v52, %v12371_v59 }
 0x685   : > { %5826 = vmatmul.mubr.bf16.gmra.mrb[64].mxu1 %v7128_v33  ;;  %v7192_v33 = vcombine.low %v12370_v45, %v12369_v14  ;;  %v12392_v14 = vld [vmem:[#allocation226_spill] sm:$0xff] }
 0x686   : > { %6404 = vmatmul.mubr.bf16.gmra.mrb[64].mxu0 %v7132_v16  ;;  %5833 = vmatprep.mubr.bf16.mxu1 %v7137_v5  ;;  %v7196_v16 = vcombine.low %v12372_v52, %v12371_v59  ;;  %v7201_v5 = vcombine.high %v12374_v54, %v12373_v20 }
 0x687   : > { %6411 = vmatprep.mubr.bf16.mxu0 %v7141_v30  ;;  %v7205_v30 = vcombine.high %v12376_v63, %v12375_v53 }
 0x68d   : > { %5834 = vmatmul.mubr.bf16.gmra.mrb[68].mxu1 %v7136_v48  ;;  %v7200_v48 = vcombine.low %v12374_v54, %v12373_v20 }
 0x68e   : > { %6412 = vmatmul.mubr.bf16.gmra.mrb[68].mxu0 %v7140_v17  ;;  %5841 = vmatprep.mubr.bf16.mxu1 %v7145_v3  ;;  %v7204_v17 = vcombine.low %v12376_v63, %v12375_v53  ;;  %v7209_v3 = vcombine.high %v12378_v34, %v12377_v21 }
 0x68f   : > { %6419 = vmatprep.mubr.bf16.mxu0 %v7149_v19  ;;  %v7213_v19 = vcombine.high %v12380_v28, %v12379_v24 }
 0x695   : > { %5842 = vmatmul.mubr.bf16.gmra.mrb[72].mxu1 %v7144_v41  ;;  %v7208_v41 = vcombine.low %v12378_v34, %v12377_v21  ;;  %v12393_v21 = vld [vmem:[#allocation236_spill] sm:$0xff] }
 0x696   : > { %6420 = vmatmul.mubr.bf16.gmra.mrb[72].mxu0 %v7148_v44  ;;  %5849 = vmatprep.mubr.bf16.mxu1 %v7153_v38  ;;  %v7212_v44 = vcombine.low %v12380_v28, %v12379_v24  ;;  %v7217_v38 = vcombine.high %v12382_v1, %v12381_v7  ;;  %v12394_v34 = vld [vmem:[#allocation232_spill] sm:$0xff]  ;;  %v12395_v24 = vld [vmem:[#allocation238_spill] sm:$0xff] }
 0x697   : > { %6427 = vmatprep.mubr.bf16.mxu0 %v7157_v62  ;;  %v7221_v62 = vcombine.high %v12384_v23, %v12383_v43  ;;  %v12396_v28 = vld [vmem:[#allocation234_spill] sm:$0xff] }
 0x69d   : > { %5850 = vmatmul.mubr.bf16.gmra.mrb[76].mxu1 %v7152_v39  ;;  %v11023_v39 = vld [vmem:[%s11208_s4] ss:$0 sm:$0xff] }
 0x69e   : > { %6428 = vmatmul.mubr.bf16.gmra.mrb[76].mxu0 %v7156_v11  ;;  %5857 = vmatprep.mubr.bf16.mxu1 %v7161_v51 }
 0x69f   : > { %6435 = vmatprep.mubr.bf16.mxu0 %v7165_v40  ;;  %v7220_v40 = vcombine.low %v12384_v23, %v12383_v43 }
 0x6a5   : > { %5858 = vmatmul.mubr.bf16.gmra.mrb[80].mxu1 %v7160_v50 }
 0x6a6   : > { %6436 = vmatmul.mubr.bf16.gmra.mrb[80].mxu0 %v7164_v47  ;;  %5865 = vmatprep.mubr.bf16.mxu1 %v7169_v37  ;;  %v7225_v37 = vcombine.high %v12386_v57, %v12385_v56  ;;  %v12399_v56 = vld [vmem:[#allocation246_spill] sm:$0xff] }
 0x6a7   : > { %6443 = vmatprep.mubr.bf16.mxu0 %v7173_v42  ;;  %v7229_v42 = vcombine.high %v12388_v46, %v12387_v61  ;;  %v12400_v57 = vld [vmem:[#allocation242_spill] sm:$0xff] }
 0x6ad   : > { %5866 = vmatmul.mubr.bf16.gmra.mrb[84].mxu1 %v7168_v9 }
 0x6ae   : > { %6444 = vmatmul.mubr.bf16.gmra.mrb[84].mxu0 %v7172_v35  ;;  %5873 = vmatprep.mubr.bf16.mxu1 %v7177_v0 }
 0x6af   : > { %6451 = vmatprep.mubr.bf16.mxu0 %v7181_v31 }
 0x6b5   : > { %5874 = vmatmul.mubr.bf16.gmra.mrb[88].mxu1 %v7176_v6 }
 0x6b6   : > { %6452 = vmatmul.mubr.bf16.gmra.mrb[88].mxu0 %v7180_v60  ;;  %5881 = vmatprep.mubr.bf16.mxu1 %v7185_v32 }
 0x6b7   : > { %6459 = vmatprep.mubr.bf16.mxu0 %v7189_v8  ;;  %v12390_v8 = vld [vmem:[#allocation224_spill] sm:$0xff] }
 0x6b8   : > { %v7232_v63 = vcombine.low %v12390_v8, %v12389_v18 }
 0x6bd   : > { %5882 = vmatmul.mubr.bf16.gmra.mrb[92].mxu1 %v7184_v10  ;;  %v7233_v10 = vcombine.high %v12390_v8, %v12389_v18 }
 0x6be   : > { %6460 = vmatmul.mubr.bf16.gmra.mrb[92].mxu0 %v7188_v12  ;;  %5889 = vmatprep.mubr.bf16.mxu1 %v7193_v58  ;;  %v12391_v12 = vld [vmem:[#allocation230_spill] sm:$0xff] }
 0x6bf   : > { %6467 = vmatprep.mubr.bf16.mxu0 %v7197_v15  ;;  %v7237_v45 = vcombine.high %v12392_v14, %v12391_v12 }
 0x6c5   : > { %5890 = vmatmul.mubr.bf16.gmra.mrb[96].mxu1 %v7192_v33 }
 0x6c6   : > { %6468 = vmatmul.mubr.bf16.gmra.mrb[96].mxu0 %v7196_v16  ;;  %5897 = vmatprep.mubr.bf16.mxu1 %v7201_v5 }
 0x6c7   : > { %6475 = vmatprep.mubr.bf16.mxu0 %v7205_v30  ;;  %v7236_v30 = vcombine.low %v12392_v14, %v12391_v12 }
 0x6cd   : > { %5898 = vmatmul.mubr.bf16.gmra.mrb[100].mxu1 %v7200_v48 }
 0x6ce   : > { %6476 = vmatmul.mubr.bf16.gmra.mrb[100].mxu0 %v7204_v17  ;;  %5905 = vmatprep.mubr.bf16.mxu1 %v7209_v3  ;;  %v7241_v3 = vcombine.high %v12394_v34, %v12393_v21 }
 0x6cf   : > { %6483 = vmatprep.mubr.bf16.mxu0 %v7213_v19  ;;  %v7245_v19 = vcombine.high %v12396_v28, %v12395_v24 }
 0x6d5   : > { %5906 = vmatmul.mubr.bf16.gmra.mrb[104].mxu1 %v7208_v41 }
 0x6d6   : > { %6484 = vmatmul.mubr.bf16.gmra.mrb[104].mxu0 %v7212_v44  ;;  %5913 = vmatprep.mubr.bf16.mxu1 %v7217_v38 }
 0x6d7   : > { %6491 = vmatprep.mubr.bf16.mxu0 %v7221_v62 }
 0x6d8   : > { %v5699_v11 = vpop.f32.mrb[0].mxu1 }
 0x6d9   : > { %v6277_v49 = vpop.f32.mrb[0].mxu0  ;;  %v7793_v29 = vadd.f32 %v11023_v39, %v5699_v11  ;;  %v5701_v51 = vpop.f32.mrb[1].mxu1 }
 0x6da   : > { %v6279_v22 = vpop.f32.mrb[1].mxu0  ;;  %v5702_v50 = vpop.f32.mrb[2].mxu1  ;;  %v7244_v51 = vcombine.low %v12396_v28, %v12395_v24 }
 0x6db   : > { %v6280_v47 = vpop.f32.mrb[2].mxu0  ;;  %v7794_v9 = vadd.f32 %v7793_v29, %v6277_v49  ;;  %v7795_v35 = vadd.f32 %v11023_v39, %v5702_v50  ;;  %v5704_v27 = vpop.f32.mrb[3].mxu1  ;;  %v7240_v29 = vcombine.low %v12394_v34, %v12393_v21  ;;  %v12398_v50 = vld [vmem:[#allocation240_spill] sm:$0xff] }
 0x6dc   : > { %v6282_v25 = vpop.f32.mrb[3].mxu0 }
 0x6dd   : > { %6532 = vst [vmem:[%s8420_s10] sm:$0xff] %v7794_v9  ;;  %v7796_v0 = vadd.f32 %v7795_v35, %v6280_v47  ;;  %5914 = vmatmul.mubr.bf16.gmra.mrb[108].mxu1 %v7216_v36 }
 0x6de   : > { %6492 = vmatmul.mubr.bf16.gmra.mrb[108].mxu0 %v7220_v40  ;;  %5921 = vmatprep.mubr.bf16.mxu1 %v7225_v37  ;;  %v12397_v40 = vld [vmem:[#allocation244_spill] sm:$0xff]  ;;  %v7253_v37 = vcombine.high %v12400_v57, %v12399_v56 }
 0x6df   : > { %6499 = vmatprep.mubr.bf16.mxu0 %v7229_v42  ;;  %6533 = vst [vmem:[%s8420_s10 + $0x8] sm:$0xff] %v7796_v0  ;;  %v7249_v47 = vcombine.high %v12398_v50, %v12397_v40 }
 0x6e0   : > { %v5707_v2 = vpop.f32.mrb[4].mxu1 }
 0x6e1   : > { %v6285_v4 = vpop.f32.mrb[4].mxu0  ;;  %v7797_v31 = vadd.f32 %v11023_v39, %v5707_v2  ;;  %v5709_v6 = vpop.f32.mrb[5].mxu1 }
 0x6e2   : > { %v6287_v60 = vpop.f32.mrb[5].mxu0  ;;  %v5710_v32 = vpop.f32.mrb[6].mxu1  ;;  %v7252_v6 = vcombine.low %v12400_v57, %v12399_v56 }
 0x6e3   : > { %v6288_v26 = vpop.f32.mrb[6].mxu0  ;;  %v7798_v58 = vadd.f32 %v7797_v31, %v6285_v4  ;;  %v7799_v59 = vadd.f32 %v11023_v39, %v5710_v32  ;;  %v5712_v52 = vpop.f32.mrb[7].mxu1  ;;  %v7248_v31 = vcombine.low %v12398_v50, %v12397_v40 }
 0x6e4   : > { %v6290_v15 = vpop.f32.mrb[7].mxu0 }
 0x6e5   : > { %6534 = vst [vmem:[%s8420_s10 + $0x10] sm:$0xff] %v7798_v58  ;;  %v7800_v33 = vadd.f32 %v7799_v59, %v6288_v26  ;;  %5922 = vmatmul.mubr.bf16.gmra.mrb[112].mxu1 %v7224_v55 }
 0x6e6   : > { %6500 = vmatmul.mubr.bf16.gmra.mrb[112].mxu0 %v7228_v13  ;;  %5929 = vmatprep.mubr.bf16.mxu1 %v7233_v10 }
 0x6e7   : > { %6507 = vmatprep.mubr.bf16.mxu0 %v7237_v45  ;;  %6535 = vst [vmem:[%s8420_s10 + $0x18] sm:$0xff] %v7800_v33 }
 0x6e8   : > { %v5715_v16 = vpop.f32.mrb[8].mxu1 }
 0x6e9   : > { %v6293_v20 = vpop.f32.mrb[8].mxu0  ;;  %v7801_v54 = vadd.f32 %v11023_v39, %v5715_v16  ;;  %v5717_v5 = vpop.f32.mrb[9].mxu1 }
 0x6ea   : > { %v6295_v53 = vpop.f32.mrb[9].mxu0  ;;  %v5718_v48 = vpop.f32.mrb[10].mxu1 }
 0x6eb   : > { %v6296_v17 = vpop.f32.mrb[10].mxu0  ;;  %v7802_v41 = vadd.f32 %v7801_v54, %v6293_v20  ;;  %v7803_v44 = vadd.f32 %v11023_v39, %v5718_v48  ;;  %v5720_v7 = vpop.f32.mrb[11].mxu1 }
 0x6ec   : > { %v6298_v1 = vpop.f32.mrb[11].mxu0 }
 0x6ed   : > { %6536 = vst [vmem:[%s8420_s10 + $0x20] sm:$0xff] %v7802_v41  ;;  %v7804_v38 = vadd.f32 %v7803_v44, %v6296_v17  ;;  %5930 = vmatmul.mubr.bf16.gmra.mrb[116].mxu1 %v7232_v63 }
 0x6ee   : > { %6508 = vmatmul.mubr.bf16.gmra.mrb[116].mxu0 %v7236_v30  ;;  %5937 = vmatprep.mubr.bf16.mxu1 %v7241_v3 }
 0x6ef   : > { %6515 = vmatprep.mubr.bf16.mxu0 %v7245_v19  ;;  %6537 = vst [vmem:[%s8420_s10 + $0x28] sm:$0xff] %v7804_v38 }
 0x6f0   : > { %v5723_v43 = vpop.f32.mrb[12].mxu1 }
 0x6f1   : > { %v6301_v23 = vpop.f32.mrb[12].mxu0  ;;  %v7805_v62 = vadd.f32 %v11023_v39, %v5723_v43  ;;  %v5725_v11 = vpop.f32.mrb[13].mxu1 }
 0x6f2   : > { %v6303_v49 = vpop.f32.mrb[13].mxu0  ;;  %v5726_v22 = vpop.f32.mrb[14].mxu1 }
 0x6f3   : > { %v6304_v36 = vpop.f32.mrb[14].mxu0  ;;  %v7806_v61 = vadd.f32 %v7805_v62, %v6301_v23  ;;  %v7807_v46 = vadd.f32 %v11023_v39, %v5726_v22  ;;  %v5728_v42 = vpop.f32.mrb[15].mxu1 }
 0x6f4   : > { %v6306_v9 = vpop.f32.mrb[15].mxu0 }
 0x6f5   : > { %6538 = vst [vmem:[%s8420_s10 + $0x30] sm:$0xff] %v7806_v61  ;;  %v7808_v35 = vadd.f32 %v7807_v46, %v6304_v36  ;;  %5938 = vmatmul.mubr.bf16.gmra.mrb[120].mxu1 %v7240_v29 }
 0x6f6   : > { %6516 = vmatmul.mubr.bf16.gmra.mrb[120].mxu0 %v7244_v51  ;;  %5945 = vmatprep.mubr.bf16.mxu1 %v7249_v47 }
 0x6f7   : > { %6523 = vmatprep.mubr.bf16.mxu0 %v7253_v37  ;;  %6539 = vst [vmem:[%s8420_s10 + $0x38] sm:$0xff] %v7808_v35 }
 0x6f8   : > { %v5731_v27 = vpop.f32.mrb[16].mxu1 }
 0x6f9   : > { %v6309_v25 = vpop.f32.mrb[16].mxu0  ;;  %v7809_v0 = vadd.f32 %v11023_v39, %v5731_v27  ;;  %v5733_v2 = vpop.f32.mrb[17].mxu1 }
 0x6fa   : > { %v6311_v4 = vpop.f32.mrb[17].mxu0  ;;  %v5734_v60 = vpop.f32.mrb[18].mxu1 }
 0x6fb   : > { %v6312_v55 = vpop.f32.mrb[18].mxu0  ;;  %v7810_v13 = vadd.f32 %v7809_v0, %v6309_v25  ;;  %v7811_v32 = vadd.f32 %v11023_v39, %v5734_v60  ;;  %v5736_v26 = vpop.f32.mrb[19].mxu1 }
 0x6fc   : > { %v6314_v18 = vpop.f32.mrb[19].mxu0 }
 0x6fd   : > { %6540 = vst [vmem:[%s8420_s10 + $0x40] sm:$0xff] %v7810_v13  ;;  %v7812_v8 = vadd.f32 %v7811_v32, %v6312_v55  ;;  %5946 = vmatmul.mubr.bf16.gmra.mrb[124].mxu1 %v7248_v31 }
 0x6fe   : > { %6524 = vmatmul.mubr.bf16.gmra.mrb[124].mxu0 %v7252_v6 }
 0x6ff   : > { %6541 = vst [vmem:[%s8420_s10 + $0x48] sm:$0xff] %v7812_v8 }
 0x700   : > { %v5739_v10 = vpop.f32.mrb[20].mxu1 }
 0x701   : > { %v6317_v12 = vpop.f32.mrb[20].mxu0  ;;  %v7813_v14 = vadd.f32 %v11023_v39, %v5739_v10  ;;  %v5741_v45 = vpop.f32.mrb[21].mxu1 }
 0x702   : > { %v6319_v58 = vpop.f32.mrb[21].mxu0  ;;  %v5742_v59 = vpop.f32.mrb[22].mxu1 }
 0x703   : > { %v6320_v52 = vpop.f32.mrb[22].mxu0  ;;  %v7814_v15 = vadd.f32 %v7813_v14, %v6317_v12  ;;  %v7815_v33 = vadd.f32 %v11023_v39, %v5742_v59  ;;  %v5744_v16 = vpop.f32.mrb[23].mxu1 }
 0x704   : > { %v6322_v20 = vpop.f32.mrb[23].mxu0 }
 0x705   : > { %6542 = vst [vmem:[%s8420_s10 + $0x50] sm:$0xff] %v7814_v15  ;;  %v7816_v54 = vadd.f32 %v7815_v33, %v6320_v52 }
 0x707   : > { %6543 = vst [vmem:[%s8420_s10 + $0x58] sm:$0xff] %v7816_v54 }
 0x708   : > { %v5747_v5 = vpop.f32.mrb[24].mxu1 }
 0x709   : > { %v6325_v53 = vpop.f32.mrb[24].mxu0  ;;  %v7817_v63 = vadd.f32 %v11023_v39, %v5747_v5  ;;  %v5749_v30 = vpop.f32.mrb[25].mxu1 }
 0x70a   : > { %v6327_v48 = vpop.f32.mrb[25].mxu0  ;;  %v5750_v17 = vpop.f32.mrb[26].mxu1 }
 0x70b   : > { %v6328_v21 = vpop.f32.mrb[26].mxu0  ;;  %v7818_v34 = vadd.f32 %v7817_v63, %v6325_v53  ;;  %v7819_v3 = vadd.f32 %v11023_v39, %v5750_v17  ;;  %v5752_v24 = vpop.f32.mrb[27].mxu1 }
 0x70c   : > { %v6330_v28 = vpop.f32.mrb[27].mxu0 }
 0x70d   : > { %6544 = vst [vmem:[%s8420_s10 + $0x60] sm:$0xff] %v7818_v34  ;;  %v7820_v19 = vadd.f32 %v7819_v3, %v6328_v21 }
 0x70f   : > { %6545 = vst [vmem:[%s8420_s10 + $0x68] sm:$0xff] %v7820_v19 }
 0x710   : > { %v5755_v41 = vpop.f32.mrb[28].mxu1 }
 0x711   : > { %v6333_v44 = vpop.f32.mrb[28].mxu0  ;;  %v7821_v7 = vadd.f32 %v11023_v39, %v5755_v41  ;;  %v5757_v1 = vpop.f32.mrb[29].mxu1 }
 0x712   : > { %v6335_v38 = vpop.f32.mrb[29].mxu0  ;;  %v5758_v43 = vpop.f32.mrb[30].mxu1 }
 0x713   : > { %v6336_v23 = vpop.f32.mrb[30].mxu0  ;;  %v7822_v62 = vadd.f32 %v7821_v7, %v6333_v44  ;;  %v7823_v11 = vadd.f32 %v11023_v39, %v5758_v43  ;;  %v5760_v49 = vpop.f32.mrb[31].mxu1 }
 0x714   : > { %v6338_v29 = vpop.f32.mrb[31].mxu0 }
 0x715   : > { %6546 = vst [vmem:[%s8420_s10 + $0x70] sm:$0xff] %v7822_v62  ;;  %v7824_v51 = vadd.f32 %v7823_v11, %v6336_v23 }
 0x717   : > { %6547 = vst [vmem:[%s8420_s10 + $0x78] sm:$0xff] %v7824_v51 }
 0x718   : > { %v5763_v22 = vpop.f32.mrb[32].mxu1 }
 0x719   : > { %v6341_v36 = vpop.f32.mrb[32].mxu0  ;;  %v7825_v40 = vadd.f32 %v11023_v39, %v5763_v22  ;;  %v5765_v50 = vpop.f32.mrb[33].mxu1 }
 0x71a   : > { %v6343_v47 = vpop.f32.mrb[33].mxu0  ;;  %v5766_v56 = vpop.f32.mrb[34].mxu1 }
 0x71b   : > { %v6344_v57 = vpop.f32.mrb[34].mxu0  ;;  %v7826_v37 = vadd.f32 %v7825_v40, %v6341_v36  ;;  %v7827_v61 = vadd.f32 %v11023_v39, %v5766_v56  ;;  %v5768_v46 = vpop.f32.mrb[35].mxu1 }
 0x71c   : > { %v6346_v42 = vpop.f32.mrb[35].mxu0 }
 0x71d   : > { %6548 = vst [vmem:[%s8420_s10 + $0x80] sm:$0xff] %v7826_v37  ;;  %v7828_v9 = vadd.f32 %v7827_v61, %v6344_v57 }
 0x71f   : > { %6549 = vst [vmem:[%s8420_s10 + $0x88] sm:$0xff] %v7828_v9 }
 0x720   : > { %v5771_v35 = vpop.f32.mrb[36].mxu1 }
 0x721   : > { %v6349_v27 = vpop.f32.mrb[36].mxu0  ;;  %v7829_v25 = vadd.f32 %v11023_v39, %v5771_v35  ;;  %v5773_v0 = vpop.f32.mrb[37].mxu1 }
 0x722   : > { %v6351_v2 = vpop.f32.mrb[37].mxu0  ;;  %v5774_v4 = vpop.f32.mrb[38].mxu1 }
 0x723   : > { %v6352_v31 = vpop.f32.mrb[38].mxu0  ;;  %v7830_v6 = vadd.f32 %v7829_v25, %v6349_v27  ;;  %v7831_v60 = vadd.f32 %v11023_v39, %v5774_v4  ;;  %v5776_v55 = vpop.f32.mrb[39].mxu1 }
 0x724   : > { %v6354_v13 = vpop.f32.mrb[39].mxu0 }
 0x725   : > { %6550 = vst [vmem:[%s8420_s10 + $0x90] sm:$0xff] %v7830_v6  ;;  %v7832_v32 = vadd.f32 %v7831_v60, %v6352_v31 }
 0x727   : > { %6551 = vst [vmem:[%s8420_s10 + $0x98] sm:$0xff] %v7832_v32 }
 0x728   : > { %v5779_v26 = vpop.f32.mrb[40].mxu1 }
 0x729   : > { %v6357_v18 = vpop.f32.mrb[40].mxu0  ;;  %v7833_v8 = vadd.f32 %v11023_v39, %v5779_v26  ;;  %v5781_v10 = vpop.f32.mrb[41].mxu1 }
 0x72a   : > { %v6359_v12 = vpop.f32.mrb[41].mxu0  ;;  %v5782_v14 = vpop.f32.mrb[42].mxu1 }
 0x72b   : > { %v6360_v45 = vpop.f32.mrb[42].mxu0  ;;  %v7834_v58 = vadd.f32 %v7833_v8, %v6357_v18  ;;  %v7835_v59 = vadd.f32 %v11023_v39, %v5782_v14  ;;  %v5784_v52 = vpop.f32.mrb[43].mxu1 }
 0x72c   : > { %v6362_v15 = vpop.f32.mrb[43].mxu0 }
 0x72d   : > { %6552 = vst [vmem:[%s8420_s10 + $0xa0] sm:$0xff] %v7834_v58  ;;  %v7836_v33 = vadd.f32 %v7835_v59, %v6360_v45 }
 0x72f   : > { %6553 = vst [vmem:[%s8420_s10 + $0xa8] sm:$0xff] %v7836_v33 }
 0x730   : > { %v5787_v16 = vpop.f32.mrb[44].mxu1 }
 0x731   : > { %v6365_v20 = vpop.f32.mrb[44].mxu0  ;;  %v7837_v54 = vadd.f32 %v11023_v39, %v5787_v16  ;;  %v5789_v5 = vpop.f32.mrb[45].mxu1 }
 0x732   : > { %v6367_v53 = vpop.f32.mrb[45].mxu0  ;;  %v5790_v63 = vpop.f32.mrb[46].mxu1 }
 0x733   : > { %v6368_v30 = vpop.f32.mrb[46].mxu0  ;;  %v7838_v48 = vadd.f32 %v7837_v54, %v6365_v20  ;;  %v7839_v17 = vadd.f32 %v11023_v39, %v5790_v63  ;;  %v5792_v21 = vpop.f32.mrb[47].mxu1 }
 0x734   : > { %v6370_v34 = vpop.f32.mrb[47].mxu0 }
 0x735   : > { %6554 = vst [vmem:[%s8420_s10 + $0xb0] sm:$0xff] %v7838_v48  ;;  %v7840_v3 = vadd.f32 %v7839_v17, %v6368_v30 }
 0x737   : > { %6555 = vst [vmem:[%s8420_s10 + $0xb8] sm:$0xff] %v7840_v3 }
 0x738   : > { %v5795_v24 = vpop.f32.mrb[48].mxu1 }
 0x739   : > { %v6373_v28 = vpop.f32.mrb[48].mxu0  ;;  %v7841_v19 = vadd.f32 %v11023_v39, %v5795_v24  ;;  %v5797_v41 = vpop.f32.mrb[49].mxu1 }
 0x73a   : > { %v6375_v44 = vpop.f32.mrb[49].mxu0  ;;  %v5798_v7 = vpop.f32.mrb[50].mxu1 }
 0x73b   : > { %v6376_v1 = vpop.f32.mrb[50].mxu0  ;;  %v7842_v38 = vadd.f32 %v7841_v19, %v6373_v28  ;;  %v7843_v43 = vadd.f32 %v11023_v39, %v5798_v7  ;;  %v5800_v23 = vpop.f32.mrb[51].mxu1 }
 0x73c   : > { %v6378_v62 = vpop.f32.mrb[51].mxu0 }
 0x73d   : > { %6556 = vst [vmem:[%s8420_s10 + $0xc0] sm:$0xff] %v7842_v38  ;;  %v7844_v11 = vadd.f32 %v7843_v43, %v6376_v1 }
 0x73f   : > { %6557 = vst [vmem:[%s8420_s10 + $0xc8] sm:$0xff] %v7844_v11 }
 0x740   : > { %v5803_v49 = vpop.f32.mrb[52].mxu1 }
 0x741   : > { %v6381_v29 = vpop.f32.mrb[52].mxu0  ;;  %v7845_v51 = vadd.f32 %v11023_v39, %v5803_v49  ;;  %v5805_v22 = vpop.f32.mrb[53].mxu1 }
 0x742   : > { %v6383_v36 = vpop.f32.mrb[53].mxu0  ;;  %v5806_v40 = vpop.f32.mrb[54].mxu1 }
 0x743   : > { %v6384_v50 = vpop.f32.mrb[54].mxu0  ;;  %v7846_v47 = vadd.f32 %v7845_v51, %v6381_v29  ;;  %v7847_v56 = vadd.f32 %v11023_v39, %v5806_v40  ;;  %v5808_v57 = vpop.f32.mrb[55].mxu1 }
 0x744   : > { %v6386_v37 = vpop.f32.mrb[55].mxu0 }
 0x745   : > { %6558 = vst [vmem:[%s8420_s10 + $0xd0] sm:$0xff] %v7846_v47  ;;  %v7848_v61 = vadd.f32 %v7847_v56, %v6384_v50 }
 0x747   : > { %6559 = vst [vmem:[%s8420_s10 + $0xd8] sm:$0xff] %v7848_v61 }
 0x748   : > { %v5811_v46 = vpop.f32.mrb[56].mxu1 }
 0x749   : > { %v6389_v42 = vpop.f32.mrb[56].mxu0  ;;  %v7849_v9 = vadd.f32 %v11023_v39, %v5811_v46  ;;  %v5813_v35 = vpop.f32.mrb[57].mxu1 }
 0x74a   : > { %v6391_v27 = vpop.f32.mrb[57].mxu0  ;;  %v5814_v25 = vpop.f32.mrb[58].mxu1 }
 0x74b   : > { %v6392_v0 = vpop.f32.mrb[58].mxu0  ;;  %v7850_v2 = vadd.f32 %v7849_v9, %v6389_v42  ;;  %v7851_v4 = vadd.f32 %v11023_v39, %v5814_v25  ;;  %v5816_v31 = vpop.f32.mrb[59].mxu1 }
 0x74c   : > { %v6394_v6 = vpop.f32.mrb[59].mxu0 }
 0x74d   : > { %6560 = vst [vmem:[%s8420_s10 + $0xe0] sm:$0xff] %v7850_v2  ;;  %v7852_v60 = vadd.f32 %v7851_v4, %v6392_v0 }
 0x74f   : > { %6561 = vst [vmem:[%s8420_s10 + $0xe8] sm:$0xff] %v7852_v60 }
 0x750   : > { %v5819_v55 = vpop.f32.mrb[60].mxu1 }
 0x751   : > { %v6397_v13 = vpop.f32.mrb[60].mxu0  ;;  %v7853_v32 = vadd.f32 %v11023_v39, %v5819_v55  ;;  %v5821_v26 = vpop.f32.mrb[61].mxu1 }
 0x752   : > { %v6399_v18 = vpop.f32.mrb[61].mxu0  ;;  %v5822_v8 = vpop.f32.mrb[62].mxu1 }
 0x753   : > { %v6400_v10 = vpop.f32.mrb[62].mxu0  ;;  %v7854_v12 = vadd.f32 %v7853_v32, %v6397_v13  ;;  %v7855_v14 = vadd.f32 %v11023_v39, %v5822_v8  ;;  %v5824_v45 = vpop.f32.mrb[63].mxu1 }
 0x754   : > { %v6402_v58 = vpop.f32.mrb[63].mxu0 }
 0x755   : > { %6562 = vst [vmem:[%s8420_s10 + $0xf0] sm:$0xff] %v7854_v12  ;;  %v7856_v59 = vadd.f32 %v7855_v14, %v6400_v10 }
 0x757   : > { %6563 = vst [vmem:[%s8420_s10 + $0xf8] sm:$0xff] %v7856_v59 }
 0x758   : > { %v5827_v52 = vpop.f32.mrb[64].mxu1 }
 0x759   : > { %v6405_v15 = vpop.f32.mrb[64].mxu0  ;;  %v7857_v33 = vadd.f32 %v11023_v39, %v5827_v52  ;;  %v5829_v16 = vpop.f32.mrb[65].mxu1 }
 0x75a   : > { %v6407_v20 = vpop.f32.mrb[65].mxu0  ;;  %v5830_v54 = vpop.f32.mrb[66].mxu1 }
 0x75b   : > { %v6408_v5 = vpop.f32.mrb[66].mxu0  ;;  %v7858_v53 = vadd.f32 %v7857_v33, %v6405_v15  ;;  %v7859_v63 = vadd.f32 %v11023_v39, %v5830_v54  ;;  %v5832_v30 = vpop.f32.mrb[67].mxu1 }
 0x75c   : > { %v6410_v48 = vpop.f32.mrb[67].mxu0 }
 0x75d   : > { %6564 = vst [vmem:[%s8420_s10 + $0x100] sm:$0xff] %v7858_v53  ;;  %v7860_v17 = vadd.f32 %v7859_v63, %v6408_v5 }
 0x75f   : > { %6565 = vst [vmem:[%s8420_s10 + $0x108] sm:$0xff] %v7860_v17 }
 0x760   : > { %v5835_v21 = vpop.f32.mrb[68].mxu1 }
 0x761   : > { %v6413_v34 = vpop.f32.mrb[68].mxu0  ;;  %v7861_v3 = vadd.f32 %v11023_v39, %v5835_v21  ;;  %v5837_v24 = vpop.f32.mrb[69].mxu1 }
 0x762   : > { %v6415_v28 = vpop.f32.mrb[69].mxu0  ;;  %v5838_v19 = vpop.f32.mrb[70].mxu1 }
 0x763   : > { %v6416_v41 = vpop.f32.mrb[70].mxu0  ;;  %v7862_v44 = vadd.f32 %v7861_v3, %v6413_v34  ;;  %v7863_v7 = vadd.f32 %v11023_v39, %v5838_v19  ;;  %v5840_v1 = vpop.f32.mrb[71].mxu1 }
 0x764   : > { %v6418_v38 = vpop.f32.mrb[71].mxu0 }
 0x765   : > { %6566 = vst [vmem:[%s8420_s10 + $0x110] sm:$0xff] %v7862_v44  ;;  %v7864_v43 = vadd.f32 %v7863_v7, %v6416_v41 }
 0x767   : > { %6567 = vst [vmem:[%s8420_s10 + $0x118] sm:$0xff] %v7864_v43 }
 0x768   : > { %v5843_v23 = vpop.f32.mrb[72].mxu1 }
 0x769   : > { %v6421_v62 = vpop.f32.mrb[72].mxu0  ;;  %v7865_v11 = vadd.f32 %v11023_v39, %v5843_v23  ;;  %v5845_v49 = vpop.f32.mrb[73].mxu1 }
 0x76a   : > { %v6423_v29 = vpop.f32.mrb[73].mxu0  ;;  %v5846_v51 = vpop.f32.mrb[74].mxu1 }
 0x76b   : > { %v6424_v22 = vpop.f32.mrb[74].mxu0  ;;  %v7866_v36 = vadd.f32 %v7865_v11, %v6421_v62  ;;  %v7867_v40 = vadd.f32 %v11023_v39, %v5846_v51  ;;  %v5848_v50 = vpop.f32.mrb[75].mxu1 }
 0x76c   : > { %v6426_v47 = vpop.f32.mrb[75].mxu0 }
 0x76d   : > { %6568 = vst [vmem:[%s8420_s10 + $0x120] sm:$0xff] %v7866_v36  ;;  %v7868_v56 = vadd.f32 %v7867_v40, %v6424_v22 }
 0x76f   : > { %6569 = vst [vmem:[%s8420_s10 + $0x128] sm:$0xff] %v7868_v56 }
 0x770   : > { %v5851_v57 = vpop.f32.mrb[76].mxu1 }
 0x771   : > { %v6429_v37 = vpop.f32.mrb[76].mxu0  ;;  %v7869_v61 = vadd.f32 %v11023_v39, %v5851_v57  ;;  %v5853_v46 = vpop.f32.mrb[77].mxu1 }
 0x772   : > { %v6431_v42 = vpop.f32.mrb[77].mxu0  ;;  %v5854_v9 = vpop.f32.mrb[78].mxu1 }
 0x773   : > { %v6432_v35 = vpop.f32.mrb[78].mxu0  ;;  %v7870_v27 = vadd.f32 %v7869_v61, %v6429_v37  ;;  %v7871_v25 = vadd.f32 %v11023_v39, %v5854_v9  ;;  %v5856_v0 = vpop.f32.mrb[79].mxu1 }
 0x774   : > { %v6434_v2 = vpop.f32.mrb[79].mxu0 }
 0x775   : > { %6570 = vst [vmem:[%s8420_s10 + $0x130] sm:$0xff] %v7870_v27  ;;  %v7872_v4 = vadd.f32 %v7871_v25, %v6432_v35 }
 0x777   : > { %6571 = vst [vmem:[%s8420_s10 + $0x138] sm:$0xff] %v7872_v4 }
 0x778   : > { %v5859_v31 = vpop.f32.mrb[80].mxu1 }
 0x779   : > { %v6437_v6 = vpop.f32.mrb[80].mxu0  ;;  %v7873_v60 = vadd.f32 %v11023_v39, %v5859_v31  ;;  %v5861_v55 = vpop.f32.mrb[81].mxu1 }
 0x77a   : > { %v6439_v13 = vpop.f32.mrb[81].mxu0  ;;  %v5862_v32 = vpop.f32.mrb[82].mxu1 }
 0x77b   : > { %v6440_v26 = vpop.f32.mrb[82].mxu0  ;;  %v7874_v18 = vadd.f32 %v7873_v60, %v6437_v6  ;;  %v7875_v8 = vadd.f32 %v11023_v39, %v5862_v32  ;;  %v5864_v10 = vpop.f32.mrb[83].mxu1 }
 0x77c   : > { %v6442_v12 = vpop.f32.mrb[83].mxu0 }
 0x77d   : > { %6572 = vst [vmem:[%s8420_s10 + $0x140] sm:$0xff] %v7874_v18  ;;  %v7876_v14 = vadd.f32 %v7875_v8, %v6440_v26 }
 0x77f   : > { %6573 = vst [vmem:[%s8420_s10 + $0x148] sm:$0xff] %v7876_v14 }
 0x780   : > { %v5867_v45 = vpop.f32.mrb[84].mxu1 }
 0x781   : > { %v6445_v58 = vpop.f32.mrb[84].mxu0  ;;  %v7877_v59 = vadd.f32 %v11023_v39, %v5867_v45  ;;  %v5869_v52 = vpop.f32.mrb[85].mxu1 }
 0x782   : > { %v6447_v15 = vpop.f32.mrb[85].mxu0  ;;  %v5870_v33 = vpop.f32.mrb[86].mxu1 }
 0x783   : > { %v6448_v16 = vpop.f32.mrb[86].mxu0  ;;  %v7878_v20 = vadd.f32 %v7877_v59, %v6445_v58  ;;  %v7879_v54 = vadd.f32 %v11023_v39, %v5870_v33  ;;  %v5872_v5 = vpop.f32.mrb[87].mxu1 }
 0x784   : > { %v6450_v53 = vpop.f32.mrb[87].mxu0 }
 0x785   : > { %6574 = vst [vmem:[%s8420_s10 + $0x150] sm:$0xff] %v7878_v20  ;;  %v7880_v63 = vadd.f32 %v7879_v54, %v6448_v16 }
 0x787   : > { %6575 = vst [vmem:[%s8420_s10 + $0x158] sm:$0xff] %v7880_v63 }
 0x788   : > { %v5875_v30 = vpop.f32.mrb[88].mxu1 }
 0x789   : > { %v6453_v48 = vpop.f32.mrb[88].mxu0  ;;  %v7881_v17 = vadd.f32 %v11023_v39, %v5875_v30  ;;  %v5877_v21 = vpop.f32.mrb[89].mxu1 }
 0x78a   : > { %v6455_v34 = vpop.f32.mrb[89].mxu0  ;;  %v5878_v3 = vpop.f32.mrb[90].mxu1 }
 0x78b   : > { %v6456_v24 = vpop.f32.mrb[90].mxu0  ;;  %v7882_v28 = vadd.f32 %v7881_v17, %v6453_v48  ;;  %v7883_v19 = vadd.f32 %v11023_v39, %v5878_v3  ;;  %v5880_v41 = vpop.f32.mrb[91].mxu1 }
 0x78c   : > { %v6458_v44 = vpop.f32.mrb[91].mxu0 }
 0x78d   : > { %6576 = vst [vmem:[%s8420_s10 + $0x160] sm:$0xff] %v7882_v28  ;;  %v7884_v7 = vadd.f32 %v7883_v19, %v6456_v24 }
 0x78f   : > { %6577 = vst [vmem:[%s8420_s10 + $0x168] sm:$0xff] %v7884_v7 }
 0x790   : > { %v5883_v1 = vpop.f32.mrb[92].mxu1 }
 0x791   : > { %v6461_v38 = vpop.f32.mrb[92].mxu0  ;;  %v7885_v43 = vadd.f32 %v11023_v39, %v5883_v1  ;;  %v5885_v23 = vpop.f32.mrb[93].mxu1 }
 0x792   : > { %v6463_v62 = vpop.f32.mrb[93].mxu0  ;;  %v5886_v11 = vpop.f32.mrb[94].mxu1 }
 0x793   : > { %v6464_v49 = vpop.f32.mrb[94].mxu0  ;;  %v7886_v29 = vadd.f32 %v7885_v43, %v6461_v38  ;;  %v7887_v51 = vadd.f32 %v11023_v39, %v5886_v11  ;;  %v5888_v22 = vpop.f32.mrb[95].mxu1 }
 0x794   : > { %v6466_v36 = vpop.f32.mrb[95].mxu0 }
 0x795   : > { %6578 = vst [vmem:[%s8420_s10 + $0x170] sm:$0xff] %v7886_v29  ;;  %v7888_v40 = vadd.f32 %v7887_v51, %v6464_v49 }
 0x797   : > { %6579 = vst [vmem:[%s8420_s10 + $0x178] sm:$0xff] %v7888_v40 }
 0x798   : > { %v5891_v50 = vpop.f32.mrb[96].mxu1 }
 0x799   : > { %v6469_v47 = vpop.f32.mrb[96].mxu0  ;;  %v7889_v56 = vadd.f32 %v11023_v39, %v5891_v50  ;;  %v5893_v57 = vpop.f32.mrb[97].mxu1 }
 0x79a   : > { %v6471_v37 = vpop.f32.mrb[97].mxu0  ;;  %v5894_v61 = vpop.f32.mrb[98].mxu1 }
 0x79b   : > { %v6472_v46 = vpop.f32.mrb[98].mxu0  ;;  %v7890_v42 = vadd.f32 %v7889_v56, %v6469_v47  ;;  %v7891_v9 = vadd.f32 %v11023_v39, %v5894_v61  ;;  %v5896_v35 = vpop.f32.mrb[99].mxu1 }
 0x79c   : > { %v6474_v27 = vpop.f32.mrb[99].mxu0 }
 0x79d   : > { %6580 = vst [vmem:[%s8420_s10 + $0x180] sm:$0xff] %v7890_v42  ;;  %v7892_v25 = vadd.f32 %v7891_v9, %v6472_v46 }
 0x79f   : > { %6581 = vst [vmem:[%s8420_s10 + $0x188] sm:$0xff] %v7892_v25 }
 0x7a0   : > { %v5899_v0 = vpop.f32.mrb[100].mxu1 }
 0x7a1   : > { %v6477_v2 = vpop.f32.mrb[100].mxu0  ;;  %v7893_v4 = vadd.f32 %v11023_v39, %v5899_v0  ;;  %v5901_v31 = vpop.f32.mrb[101].mxu1 }
 0x7a2   : > { %v6479_v6 = vpop.f32.mrb[101].mxu0  ;;  %v5902_v60 = vpop.f32.mrb[102].mxu1 }
 0x7a3   : > { %v6480_v55 = vpop.f32.mrb[102].mxu0  ;;  %v7894_v13 = vadd.f32 %v7893_v4, %v6477_v2  ;;  %v7895_v32 = vadd.f32 %v11023_v39, %v5902_v60  ;;  %v5904_v26 = vpop.f32.mrb[103].mxu1 }
 0x7a4   : > { %v6482_v18 = vpop.f32.mrb[103].mxu0 }
 0x7a5   : > { %6582 = vst [vmem:[%s8420_s10 + $0x190] sm:$0xff] %v7894_v13  ;;  %v7896_v8 = vadd.f32 %v7895_v32, %v6480_v55 }
 0x7a7   : > { %6583 = vst [vmem:[%s8420_s10 + $0x198] sm:$0xff] %v7896_v8 }
 0x7a8   : > { %v5907_v10 = vpop.f32.mrb[104].mxu1 }
 0x7a9   : > { %v6485_v12 = vpop.f32.mrb[104].mxu0  ;;  %v7897_v14 = vadd.f32 %v11023_v39, %v5907_v10  ;;  %v5909_v45 = vpop.f32.mrb[105].mxu1 }
 0x7aa   : > { %v6487_v58 = vpop.f32.mrb[105].mxu0  ;;  %v5910_v59 = vpop.f32.mrb[106].mxu1 }
 0x7ab   : > { %v6488_v52 = vpop.f32.mrb[106].mxu0  ;;  %v7898_v15 = vadd.f32 %v7897_v14, %v6485_v12  ;;  %v7899_v33 = vadd.f32 %v11023_v39, %v5910_v59  ;;  %v5912_v16 = vpop.f32.mrb[107].mxu1 }
 0x7ac   : > { %v6490_v20 = vpop.f32.mrb[107].mxu0 }
 0x7ad   : > { %6584 = vst [vmem:[%s8420_s10 + $0x1a0] sm:$0xff] %v7898_v15  ;;  %v7900_v54 = vadd.f32 %v7899_v33, %v6488_v52 }
 0x7af   : > { %6585 = vst [vmem:[%s8420_s10 + $0x1a8] sm:$0xff] %v7900_v54 }
 0x7b0   : > { %v5915_v5 = vpop.f32.mrb[108].mxu1 }
 0x7b1   : > { %v6493_v53 = vpop.f32.mrb[108].mxu0  ;;  %v7901_v63 = vadd.f32 %v11023_v39, %v5915_v5  ;;  %v5917_v30 = vpop.f32.mrb[109].mxu1 }
 0x7b2   : > { %v6495_v48 = vpop.f32.mrb[109].mxu0  ;;  %v5918_v17 = vpop.f32.mrb[110].mxu1 }
 0x7b3   : > { %v6496_v21 = vpop.f32.mrb[110].mxu0  ;;  %v7902_v34 = vadd.f32 %v7901_v63, %v6493_v53  ;;  %v7903_v3 = vadd.f32 %v11023_v39, %v5918_v17  ;;  %v5920_v24 = vpop.f32.mrb[111].mxu1 }
 0x7b4   : > { %v6498_v28 = vpop.f32.mrb[111].mxu0 }
 0x7b5   : > { %6586 = vst [vmem:[%s8420_s10 + $0x1b0] sm:$0xff] %v7902_v34  ;;  %v7904_v19 = vadd.f32 %v7903_v3, %v6496_v21 }
 0x7b7   : > { %6587 = vst [vmem:[%s8420_s10 + $0x1b8] sm:$0xff] %v7904_v19 }
 0x7b8   : > { %v5923_v41 = vpop.f32.mrb[112].mxu1 }
 0x7b9   : > { %v6501_v44 = vpop.f32.mrb[112].mxu0  ;;  %v7905_v7 = vadd.f32 %v11023_v39, %v5923_v41  ;;  %v5925_v1 = vpop.f32.mrb[113].mxu1 }
 0x7ba   : > { %v6503_v38 = vpop.f32.mrb[113].mxu0  ;;  %v5926_v43 = vpop.f32.mrb[114].mxu1 }
 0x7bb   : > { %v6504_v23 = vpop.f32.mrb[114].mxu0  ;;  %v7906_v62 = vadd.f32 %v7905_v7, %v6501_v44  ;;  %v7907_v11 = vadd.f32 %v11023_v39, %v5926_v43  ;;  %v5928_v49 = vpop.f32.mrb[115].mxu1 }
 0x7bc   : > { %v6506_v29 = vpop.f32.mrb[115].mxu0 }
 0x7bd   : > { %6588 = vst [vmem:[%s8420_s10 + $0x1c0] sm:$0xff] %v7906_v62  ;;  %v7908_v51 = vadd.f32 %v7907_v11, %v6504_v23 }
 0x7bf   : > { %6589 = vst [vmem:[%s8420_s10 + $0x1c8] sm:$0xff] %v7908_v51 }
 0x7c0   : > { %v5931_v22 = vpop.f32.mrb[116].mxu1 }
 0x7c1   : > { %v6509_v36 = vpop.f32.mrb[116].mxu0  ;;  %v7909_v40 = vadd.f32 %v11023_v39, %v5931_v22  ;;  %v5933_v50 = vpop.f32.mrb[117].mxu1 }
 0x7c2   : > { %v6511_v47 = vpop.f32.mrb[117].mxu0  ;;  %v5934_v56 = vpop.f32.mrb[118].mxu1 }
 0x7c3   : > { %v6512_v57 = vpop.f32.mrb[118].mxu0  ;;  %v7910_v37 = vadd.f32 %v7909_v40, %v6509_v36  ;;  %v7911_v61 = vadd.f32 %v11023_v39, %v5934_v56  ;;  %v5936_v46 = vpop.f32.mrb[119].mxu1 }
 0x7c4   : > { %v6514_v42 = vpop.f32.mrb[119].mxu0 }
 0x7c5   : > { %6590 = vst [vmem:[%s8420_s10 + $0x1d0] sm:$0xff] %v7910_v37  ;;  %v7912_v9 = vadd.f32 %v7911_v61, %v6512_v57 }
 0x7c7   : > { %6591 = vst [vmem:[%s8420_s10 + $0x1d8] sm:$0xff] %v7912_v9 }
 0x7c8   : > { %v5939_v35 = vpop.f32.mrb[120].mxu1 }
 0x7c9   : > { %v6517_v27 = vpop.f32.mrb[120].mxu0  ;;  %v7913_v25 = vadd.f32 %v11023_v39, %v5939_v35  ;;  %v5941_v0 = vpop.f32.mrb[121].mxu1 }
 0x7ca   : > { %v6519_v2 = vpop.f32.mrb[121].mxu0  ;;  %v5942_v4 = vpop.f32.mrb[122].mxu1 }
 0x7cb   : > { %v6520_v31 = vpop.f32.mrb[122].mxu0  ;;  %v7914_v6 = vadd.f32 %v7913_v25, %v6517_v27  ;;  %v7915_v60 = vadd.f32 %v11023_v39, %v5942_v4  ;;  %v5944_v55 = vpop.f32.mrb[123].mxu1 }
 0x7cc   : > { %v6522_v13 = vpop.f32.mrb[123].mxu0 }
 0x7cd   : > { %6592 = vst [vmem:[%s8420_s10 + $0x1e0] sm:$0xff] %v7914_v6  ;;  %v7916_v32 = vadd.f32 %v7915_v60, %v6520_v31 }
 0x7cf   : > { %6593 = vst [vmem:[%s8420_s10 + $0x1e8] sm:$0xff] %v7916_v32 }
 0x7d0   : > { %v5947_v26 = vpop.f32.mrb[124].mxu1 }
 0x7d1   : > { %v6525_v18 = vpop.f32.mrb[124].mxu0  ;;  %v7917_v8 = vadd.f32 %v11023_v39, %v5947_v26  ;;  %v5949_v10 = vpop.f32.mrb[125].mxu1 }
 0x7d2   : > { %v6527_v12 = vpop.f32.mrb[125].mxu0  ;;  %v5950_v14 = vpop.f32.mrb[126].mxu1 }
 0x7d3   : > { %v6528_v45 = vpop.f32.mrb[126].mxu0  ;;  %v7918_v58 = vadd.f32 %v7917_v8, %v6525_v18  ;;  %v7919_v59 = vadd.f32 %v11023_v39, %v5950_v14  ;;  %v5952_v52 = vpop.f32.mrb[127].mxu1 }
 0x7d4   : > { %v6530_v15 = vpop.f32.mrb[127].mxu0 }
 0x7d5   : > { %6594 = vst [vmem:[%s8420_s10 + $0x1f0] sm:$0xff] %v7918_v58  ;;  %v7920_v33 = vadd.f32 %v7919_v59, %v6528_v45 }
 0x7d7   : > { %6595 = vst [vmem:[%s8420_s10 + $0x1f8] sm:$0xff] %v7920_v33 }
 0x7d8 PF: > { %s15_s22 = sadd.s32 1, %s8330_s22   ;;  %s12401_s18 = smov %s8322_s20 }
 0x7d9   : > { %p12_p8 = scmp.ge.s32.totalorder %s15_s22, 6   ;;  %s12402_s19 = smov %s8326_s21 }
 0x7da   : > { %s12403_s20 = smov %s12406_s23  ;;  %s12404_s21 = smov %s12410_s24 }
 0x7db   :  { %14 = sbr.rel (!%p12_p8) target bundleno = 3 (0x3), region = 77 }

</bundles_post_ra>
